<compile_context>
chip_gen: v7x
topology: tpu7x:2x2x1
jax: 0.10.0
libtpu: 0.0.40
codegen_flags: <defaults>
</compile_context>

<pallas_src>
import jax
import jax.numpy as jnp
from jax.experimental import pallas as pl
from jax.experimental.pallas import tpu as pltpu


Z_DIM = 32
HIDDEN_DIMS = [128, 256, 512, 1024]
OUTPUT_SHAPE = [1, 28, 28]
FLAT_OUT = OUTPUT_SHAPE[0] * OUTPUT_SHAPE[1] * OUTPUT_SHAPE[2]  # 784


def _round_up(x, m):
    return ((x + m - 1) // m) * m


def _cdiv(a, b):
    return -(-a // b)


def _choose_batch_tiling(batch):
    """Return (TB, B_pad, num_tiles).

    - TB <= 1024: amortizes per-grid-step overhead (v6e/v5e) while keeping
      per-TensorCore VMEM well under v7x's 64 MiB.
    - >= 2 tiles (even count) whenever the batch allows, so the 'parallel'
      batch axis is sharded across v7x's 2 TensorCores with balanced load.
    - TB derived from cdiv(B, num_tiles): padding waste <= one sublane group
      (8 rows) per tile instead of up to a full tile.
    """
    b8 = _round_up(batch, 8)
    if b8 <= 16:
        return b8, b8, 1
    tb_max = 1024
    num_tiles = max(2, _cdiv(b8, tb_max))
    if num_tiles % 2:
        num_tiles += 1  # even split -> balanced across v7x's 2 TensorCores
    tb = _round_up(_cdiv(b8, num_tiles), 8)
    return tb, tb * num_tiles, num_tiles


def generator_mlp_kernel(z_ref,
                         w0_ref, b0_ref,
                         w1_ref, b1_ref,
                         w2_ref, b2_ref,
                         w3_ref, b3_ref,
                         w4_ref, b4_ref,
                         out_ref):
    """Fused forward for one batch tile.

    z_ref:   (TB, Z_DIM)     bf16
    wN_ref:  (in, out)       bf16
    bN_ref:  (1, out)        f32
    out_ref: (TB, FLAT_OUT)  bf16
    """

    def dense(x_bf16, w_ref, b_ref):
        # bf16 x bf16 matmul on the MXU with f32 accumulation, f32 bias add.
        return jnp.dot(x_bf16, w_ref[...],
                       preferred_element_type=jnp.float32) + b_ref[...]

    def leaky_relu(y_f32):
        # single VPU select (equivalent to LeakyReLU(0.2) since alpha < 1)
        return jnp.maximum(y_f32, 0.2 * y_f32)

    # Hidden layers: Linear -> Dropout(identity at eval) -> LeakyReLU(0.2)
    h = z_ref[...]                                                # bf16
    h = leaky_relu(dense(h, w0_ref, b0_ref)).astype(jnp.bfloat16)
    h = leaky_relu(dense(h, w1_ref, b1_ref)).astype(jnp.bfloat16)
    h = leaky_relu(dense(h, w2_ref, b2_ref)).astype(jnp.bfloat16)
    h = leaky_relu(dense(h, w3_ref, b3_ref)).astype(jnp.bfloat16)

    # Output layer: Linear -> Tanh (tanh lowers to the EUP slot, hidden under
    # the MXU), stored as bf16 (tanh-bounded, well within tolerance).
    out_ref[...] = jnp.tanh(dense(h, w4_ref, b4_ref)).astype(out_ref.dtype)


def prepare_params(params):
    """One-time conversion of f32 (W[in,out], b) pairs into the kernel layout:
    bf16 weights, f32 (1, out) biases. Call ONCE outside the jitted forward so
    the cast is not repaid on every call."""
    prepped = []
    for w, b in params:
        prepped.append((jnp.asarray(w, jnp.bfloat16),
                        jnp.asarray(b, jnp.float32).reshape(1, -1)))
    return prepped


@jax.jit
def generator_mlp_forward(z, prepped_params):
    """z: [B, z_dim] float32. prepped_params: output of prepare_params().
    Returns generated images [B, 1, 28, 28] float32."""
    B = z.shape[0]
    TB, B_pad, num_tiles = _choose_batch_tiling(B)

    zb = z.astype(jnp.bfloat16)
    if B_pad != B:
        zb = jnp.pad(zb, ((0, B_pad - B), (0, 0)))

    # ---- BlockSpecs: stream z/out tiles; weights resident (constant index) ----
    flat_args = [zb]
    in_specs = [pl.BlockSpec((TB, Z_DIM), lambda i: (i, 0))]
    for w, b in prepped_params:
        flat_args += [w, b]
        in_specs.append(pl.BlockSpec(w.shape, lambda i: (0, 0)))
        in_specs.append(pl.BlockSpec(b.shape, lambda i: (0, 0)))
    out_spec = pl.BlockSpec((TB, FLAT_OUT), lambda i: (i, 0))

    # ---- advisory cost estimate for XLA's scheduler ----
    dims = [Z_DIM] + HIDDEN_DIMS + [FLAT_OUT]
    macs = sum(dims[i] * dims[i + 1] for i in range(len(dims) - 1))
    weight_bytes = sum(int(w.size) * 2 + int(b.size) * 4 for w, b in prepped_params)
    cost = pl.CostEstimate(
        flops=2 * B_pad * macs,
        transcendentals=B_pad * FLAT_OUT,
        bytes_accessed=weight_bytes + B_pad * Z_DIM * 2 + B_pad * FLAT_OUT * 2,
    )

    out = pl.pallas_call(
        generator_mlp_kernel,
        out_shape=jax.ShapeDtypeStruct((B_pad, FLAT_OUT), jnp.bfloat16),
        grid=(num_tiles,),
        in_specs=in_specs,
        out_specs=out_spec,
        compiler_params=pltpu.CompilerParams(
            dimension_semantics=("parallel",),
            vmem_limit_bytes=48 << 20,   # ~20 MiB used; safe on v7x's 64 MiB
        ),
        cost_estimate=cost,
    )(*flat_args)

    if B_pad != B:
        out = out[:B]
    # Reshape is layout-free (no column slice needed); cast back to f32 to
    # match the PyTorch module's output dtype.
    return out.reshape((B, *OUTPUT_SHAPE)).astype(jnp.float32)


def init_params(key):
    """Deterministic init mimicking nn.Linear default (U(-1/sqrt(fan_in), 1/sqrt(fan_in))).
    Weights stored as [in, out]; biases as [1, out]; all f32."""
    layer_sizes = [Z_DIM] + HIDDEN_DIMS + [FLAT_OUT]
    params = []
    for i in range(len(layer_sizes) - 1):
        fan_in, fan_out = layer_sizes[i], layer_sizes[i + 1]
        key, kw, kb = jax.random.split(key, 3)
        bound = 1.0 / jnp.sqrt(jnp.float32(fan_in))
        w = jax.random.uniform(kw, (fan_in, fan_out), jnp.float32, -bound, bound)
        b = jax.random.uniform(kb, (1, fan_out), jnp.float32, -bound, bound)
        params.append((w, b))
    return params


def reference_forward(z, params):
    """Pure-JAX f32 reference for correctness checking (eval-mode dropout = identity)."""
    h = z
    for w, b in params[:-1]:
        h = jnp.dot(h, w) + b
        h = jnp.where(h > 0, h, 0.2 * h)
    w, b = params[-1]
    out = jnp.tanh(jnp.dot(h, w) + b)
    return out.reshape((z.shape[0], OUTPUT_SHAPE[0], OUTPUT_SHAPE[1], OUTPUT_SHAPE[2]))


if __name__ == "__main__":
    key = jax.random.PRNGKey(0)
    key, kz = jax.random.split(key)

    B = 2
    z = jax.random.normal(kz, (B, Z_DIM), dtype=jnp.float32)
    params = init_params(key)

    # One-time weight preparation, OUTSIDE the per-call path.
    prepped = prepare_params(params)
    prepped = jax.block_until_ready(prepped)

    x = generator_mlp_forward(z, prepped)
    x = jax.block_until_ready(x)

    assert x.shape == (B, 1, 28, 28), x.shape
    x_ref = reference_forward(z, params)
    # bf16 weights/activations/output (f32 MXU accumulation) vs. pure-f32
    # reference: tanh-bounded outputs, tolerance relaxed accordingly.
    assert jnp.allclose(x, x_ref, atol=3e-2, rtol=0.0), (
        "mismatch vs reference, max abs err = "
        f"{float(jnp.max(jnp.abs(x - x_ref)))}")

    print("KERNEL_OK")
</pallas_src>

<mosaic_0001>
module attributes {stable_mosaic.version = 11 : i64} {
  func.func @generator_mlp_kernel(%arg0: i32, %arg1: memref<8x32xbf16, #tpu.memory_space<vmem>>, %arg2: memref<32x128xbf16, #tpu.memory_space<vmem>>, %arg3: memref<1x128xf32, #tpu.memory_space<vmem>>, %arg4: memref<128x256xbf16, #tpu.memory_space<vmem>>, %arg5: memref<1x256xf32, #tpu.memory_space<vmem>>, %arg6: memref<256x512xbf16, #tpu.memory_space<vmem>>, %arg7: memref<1x512xf32, #tpu.memory_space<vmem>>, %arg8: memref<512x1024xbf16, #tpu.memory_space<vmem>>, %arg9: memref<1x1024xf32, #tpu.memory_space<vmem>>, %arg10: memref<1024x784xbf16, #tpu.memory_space<vmem>>, %arg11: memref<1x784xf32, #tpu.memory_space<vmem>>, %arg12: memref<8x784xbf16, #tpu.memory_space<vmem>>) attributes {dimension_semantics = [#tpu.dimension_semantics<parallel>], iteration_bounds = array<i64: 1>, scalar_prefetch = 0 : i64, scratch_operands = 0 : i64, tpu.core_type = #tpu.core_type<tc>, window_params = [{transform_indices = @transform_0, window_bounds = array<i64: 8, 32>}, {pipeline_mode = #tpu.pipeline_mode<synchronous>, transform_indices = @transform_1, window_bounds = array<i64: 32, 128>}, {pipeline_mode = #tpu.pipeline_mode<synchronous>, transform_indices = @transform_2, window_bounds = array<i64: 1, 128>}, {pipeline_mode = #tpu.pipeline_mode<synchronous>, transform_indices = @transform_3, window_bounds = array<i64: 128, 256>}, {pipeline_mode = #tpu.pipeline_mode<synchronous>, transform_indices = @transform_4, window_bounds = array<i64: 1, 256>}, {pipeline_mode = #tpu.pipeline_mode<synchronous>, transform_indices = @transform_5, window_bounds = array<i64: 256, 512>}, {pipeline_mode = #tpu.pipeline_mode<synchronous>, transform_indices = @transform_6, window_bounds = array<i64: 1, 512>}, {pipeline_mode = #tpu.pipeline_mode<synchronous>, transform_indices = @transform_7, window_bounds = array<i64: 512, 1024>}, {pipeline_mode = #tpu.pipeline_mode<synchronous>, transform_indices = @transform_8, window_bounds = array<i64: 1, 1024>}, {pipeline_mode = #tpu.pipeline_mode<synchronous>, transform_indices = @transform_9, window_bounds = array<i64: 1024, 784>}, {pipeline_mode = #tpu.pipeline_mode<synchronous>, transform_indices = @transform_10, window_bounds = array<i64: 1, 784>}, {transform_indices = @transform_11, window_bounds = array<i64: 8, 784>}]} {
    %c0 = arith.constant 0 : index
    %c0_0 = arith.constant 0 : index
    %0 = vector.load %arg1[%c0, %c0_0] : memref<8x32xbf16, #tpu.memory_space<vmem>>, vector<8x32xbf16>
    %c0_1 = arith.constant 0 : index
    %c0_2 = arith.constant 0 : index
    %1 = vector.load %arg2[%c0_1, %c0_2] : memref<32x128xbf16, #tpu.memory_space<vmem>>, vector<32x128xbf16>
    %cst = arith.constant dense<0.000000e+00> : vector<8x128xf32>
    %2 = tpu.matmul %0, %1, %cst {dimension_numbers = #tpu.dot_dimension_numbers<[1], [0], [0], [1], [0, 0, 1, 1], [], []>} : vector<8x32xbf16>, vector<32x128xbf16>, vector<8x128xf32> -> vector<8x128xf32>
    %c0_3 = arith.constant 0 : index
    %c0_4 = arith.constant 0 : index
    %3 = vector.load %arg3[%c0_3, %c0_4] : memref<1x128xf32, #tpu.memory_space<vmem>>, vector<1x128xf32>
    %4 = vector.broadcast %3 : vector<1x128xf32> to vector<8x128xf32>
    %5 = arith.addf %2, %4 : vector<8x128xf32>
    %cst_5 = arith.constant 2.000000e-01 : f32
    %6 = vector.broadcast %cst_5 : f32 to vector<8x128xf32>
    %7 = arith.mulf %6, %5 : vector<8x128xf32>
    %8 = arith.maximumf %5, %7 : vector<8x128xf32>
    %9 = arith.truncf %8 : vector<8x128xf32> to vector<8x128xbf16>
    %c0_6 = arith.constant 0 : index
    %c0_7 = arith.constant 0 : index
    %10 = vector.load %arg4[%c0_6, %c0_7] : memref<128x256xbf16, #tpu.memory_space<vmem>>, vector<128x256xbf16>
    %cst_8 = arith.constant dense<0.000000e+00> : vector<8x256xf32>
    %11 = tpu.matmul %9, %10, %cst_8 {dimension_numbers = #tpu.dot_dimension_numbers<[1], [0], [0], [1], [0, 0, 1, 1], [], []>} : vector<8x128xbf16>, vector<128x256xbf16>, vector<8x256xf32> -> vector<8x256xf32>
    %c0_9 = arith.constant 0 : index
    %c0_10 = arith.constant 0 : index
    %12 = vector.load %arg5[%c0_9, %c0_10] : memref<1x256xf32, #tpu.memory_space<vmem>>, vector<1x256xf32>
    %13 = vector.broadcast %12 : vector<1x256xf32> to vector<8x256xf32>
    %14 = arith.addf %11, %13 : vector<8x256xf32>
    %cst_11 = arith.constant 2.000000e-01 : f32
    %15 = vector.broadcast %cst_11 : f32 to vector<8x256xf32>
    %16 = arith.mulf %15, %14 : vector<8x256xf32>
    %17 = arith.maximumf %14, %16 : vector<8x256xf32>
    %18 = arith.truncf %17 : vector<8x256xf32> to vector<8x256xbf16>
    %c0_12 = arith.constant 0 : index
    %c0_13 = arith.constant 0 : index
    %19 = vector.load %arg6[%c0_12, %c0_13] : memref<256x512xbf16, #tpu.memory_space<vmem>>, vector<256x512xbf16>
    %cst_14 = arith.constant dense<0.000000e+00> : vector<8x512xf32>
    %20 = tpu.matmul %18, %19, %cst_14 {dimension_numbers = #tpu.dot_dimension_numbers<[1], [0], [0], [1], [0, 0, 1, 1], [], []>} : vector<8x256xbf16>, vector<256x512xbf16>, vector<8x512xf32> -> vector<8x512xf32>
    %c0_15 = arith.constant 0 : index
    %c0_16 = arith.constant 0 : index
    %21 = vector.load %arg7[%c0_15, %c0_16] : memref<1x512xf32, #tpu.memory_space<vmem>>, vector<1x512xf32>
    %22 = vector.broadcast %21 : vector<1x512xf32> to vector<8x512xf32>
    %23 = arith.addf %20, %22 : vector<8x512xf32>
    %cst_17 = arith.constant 2.000000e-01 : f32
    %24 = vector.broadcast %cst_17 : f32 to vector<8x512xf32>
    %25 = arith.mulf %24, %23 : vector<8x512xf32>
    %26 = arith.maximumf %23, %25 : vector<8x512xf32>
    %27 = arith.truncf %26 : vector<8x512xf32> to vector<8x512xbf16>
    %c0_18 = arith.constant 0 : index
    %c0_19 = arith.constant 0 : index
    %28 = vector.load %arg8[%c0_18, %c0_19] : memref<512x1024xbf16, #tpu.memory_space<vmem>>, vector<512x1024xbf16>
    %cst_20 = arith.constant dense<0.000000e+00> : vector<8x1024xf32>
    %29 = tpu.matmul %27, %28, %cst_20 {dimension_numbers = #tpu.dot_dimension_numbers<[1], [0], [0], [1], [0, 0, 1, 1], [], []>} : vector<8x512xbf16>, vector<512x1024xbf16>, vector<8x1024xf32> -> vector<8x1024xf32>
    %c0_21 = arith.constant 0 : index
    %c0_22 = arith.constant 0 : index
    %30 = vector.load %arg9[%c0_21, %c0_22] : memref<1x1024xf32, #tpu.memory_space<vmem>>, vector<1x1024xf32>
    %31 = vector.broadcast %30 : vector<1x1024xf32> to vector<8x1024xf32>
    %32 = arith.addf %29, %31 : vector<8x1024xf32>
    %cst_23 = arith.constant 2.000000e-01 : f32
    %33 = vector.broadcast %cst_23 : f32 to vector<8x1024xf32>
    %34 = arith.mulf %33, %32 : vector<8x1024xf32>
    %35 = arith.maximumf %32, %34 : vector<8x1024xf32>
    %36 = arith.truncf %35 : vector<8x1024xf32> to vector<8x1024xbf16>
    %c0_24 = arith.constant 0 : index
    %c0_25 = arith.constant 0 : index
    %37 = vector.load %arg10[%c0_24, %c0_25] : memref<1024x784xbf16, #tpu.memory_space<vmem>>, vector<1024x784xbf16>
    %cst_26 = arith.constant dense<0.000000e+00> : vector<8x784xf32>
    %38 = tpu.matmul %36, %37, %cst_26 {dimension_numbers = #tpu.dot_dimension_numbers<[1], [0], [0], [1], [0, 0, 1, 1], [], []>} : vector<8x1024xbf16>, vector<1024x784xbf16>, vector<8x784xf32> -> vector<8x784xf32>
    %c0_27 = arith.constant 0 : index
    %c0_28 = arith.constant 0 : index
    %39 = vector.load %arg11[%c0_27, %c0_28] : memref<1x784xf32, #tpu.memory_space<vmem>>, vector<1x784xf32>
    %40 = vector.broadcast %39 : vector<1x784xf32> to vector<8x784xf32>
    %41 = arith.addf %38, %40 : vector<8x784xf32>
    %42 = math.tanh %41 : vector<8x784xf32>
    %43 = arith.truncf %42 : vector<8x784xf32> to vector<8x784xbf16>
    %c0_29 = arith.constant 0 : index
    %c0_30 = arith.constant 0 : index
    %44 = vector.load %arg12[%c0_29, %c0_30] : memref<8x784xbf16, #tpu.memory_space<vmem>>, vector<8x784xbf16>
    tpu.vector_store %arg12[%c0_29, %c0_30], %43 {strides = array<i32>} : memref<8x784xbf16, #tpu.memory_space<vmem>>, vector<8x784xbf16>,
    return
  }
  func.func @transform_0(%arg0: i32) -> (i32, i32) {
    %c0_i32 = arith.constant 0 : i32
    %c0_i32_0 = arith.constant 0 : i32
    return %arg0, %c0_i32 : i32, i32
  }
  func.func @transform_1(%arg0: i32) -> (i32, i32) {
    %c0_i32 = arith.constant 0 : i32
    %c0_i32_0 = arith.constant 0 : i32
    %c0_i32_1 = arith.constant 0 : i32
    return %c0_i32, %c0_i32_0 : i32, i32
  }
  func.func @transform_2(%arg0: i32) -> (i32, i32) {
    %c0_i32 = arith.constant 0 : i32
    %c0_i32_0 = arith.constant 0 : i32
    %c0_i32_1 = arith.constant 0 : i32
    return %c0_i32, %c0_i32_0 : i32, i32
  }
  func.func @transform_3(%arg0: i32) -> (i32, i32) {
    %c0_i32 = arith.constant 0 : i32
    %c0_i32_0 = arith.constant 0 : i32
    %c0_i32_1 = arith.constant 0 : i32
    return %c0_i32, %c0_i32_0 : i32, i32
  }
  func.func @transform_4(%arg0: i32) -> (i32, i32) {
    %c0_i32 = arith.constant 0 : i32
    %c0_i32_0 = arith.constant 0 : i32
    %c0_i32_1 = arith.constant 0 : i32
    return %c0_i32, %c0_i32_0 : i32, i32
  }
  func.func @transform_5(%arg0: i32) -> (i32, i32) {
    %c0_i32 = arith.constant 0 : i32
    %c0_i32_0 = arith.constant 0 : i32
    %c0_i32_1 = arith.constant 0 : i32
    return %c0_i32, %c0_i32_0 : i32, i32
  }
  func.func @transform_6(%arg0: i32) -> (i32, i32) {
    %c0_i32 = arith.constant 0 : i32
    %c0_i32_0 = arith.constant 0 : i32
    %c0_i32_1 = arith.constant 0 : i32
    return %c0_i32, %c0_i32_0 : i32, i32
  }
  func.func @transform_7(%arg0: i32) -> (i32, i32) {
    %c0_i32 = arith.constant 0 : i32
    %c0_i32_0 = arith.constant 0 : i32
    %c0_i32_1 = arith.constant 0 : i32
    return %c0_i32, %c0_i32_0 : i32, i32
  }
  func.func @transform_8(%arg0: i32) -> (i32, i32) {
    %c0_i32 = arith.constant 0 : i32
    %c0_i32_0 = arith.constant 0 : i32
    %c0_i32_1 = arith.constant 0 : i32
    return %c0_i32, %c0_i32_0 : i32, i32
  }
  func.func @transform_9(%arg0: i32) -> (i32, i32) {
    %c0_i32 = arith.constant 0 : i32
    %c0_i32_0 = arith.constant 0 : i32
    %c0_i32_1 = arith.constant 0 : i32
    return %c0_i32, %c0_i32_0 : i32, i32
  }
  func.func @transform_10(%arg0: i32) -> (i32, i32) {
    %c0_i32 = arith.constant 0 : i32
    %c0_i32_0 = arith.constant 0 : i32
    %c0_i32_1 = arith.constant 0 : i32
    return %c0_i32, %c0_i32_0 : i32, i32
  }
  func.func @transform_11(%arg0: i32) -> (i32, i32) {
    %c0_i32 = arith.constant 0 : i32
    %c0_i32_0 = arith.constant 0 : i32
    return %arg0, %c0_i32 : i32, i32
  }
}

</mosaic_0001>

<bundles_post_ra>
// kernel: generator_mlp_forward.1
= control target key start
LH: loop header
LB: loop body
LE: loop exit
PB: predicated region body
PF: predicated region fallthrough
CT: control target
= control target key end

     0   :  { %v7985_v0 = vmov 0.0   ;;  %vm7986_vm0 = vmmov 0   ;;  %vm63_vm1 = vcmask 261120   ;;  %v7987_v20 = vmov 0   ;;  %s10609_s1 = inlined_call_operand.vmem [shape: bf16[32,128], index: 1, kind: input, shape index: {}]   ;;  %s10610_s3 = inlined_call_operand.vmem [shape: bf16[128,256], index: 3, kind: input, shape index: {}]   ;;  %s10611_s0 = inlined_call_operand.vmem [shape: bf16[8,32], index: 0, kind: input, shape index: {}]   ;;  %s10612_s5 = inlined_call_operand.vmem [shape: bf16[256,512], index: 5, kind: input, shape index: {}]   ;;  %s10613_s2 = inlined_call_operand.vmem [shape: f32[1,128], index: 2, kind: input, shape index: {}]   ;;  %s10614_s7 = inlined_call_operand.vmem [shape: bf16[512,1024], index: 7, kind: input, shape index: {}]   ;;  %s10615_s4 = inlined_call_operand.vmem [shape: f32[1,256], index: 4, kind: input, shape index: {}]   ;;  %s10616_s6 = inlined_call_operand.vmem [shape: f32[1,512], index: 6, kind: input, shape index: {}]   ;;  %s10617_s9 = inlined_call_operand.vmem [shape: bf16[1024,784], index: 9, kind: input, shape index: {}]   ;;  %s10618_s8 = inlined_call_operand.vmem [shape: f32[1,1024], index: 8, kind: input, shape index: {}]   ;;  %s10619_s10 = inlined_call_operand.vmem [shape: f32[1,784], index: 10, kind: input, shape index: {}]   ;;  %s10620_s11 = inlined_call_operand.vmem [shape: bf16[8,784], index: 11, kind: output, shape index: {}]  }
   0x1   :  { %7132 = vmatprep.subr.bf16.mxu0 %v7985_v0  ;;  %v7209_v1 = vld [vmem:[%s10609_s1] sm:$0xff]   ;;  %7136 = vmatprep.mubr.msk.bf16.mxu0 %vm7986_vm0, %v7985_v0  ;;  %v7210_v2 = vld [vmem:[%s10609_s1 + $0x8] sm:$0xff]   ;;  %v7214_v5 = vld [vmem:[%s10610_s3 + $0x14] ss:$8 sps:$4 sm:$0xff]   ;;  %vm6239_vm2 = vcmask 125952  }
   0x2   :  { %7133 = vmatpush3.bf16.msra.mxu0 %v7209_v1  ;;  %v7211_v3 = vld [vmem:[%s10610_s3 + $0x4] ss:$8 sps:$4 sm:$0xff]   ;;  %v7213_v4 = vld [vmem:[%s10610_s3] ss:$8 sps:$4 sm:$0xff]   ;;  %v7216_v7 = vld [vmem:[%s10610_s3 + $0x10] ss:$8 sps:$4 sm:$0xff]   ;;  %250 = vmatprep.mubr.bf16.mxu1 %v7987_v20 }
   0x3   :  { %7134 = vmatprep.subr.bf16.mxu0 %v7985_v0  ;;  %v39_v6 = vld [vmem:[%s10611_s0] sm:$0xf]  ;;  %218 = vmatprep.subr.bf16.mxu1 %v7211_v3  ;;  %v7217_v8 = vld [vmem:[%s10610_s3 + $0x24] ss:$8 sps:$4 sm:$0xff]   ;;  %v7220_v10 = vld [vmem:[%s10610_s3 + $0x34] ss:$8 sps:$4 sm:$0xff]  }
   0x4   :  { %219 = vmatpush1.bf16.msra.mxu1 %v7213_v4  ;;  %v7219_v9 = vld [vmem:[%s10610_s3 + $0x20] ss:$8 sps:$4 sm:$0xff]   ;;  %v7222_v11 = vld [vmem:[%s10610_s3 + $0x30] ss:$8 sps:$4 sm:$0xff]   ;;  %v7223_v12 = vld [vmem:[%s10610_s3 + $0x44] ss:$8 sps:$4 sm:$0xff]  }
   0x5   :  { %220 = vmatprep.subr.bf16.mxu1 %v7214_v5  ;;  %v7225_v13 = vld [vmem:[%s10610_s3 + $0x40] ss:$8 sps:$4 sm:$0xff]   ;;  %v7226_v14 = vld [vmem:[%s10610_s3 + $0x54] ss:$8 sps:$4 sm:$0xff]   ;;  %v7228_v15 = vld [vmem:[%s10610_s3 + $0x50] ss:$8 sps:$4 sm:$0xff]  }
   0x6   :  { %7135 = vmatpush3.bf16.msra.mxu0 %v7210_v2  ;;  %v7229_v16 = vld [vmem:[%s10610_s3 + $0x64] ss:$8 sps:$4 sm:$0xff]   ;;  %v7231_v17 = vld [vmem:[%s10610_s3 + $0x60] ss:$8 sps:$4 sm:$0xff]   ;;  %v7232_v18 = vld [vmem:[%s10610_s3 + $0x74] ss:$8 sps:$4 sm:$0xff]  }
   0x7   :  { %v7234_v19 = vld [vmem:[%s10610_s3 + $0x70] ss:$8 sps:$4 sm:$0xff]   ;;  %v7237_v21 = vld [vmem:[%s10612_s5 + $0x4] ss:$16 sps:$4 sm:$0xff]   ;;  %v6245_v22 = vld [vmem:[%s10613_s2] ss:$0 sm:$0xff] }
   0x8   :  { %221 = vmatpush1.bf16.msra.mxu1 %v7216_v7  ;;  %v7235_v30 = vld [vmem:[%s10612_s5] ss:$16 sps:$4 sm:$0xff]   ;;  %v7240_v32 = vld [vmem:[%s10612_s5 + $0x24] ss:$16 sps:$4 sm:$0xff]   ;;  %v7285_v62 = vld [vmem:[%s10612_s5 + $0xc] ss:$16 sps:$4 sm:$0xff]  }
   0x9   :  { %7137 = vmatmul.mubr.msk.bf16.vlgmr.msra.gmra.mrb[0].mxu0 %vm63_vm1, %v39_v6  ;;  %222 = vmatprep.subr.bf16.mxu1 %v7217_v8  ;;  %v7238_v33 = vld [vmem:[%s10612_s5 + $0x20] ss:$16 sps:$4 sm:$0xff]   ;;  %v7243_v34 = vld [vmem:[%s10612_s5 + $0x44] ss:$16 sps:$4 sm:$0xff]  }
   0xa   :  { %v7241_v35 = vld [vmem:[%s10612_s5 + $0x40] ss:$16 sps:$4 sm:$0xff]   ;;  %v7246_v36 = vld [vmem:[%s10612_s5 + $0x64] ss:$16 sps:$4 sm:$0xff]  }
   0xb   :  { %v7244_v37 = vld [vmem:[%s10612_s5 + $0x60] ss:$16 sps:$4 sm:$0xff]   ;;  %v7249_v38 = vld [vmem:[%s10612_s5 + $0x84] ss:$16 sps:$4 sm:$0xff]  }
   0xc   :  { %223 = vmatpush1.bf16.msra.mxu1 %v7219_v9  ;;  %v7247_v39 = vld [vmem:[%s10612_s5 + $0x80] ss:$16 sps:$4 sm:$0xff]   ;;  %v7252_v40 = vld [vmem:[%s10612_s5 + $0xa4] ss:$16 sps:$4 sm:$0xff]  }
   0xd   :  { %224 = vmatprep.subr.bf16.mxu1 %v7220_v10  ;;  %v7250_v41 = vld [vmem:[%s10612_s5 + $0xa0] ss:$16 sps:$4 sm:$0xff]   ;;  %v7255_v42 = vld [vmem:[%s10612_s5 + $0xc4] ss:$16 sps:$4 sm:$0xff]  }
   0xe   :  { %v7253_v43 = vld [vmem:[%s10612_s5 + $0xc0] ss:$16 sps:$4 sm:$0xff]   ;;  %v7258_v44 = vld [vmem:[%s10612_s5 + $0xe4] ss:$16 sps:$4 sm:$0xff]  }
   0xf   :  { %v7256_v45 = vld [vmem:[%s10612_s5 + $0xe0] ss:$16 sps:$4 sm:$0xff]   ;;  %v7261_v46 = vld [vmem:[%s10612_s5 + $0x104] ss:$16 sps:$4 sm:$0xff]  }
  0x10   :  { %225 = vmatpush1.bf16.msra.mxu1 %v7222_v11  ;;  %v7259_v47 = vld [vmem:[%s10612_s5 + $0x100] ss:$16 sps:$4 sm:$0xff]   ;;  %v7264_v48 = vld [vmem:[%s10612_s5 + $0x124] ss:$16 sps:$4 sm:$0xff]  }
  0x11   :  { %226 = vmatprep.subr.bf16.mxu1 %v7223_v12  ;;  %v7262_v49 = vld [vmem:[%s10612_s5 + $0x120] ss:$16 sps:$4 sm:$0xff]   ;;  %v7267_v50 = vld [vmem:[%s10612_s5 + $0x144] ss:$16 sps:$4 sm:$0xff]  }
  0x12   :  { %v7265_v51 = vld [vmem:[%s10612_s5 + $0x140] ss:$16 sps:$4 sm:$0xff]   ;;  %v7270_v52 = vld [vmem:[%s10612_s5 + $0x164] ss:$16 sps:$4 sm:$0xff]  }
  0x13   :  { %v7268_v53 = vld [vmem:[%s10612_s5 + $0x160] ss:$16 sps:$4 sm:$0xff]   ;;  %v7273_v54 = vld [vmem:[%s10612_s5 + $0x184] ss:$16 sps:$4 sm:$0xff]  }
  0x14   :  { %227 = vmatpush1.bf16.msra.mxu1 %v7225_v13  ;;  %v7271_v55 = vld [vmem:[%s10612_s5 + $0x180] ss:$16 sps:$4 sm:$0xff]   ;;  %v7276_v56 = vld [vmem:[%s10612_s5 + $0x1a4] ss:$16 sps:$4 sm:$0xff]  }
  0x15   :  { %228 = vmatprep.subr.bf16.mxu1 %v7226_v14  ;;  %v7274_v57 = vld [vmem:[%s10612_s5 + $0x1a0] ss:$16 sps:$4 sm:$0xff]   ;;  %v7279_v58 = vld [vmem:[%s10612_s5 + $0x1c4] ss:$16 sps:$4 sm:$0xff]  }
  0x16   :  { %v7277_v59 = vld [vmem:[%s10612_s5 + $0x1c0] ss:$16 sps:$4 sm:$0xff]   ;;  %v7282_v60 = vld [vmem:[%s10612_s5 + $0x1e4] ss:$16 sps:$4 sm:$0xff]  }
  0x17   :  { %v7280_v61 = vld [vmem:[%s10612_s5 + $0x1e0] ss:$16 sps:$4 sm:$0xff]  }
  0x18   :  { %229 = vmatpush1.bf16.msra.mxu1 %v7228_v15  ;;  %v765_v63 = vld [vmem:[%s10614_s7] sm:$0xff] }
  0x19   :  { %230 = vmatprep.subr.bf16.mxu1 %v7229_v16  ;;  %v769_v0 = vld [vmem:[%s10614_s7 + $0x20] sm:$0xff] }
  0x1a   :  { %v6329_v1 = vcombine.low %v765_v63, %v769_v0  ;;  %v6330_v2 = vcombine.high %v765_v63, %v769_v0  ;;  %v773_v3 = vld [vmem:[%s10614_s7 + $0x40] sm:$0xff] }
  0x1b   :  { %v777_v4 = vld [vmem:[%s10614_s7 + $0x60] sm:$0xff] }
  0x1c   :  { %231 = vmatpush1.bf16.msra.mxu1 %v7231_v17  ;;  %v6338_v5 = vcombine.high %v773_v3, %v777_v4  ;;  %2343 = vmatprep.subr.bf16.mxu0 %v6330_v2  ;;  %v6337_v6 = vcombine.low %v773_v3, %v777_v4  ;;  %v781_v7 = vld [vmem:[%s10614_s7 + $0x80] sm:$0xff] }
  0x1d   :  { %232 = vmatprep.subr.bf16.mxu1 %v7232_v18  ;;  %2344 = vmatpush1.bf16.msra.mxu0 %v6329_v1  ;;  %v785_v8 = vld [vmem:[%s10614_s7 + $0xa0] sm:$0xff] }
  0x1e   :  { %2345 = vmatprep.subr.bf16.mxu0 %v6338_v5  ;;  %v6346_v9 = vcombine.high %v781_v7, %v785_v8  ;;  %v6345_v10 = vcombine.low %v781_v7, %v785_v8  ;;  %v789_v11 = vld [vmem:[%s10614_s7 + $0xc0] sm:$0xff] }
  0x1f   :  { %v793_v12 = vld [vmem:[%s10614_s7 + $0xe0] sm:$0xff] }
  0x20   :  { %233 = vmatpush1.bf16.msra.mxu1 %v7234_v19  ;;  %v6354_v13 = vcombine.high %v789_v11, %v793_v12  ;;  %v6353_v14 = vcombine.low %v789_v11, %v793_v12  ;;  %v797_v15 = vld [vmem:[%s10614_s7 + $0x100] sm:$0xff]  ;;  %v7288_v11 = vld [vmem:[%s10612_s5 + $0x2c] ss:$16 sps:$4 sm:$0xff]   ;;  %v7286_v12 = vld [vmem:[%s10612_s5 + $0x28] ss:$16 sps:$4 sm:$0xff]  }
  0x21   :  { %671 = vmatprep.subr.bf16.mxu1 %v7237_v21  ;;  %2346 = vmatpush1.bf16.msra.mxu0 %v6337_v6  ;;  %v801_v16 = vld [vmem:[%s10614_s7 + $0x120] sm:$0xff] }
  0x22   :  { %2347 = vmatprep.subr.bf16.mxu0 %v6346_v9  ;;  %v6362_v17 = vcombine.high %v797_v15, %v801_v16  ;;  %v6361_v18 = vcombine.low %v797_v15, %v801_v16  ;;  %v805_v19 = vld [vmem:[%s10614_s7 + $0x140] sm:$0xff]  ;;  %v7283_v9 = vld [vmem:[%s10612_s5 + $0x8] ss:$16 sps:$4 sm:$0xff]   ;;  %v7294_v15 = vld [vmem:[%s10612_s5 + $0x6c] ss:$16 sps:$4 sm:$0xff]  }
  0x23   :  { %v809_v20 = vld [vmem:[%s10614_s7 + $0x160] sm:$0xff]  ;;  %v7292_v16 = vld [vmem:[%s10612_s5 + $0x68] ss:$16 sps:$4 sm:$0xff]  }
  0x24   :  { %v6370_v21 = vcombine.high %v805_v19, %v809_v20 }
  0x25   :  { %2348 = vmatpush1.bf16.msra.mxu0 %v6345_v10 }
  0x26   :  { %2349 = vmatprep.subr.bf16.mxu0 %v6354_v13  ;;  %v7291_v13 = vld [vmem:[%s10612_s5 + $0x4c] ss:$16 sps:$4 sm:$0xff]  }
  0x29   :  { %2350 = vmatpush1.bf16.msra.mxu0 %v6353_v14  ;;  %v7289_v14 = vld [vmem:[%s10612_s5 + $0x48] ss:$16 sps:$4 sm:$0xff]  }
  0x2a   :  { %2351 = vmatprep.subr.bf16.mxu0 %v6362_v17  ;;  %v7297_v17 = vld [vmem:[%s10612_s5 + $0x8c] ss:$16 sps:$4 sm:$0xff]  }
  0x2d   :  { %2352 = vmatpush1.bf16.msra.mxu0 %v6361_v18  ;;  %v7295_v18 = vld [vmem:[%s10612_s5 + $0x88] ss:$16 sps:$4 sm:$0xff]  }
  0x2e   :  { %2353 = vmatprep.subr.bf16.mxu0 %v6370_v21  ;;  %v7303_v21 = vld [vmem:[%s10612_s5 + $0xcc] ss:$16 sps:$4 sm:$0xff]  }
  0xdc   :  { %v101_v23 = vpop.f32.mrb[0].mxu0 }
  0xdd   :  { %v102_v24 = vadd.f32 %v6245_v22, %v101_v23  ;;  %v7138_v25 = vpop.f32.mrb[1].mxu0  ;;  %v6369_v22 = vcombine.low %v805_v19, %v809_v20  ;;  %v813_v23 = vld [vmem:[%s10614_s7 + $0x180] sm:$0xff]  ;;  %v7300_v19 = vld [vmem:[%s10612_s5 + $0xac] ss:$16 sps:$4 sm:$0xff]   ;;  %v7298_v20 = vld [vmem:[%s10612_s5 + $0xa8] ss:$16 sps:$4 sm:$0xff]  }
  0xde   :  { %v104_v26 = vpop.f32.mrb[2].mxu0 }
  0xdf   :  { %v107_v27 = vmul.f32 0.2, %v102_v24  ;;  %v7139_v28 = vpop.f32.mrb[3].mxu0  ;;  %2354 = vmatpush1.bf16.msra.mxu0 %v6369_v22  ;;  %v7301_v22 = vld [vmem:[%s10612_s5 + $0xc8] ss:$16 sps:$4 sm:$0xff]  }
  0xe0   :  { %v825_v28 = vld [vmem:[%s10614_s7 + $0x1e0] sm:$0xff] }
  0xe1   :  { %v108_v29 = vmax.f32 %v102_v24, %v107_v27  ;;  %v817_v24 = vld [vmem:[%s10614_s7 + $0x1a0] sm:$0xff] }
  0xe2   :  { %v6378_v25 = vcombine.high %v813_v23, %v817_v24  ;;  %v6377_v26 = vcombine.low %v813_v23, %v817_v24  ;;  %v821_v27 = vld [vmem:[%s10614_s7 + $0x1c0] sm:$0xff]  ;;  %v7306_v23 = vld [vmem:[%s10612_s5 + $0xec] ss:$16 sps:$4 sm:$0xff]   ;;  %v7304_v24 = vld [vmem:[%s10612_s5 + $0xe8] ss:$16 sps:$4 sm:$0xff]  }
  0xe3   :  { %v109_v31 = vpack.c.bf16 %v108_v29, %v108_v29  ;;  %v6386_v29 = vcombine.high %v821_v27, %v825_v28 }
  0xe4   :  { %2355 = vmatprep.subr.bf16.mxu0 %v6378_v25  ;;  %v7309_v25 = vld [vmem:[%s10612_s5 + $0x10c] ss:$16 sps:$4 sm:$0xff]  }
  0xe5   :  { %251 = vmatmul.mubr.bf16.vlgmr.msra.gmra.mrb[0].mxu1 %v109_v31  ;;  %2356 = vmatpush1.bf16.msra.mxu0 %v6377_v26  ;;  %v829_v31 = vld [vmem:[%s10614_s7 + $0x200] sm:$0xff]  ;;  %v7307_v26 = vld [vmem:[%s10612_s5 + $0x108] ss:$16 sps:$4 sm:$0xff]  }
  0xe6   :  { %672 = vmatpush1.bf16.msra.mxu1 %v7235_v30  ;;  %v6385_v30 = vcombine.low %v821_v27, %v825_v28  ;;  %2357 = vmatprep.subr.bf16.mxu0 %v6386_v29  ;;  %v7312_v27 = vld [vmem:[%s10612_s5 + $0x12c] ss:$16 sps:$4 sm:$0xff]   ;;  %v7310_v28 = vld [vmem:[%s10612_s5 + $0x128] ss:$16 sps:$4 sm:$0xff]  }
  0xe7   :  { %673 = vmatprep.subr.bf16.mxu1 %v7240_v32  ;;  %v833_v32 = vld [vmem:[%s10614_s7 + $0x220] sm:$0xff]  ;;  %v7315_v29 = vld [vmem:[%s10612_s5 + $0x14c] ss:$16 sps:$4 sm:$0xff]  }
  0xe9   :  { %2358 = vmatpush1.bf16.msra.mxu0 %v6385_v30  ;;  %v7313_v30 = vld [vmem:[%s10612_s5 + $0x148] ss:$16 sps:$4 sm:$0xff]  }
  0xea   :  { %674 = vmatpush1.bf16.msra.mxu1 %v7238_v33  ;;  %v6394_v33 = vcombine.high %v829_v31, %v833_v32 }
  0xeb   :  { %675 = vmatprep.subr.bf16.mxu1 %v7243_v34  ;;  %v6393_v34 = vcombine.low %v829_v31, %v833_v32  ;;  %v7318_v31 = vld [vmem:[%s10612_s5 + $0x16c] ss:$16 sps:$4 sm:$0xff]   ;;  %v7316_v32 = vld [vmem:[%s10612_s5 + $0x168] ss:$16 sps:$4 sm:$0xff]  }
  0xec   :  { %2359 = vmatprep.subr.bf16.mxu0 %v6394_v33  ;;  %v7321_v33 = vld [vmem:[%s10612_s5 + $0x18c] ss:$16 sps:$4 sm:$0xff]  }
  0xed   :  { %2360 = vmatpush1.bf16.msra.mxu0 %v6393_v34  ;;  %v7319_v34 = vld [vmem:[%s10612_s5 + $0x188] ss:$16 sps:$4 sm:$0xff]  }
  0xee   :  { %676 = vmatpush1.bf16.msra.mxu1 %v7241_v35  ;;  %v837_v35 = vld [vmem:[%s10614_s7 + $0x240] sm:$0xff] }
  0xef   :  { %677 = vmatprep.subr.bf16.mxu1 %v7246_v36  ;;  %v841_v36 = vld [vmem:[%s10614_s7 + $0x260] sm:$0xff] }
  0xf2   :  { %678 = vmatpush1.bf16.msra.mxu1 %v7244_v37  ;;  %v6402_v37 = vcombine.high %v837_v35, %v841_v36 }
  0xf3   :  { %679 = vmatprep.subr.bf16.mxu1 %v7249_v38  ;;  %v6401_v38 = vcombine.low %v837_v35, %v841_v36  ;;  %v7324_v35 = vld [vmem:[%s10612_s5 + $0x1ac] ss:$16 sps:$4 sm:$0xff]   ;;  %v7322_v36 = vld [vmem:[%s10612_s5 + $0x1a8] ss:$16 sps:$4 sm:$0xff]  }
  0xf4   :  { %2361 = vmatprep.subr.bf16.mxu0 %v6402_v37  ;;  %v7327_v37 = vld [vmem:[%s10612_s5 + $0x1cc] ss:$16 sps:$4 sm:$0xff]  }
  0xf5   :  { %2362 = vmatpush1.bf16.msra.mxu0 %v6401_v38  ;;  %v7325_v38 = vld [vmem:[%s10612_s5 + $0x1c8] ss:$16 sps:$4 sm:$0xff]  }
  0xf6   :  { %680 = vmatpush1.bf16.msra.mxu1 %v7247_v39  ;;  %v845_v39 = vld [vmem:[%s10614_s7 + $0x280] sm:$0xff] }
  0xf7   :  { %681 = vmatprep.subr.bf16.mxu1 %v7252_v40  ;;  %v849_v40 = vld [vmem:[%s10614_s7 + $0x2a0] sm:$0xff] }
  0xfa   :  { %682 = vmatpush1.bf16.msra.mxu1 %v7250_v41  ;;  %v128_v41 = vlaneseq }
  0xfb   :  { %683 = vmatprep.subr.bf16.mxu1 %v7255_v42  ;;  %v6410_v42 = vcombine.high %v845_v39, %v849_v40 }
  0xfd   :  { %2363 = vmatprep.subr.bf16.mxu0 %v6410_v42  ;;  %v7328_v42 = vld [vmem:[%s10612_s5 + $0x1e8] ss:$16 sps:$4 sm:$0xff]  }
  0xfe   :  { %684 = vmatpush1.bf16.msra.mxu1 %v7253_v43  ;;  %v6409_v43 = vcombine.low %v845_v39, %v849_v40  ;;  %v7330_v39 = vld [vmem:[%s10612_s5 + $0x1ec] ss:$16 sps:$4 sm:$0xff]  }
  0xff   :  { %685 = vmatprep.subr.bf16.mxu1 %v7258_v44  ;;  %v853_v44 = vld [vmem:[%s10614_s7 + $0x2c0] sm:$0xff]  ;;  %v766_v40 = vld [vmem:[%s10614_s7 + $0x8] sm:$0xff] }
 0x100   :  { %2364 = vmatpush1.bf16.msra.mxu0 %v6409_v43 }
 0x102   :  { %686 = vmatpush1.bf16.msra.mxu1 %v7256_v45  ;;  %v857_v45 = vld [vmem:[%s10614_s7 + $0x2e0] sm:$0xff] }
 0x103   :  { %687 = vmatprep.subr.bf16.mxu1 %v7261_v46  ;;  %v8279_v46 = vshrl.u32 %v128_v41, 7  ;;  %v770_v41 = vld [vmem:[%s10614_s7 + $0x28] sm:$0xff] }
 0x104   :  { %v6332_v43 = vcombine.high %v766_v40, %v770_v41 }
 0x106   :  { %688 = vmatpush1.bf16.msra.mxu1 %v7259_v47  ;;  %v6418_v47 = vcombine.high %v853_v44, %v857_v45 }
 0x107   :  { %689 = vmatprep.subr.bf16.mxu1 %v7264_v48  ;;  %v6417_v48 = vcombine.low %v853_v44, %v857_v45  ;;  %v774_v44 = vld [vmem:[%s10614_s7 + $0x48] sm:$0xff] }
 0x108   :  { %2365 = vmatprep.subr.bf16.mxu0 %v6418_v47  ;;  %v778_v45 = vld [vmem:[%s10614_s7 + $0x68] sm:$0xff]  ;;  %v6331_v47 = vcombine.low %v766_v40, %v770_v41 }
 0x109   :  { %2366 = vmatpush1.bf16.msra.mxu0 %v6417_v48  ;;  %v6340_v48 = vcombine.high %v774_v44, %v778_v45 }
 0x10a   :  { %690 = vmatpush1.bf16.msra.mxu1 %v7262_v49  ;;  %v861_v49 = vld [vmem:[%s10614_s7 + $0x300] sm:$0xff] }
 0x10b   :  { %691 = vmatprep.subr.bf16.mxu1 %v7267_v50  ;;  %v865_v50 = vld [vmem:[%s10614_s7 + $0x320] sm:$0xff] }
 0x10e   :  { %692 = vmatpush1.bf16.msra.mxu1 %v7265_v51  ;;  %v8288_v51 = vsub.s32 0, %v8279_v46 }
 0x10f   :  { %693 = vmatprep.subr.bf16.mxu1 %v7270_v52  ;;  %v6426_v52 = vcombine.high %v861_v49, %v865_v50 }
 0x111   :  { %2367 = vmatprep.subr.bf16.mxu0 %v6426_v52  ;;  %v6339_v52 = vcombine.low %v774_v44, %v778_v45 }
 0x112   :  { %694 = vmatpush1.bf16.msra.mxu1 %v7268_v53  ;;  %v126_v53 = vld [vmem:[%s10615_s4] sm:$0x3] }
 0x113   :  { %695 = vmatprep.subr.bf16.mxu1 %v7273_v54  ;;  %v8294_v54 = vsub.s32 1, %v8279_v46 }
 0x116   :  { %696 = vmatpush1.bf16.msra.mxu1 %v7271_v55  ;;  %v6425_v55 = vcombine.low %v861_v49, %v865_v50  ;;  %v782_v49 = vld [vmem:[%s10614_s7 + $0x88] sm:$0xff] }
 0x117   :  { %697 = vmatprep.subr.bf16.mxu1 %v7276_v56  ;;  %v869_v56 = vld [vmem:[%s10614_s7 + $0x340] sm:$0xff]  ;;  %v786_v50 = vld [vmem:[%s10614_s7 + $0xa8] sm:$0xff] }
 0x118   :  { %2368 = vmatpush1.bf16.msra.mxu0 %v6425_v55  ;;  %v790_v55 = vld [vmem:[%s10614_s7 + $0xc8] sm:$0xff] }
 0x11a   :  { %698 = vmatpush1.bf16.msra.mxu1 %v7274_v57  ;;  %v873_v57 = vld [vmem:[%s10614_s7 + $0x360] sm:$0xff] }
 0x11b   :  { %699 = vmatprep.subr.bf16.mxu1 %v7279_v58  ;;  %v131_v58 = vrot.slane %v126_v53, %v8288_v51 }
 0x11e   :  { %700 = vmatpush1.bf16.msra.mxu1 %v7277_v59  ;;  %v6434_v59 = vcombine.high %v869_v56, %v873_v57 }
 0x11f   :  { %701 = vmatprep.subr.bf16.mxu1 %v7282_v60  ;;  %v135_v60 = vrot.slane %v126_v53, %v8294_v54  ;;  %v6348_v53 = vcombine.high %v782_v49, %v786_v50 }
 0x120   :  { %2369 = vmatprep.subr.bf16.mxu0 %v6434_v59  ;;  %v798_v59 = vld [vmem:[%s10614_s7 + $0x108] sm:$0xff] }
 0x122   :  { %702 = vmatpush1.bf16.msra.mxu1 %v7280_v61 }
 0x123   :  { %712 = vmatprep.subr.bf16.mxu1 %v7285_v62  ;;  %v6433_v62 = vcombine.low %v869_v56, %v873_v57  ;;  %v794_v56 = vld [vmem:[%s10614_s7 + $0xe8] sm:$0xff]  ;;  %v6347_v57 = vcombine.low %v782_v49, %v786_v50 }
 0x125   :  { %2370 = vmatpush1.bf16.msra.mxu0 %v6433_v62 }
 0x1b8   :  { %v252_v61 = vpop.f32.mrb[0].mxu1 }
 0x1b9   :  { %v253_v63 = vadd.f32 %v252_v61, %v131_v58  ;;  %v254_v0 = vpop.f32.mrb[1].mxu1  ;;  %v6356_v58 = vcombine.high %v790_v55, %v794_v56  ;;  %v6355_v61 = vcombine.low %v790_v55, %v794_v56 }
 0x1ba   :  { %v255_v1 = vadd.f32 %v254_v0, %v135_v60  ;;  %v256_v2 = vpop.f32.mrb[2].mxu1  ;;  %v802_v60 = vld [vmem:[%s10614_s7 + $0x128] sm:$0xff] }
 0x1bb   :  { %v259_v3 = vmul.f32 0.2, %v253_v63  ;;  %v257_v4 = vpop.f32.mrb[3].mxu1  ;;  %v6364_v62 = vcombine.high %v798_v59, %v802_v60  ;;  %v810_v0 = vld [vmem:[%s10614_s7 + $0x168] sm:$0xff] }
 0x1bc   :  { %v260_v5 = vmul.f32 0.2, %v255_v1  ;;  %v818_v4 = vld [vmem:[%s10614_s7 + $0x1a8] sm:$0xff] }
 0x1bd   :  { %v261_v6 = vmax.f32 %v253_v63, %v259_v3  ;;  %v806_v63 = vld [vmem:[%s10614_s7 + $0x148] sm:$0xff] }
 0x1be   :  { %v262_v7 = vmax.f32 %v255_v1, %v260_v5  ;;  %v6363_v1 = vcombine.low %v798_v59, %v802_v60  ;;  %v6372_v2 = vcombine.high %v806_v63, %v810_v0  ;;  %v814_v3 = vld [vmem:[%s10614_s7 + $0x188] sm:$0xff]  ;;  %v6371_v5 = vcombine.low %v806_v63, %v810_v0  ;;  %v8540_v63 = vld [vmem:[%s10616_s6] sm:$0xf] }
 0x1bf   :  { %v8307_v10 = vpack.c.bf16 %v261_v6, %v261_v6  ;;  %v6380_v6 = vcombine.high %v814_v3, %v818_v4  ;;  %v334_v0 = vrot.slane %v8540_v63, %v8288_v51 }
 0x1c0   :  { %v264_v8 = vpack.c.bf16 %v262_v7, %v262_v7  ;;  %v822_v7 = vld [vmem:[%s10614_s7 + $0x1c8] sm:$0xff] }
 0x1c2   :  { %703 = vmatprep.mubr.bf16.mxu1 %v264_v8 }
 0x1c3   :  { %704 = vmatmul.mubr.bf16.vlgmr.msra.gmra.mrb[4].mxu1 %v8307_v10 }
 0x1c4   :  { %713 = vmatpush1.bf16.msra.mxu1 %v7283_v9  ;;  %744 = vmatprep.mubr.bf16.mxu1 %v264_v8  ;;  %v826_v8 = vld [vmem:[%s10614_s7 + $0x1e8] sm:$0xff]  ;;  %v877_v9 = vld [vmem:[%s10614_s7 + $0x380] sm:$0xff] }
 0x1c5   :  { %714 = vmatprep.subr.bf16.mxu1 %v7288_v11 }
 0x1c8   :  { %715 = vmatpush1.bf16.msra.mxu1 %v7286_v12  ;;  %v6379_v12 = vcombine.low %v814_v3, %v818_v4 }
 0x1c9   :  { %716 = vmatprep.subr.bf16.mxu1 %v7291_v13 }
 0x1cc   :  { %717 = vmatpush1.bf16.msra.mxu1 %v7289_v14  ;;  %v6388_v14 = vcombine.high %v822_v7, %v826_v8 }
 0x1cd   :  { %718 = vmatprep.subr.bf16.mxu1 %v7294_v15  ;;  %v830_v15 = vld [vmem:[%s10614_s7 + $0x208] sm:$0xff] }
 0x1d0   :  { %719 = vmatpush1.bf16.msra.mxu1 %v7292_v16  ;;  %v834_v16 = vld [vmem:[%s10614_s7 + $0x228] sm:$0xff] }
 0x1d1   :  { %720 = vmatprep.subr.bf16.mxu1 %v7297_v17  ;;  %v885_v17 = vld [vmem:[%s10614_s7 + $0x3c0] sm:$0xff] }
 0x1d4   :  { %721 = vmatpush1.bf16.msra.mxu1 %v7295_v18  ;;  %v889_v18 = vld [vmem:[%s10614_s7 + $0x3e0] sm:$0xff] }
 0x1d5   :  { %722 = vmatprep.subr.bf16.mxu1 %v7300_v19  ;;  %v6450_v19 = vcombine.high %v885_v17, %v889_v18 }
 0x1d8   :  { %723 = vmatpush1.bf16.msra.mxu1 %v7298_v20  ;;  %v6387_v20 = vcombine.low %v822_v7, %v826_v8 }
 0x1d9   :  { %724 = vmatprep.subr.bf16.mxu1 %v7303_v21  ;;  %v6449_v21 = vcombine.low %v885_v17, %v889_v18 }
 0x1dc   :  { %725 = vmatpush1.bf16.msra.mxu1 %v7301_v22  ;;  %v6396_v22 = vcombine.high %v830_v15, %v834_v16 }
 0x1dd   :  { %726 = vmatprep.subr.bf16.mxu1 %v7306_v23  ;;  %v838_v23 = vld [vmem:[%s10614_s7 + $0x248] sm:$0xff] }
 0x1e0   :  { %727 = vmatpush1.bf16.msra.mxu1 %v7304_v24  ;;  %v842_v24 = vld [vmem:[%s10614_s7 + $0x268] sm:$0xff] }
 0x1e1   :  { %728 = vmatprep.subr.bf16.mxu1 %v7309_v25  ;;  %v8476_v25 = vld [vmem:[%s10614_s7 + $0x400] sm:$0xff] }
 0x1e4   :  { %729 = vmatpush1.bf16.msra.mxu1 %v7307_v26  ;;  %v8481_v26 = vld [vmem:[%s10614_s7 + $0x420] sm:$0xff] }
 0x1e5   :  { %730 = vmatprep.subr.bf16.mxu1 %v7312_v27  ;;  %v8486_v27 = vld [vmem:[%s10614_s7 + $0x408] sm:$0xff] }
 0x1e8   :  { %731 = vmatpush1.bf16.msra.mxu1 %v7310_v28  ;;  %v6458_v28 = vcombine.high %v8476_v25, %v8481_v26 }
 0x1e9   :  { %732 = vmatprep.subr.bf16.mxu1 %v7315_v29  ;;  %v8493_v29 = vld [vmem:[%s10614_s7 + $0x428] sm:$0xff] }
 0x1ec   :  { %733 = vmatpush1.bf16.msra.mxu1 %v7313_v30  ;;  %v6395_v30 = vcombine.low %v830_v15, %v834_v16  ;;  %v906_v15 = vld [vmem:[%s10614_s7 + $0x468] sm:$0xff] }
 0x1ed   :  { %734 = vmatprep.subr.bf16.mxu1 %v7318_v31  ;;  %v6457_v31 = vcombine.low %v8476_v25, %v8481_v26  ;;  %v918_v25 = vld [vmem:[%s10614_s7 + $0x4c8] sm:$0xff] }
 0x1ee   :  { %v922_v26 = vld [vmem:[%s10614_s7 + $0x4e8] sm:$0xff] }
 0x1f0   :  { %735 = vmatpush1.bf16.msra.mxu1 %v7316_v32  ;;  %v6459_v32 = vcombine.low %v8486_v27, %v8493_v29 }
 0x1f1   :  { %736 = vmatprep.subr.bf16.mxu1 %v7321_v33  ;;  %v6404_v33 = vcombine.high %v838_v23, %v842_v24 }
 0x1f4   :  { %737 = vmatpush1.bf16.msra.mxu1 %v7319_v34  ;;  %v846_v34 = vld [vmem:[%s10614_s7 + $0x288] sm:$0xff] }
 0x1f5   :  { %738 = vmatprep.subr.bf16.mxu1 %v7324_v35  ;;  %v850_v35 = vld [vmem:[%s10614_s7 + $0x2a8] sm:$0xff] }
 0x1f6   :  { %v6411_v40 = vcombine.low %v846_v34, %v850_v35 }
 0x1f8   :  { %739 = vmatpush1.bf16.msra.mxu1 %v7322_v36  ;;  %v6403_v36 = vcombine.low %v838_v23, %v842_v24  ;;  %v914_v23 = vld [vmem:[%s10614_s7 + $0x4a8] sm:$0xff] }
 0x1f9   :  { %740 = vmatprep.subr.bf16.mxu1 %v7327_v37  ;;  %v6412_v37 = vcombine.high %v846_v34, %v850_v35  ;;  %v917_v34 = vld [vmem:[%s10614_s7 + $0x4c0] sm:$0xff] }
 0x1fa   :  { %v921_v35 = vld [vmem:[%s10614_s7 + $0x4e0] sm:$0xff] }
 0x1fc   :  { %741 = vmatpush1.bf16.msra.mxu1 %v7325_v38  ;;  %v854_v38 = vld [vmem:[%s10614_s7 + $0x2c8] sm:$0xff] }
 0x1fd   :  { %742 = vmatprep.subr.bf16.mxu1 %v7330_v39  ;;  %v858_v39 = vld [vmem:[%s10614_s7 + $0x2e8] sm:$0xff] }
 0x1fe   :  { %v6420_v41 = vcombine.high %v854_v38, %v858_v39  ;;  %v6419_v44 = vcombine.low %v854_v38, %v858_v39  ;;  %v926_v38 = vld [vmem:[%s10614_s7 + $0x508] sm:$0xff] }
 0x1ff   :  { %v930_v39 = vld [vmem:[%s10614_s7 + $0x528] sm:$0xff] }
 0x200   :  { %743 = vmatpush1.bf16.msra.mxu1 %v7328_v42  ;;  %v862_v42 = vld [vmem:[%s10614_s7 + $0x308] sm:$0xff] }
 0x201   :  { %2425 = vmatprep.subr.bf16.mxu1 %v6332_v43  ;;  %v866_v43 = vld [vmem:[%s10614_s7 + $0x328] sm:$0xff] }
 0x202   :  { %v6428_v45 = vcombine.high %v862_v42, %v866_v43  ;;  %v6427_v49 = vcombine.low %v862_v42, %v866_v43  ;;  %v6492_v43 = vcombine.high %v926_v38, %v930_v39 }
 0x203   :  { %745 = vmatmul.mubr.bf16.vlgmr.msra.gmra.mrb[8].mxu1 %v8307_v10  ;;  %v881_v10 = vld [vmem:[%s10614_s7 + $0x3a0] sm:$0xff] }
 0x204   :  { %2426 = vmatpush1.bf16.msra.mxu1 %v6331_v47  ;;  %v6442_v11 = vcombine.high %v877_v9, %v881_v10  ;;  %v6441_v13 = vcombine.low %v877_v9, %v881_v10  ;;  %v870_v47 = vld [vmem:[%s10614_s7 + $0x348] sm:$0xff] }
 0x205   :  { %2427 = vmatprep.subr.bf16.mxu1 %v6340_v48  ;;  %v874_v48 = vld [vmem:[%s10614_s7 + $0x368] sm:$0xff] }
 0x206   :  { %2371 = vmatprep.subr.bf16.mxu0 %v6442_v11  ;;  %v6436_v50 = vcombine.high %v870_v47, %v874_v48  ;;  %v6435_v55 = vcombine.low %v870_v47, %v874_v48  ;;  %v901_v11 = vld [vmem:[%s10614_s7 + $0x440] sm:$0xff]  ;;  %v934_v47 = vld [vmem:[%s10614_s7 + $0x548] sm:$0xff] }
 0x207   :  { %2372 = vmatpush1.bf16.msra.mxu0 %v6441_v13  ;;  %v905_v13 = vld [vmem:[%s10614_s7 + $0x460] sm:$0xff]  ;;  %v938_v48 = vld [vmem:[%s10614_s7 + $0x568] sm:$0xff] }
 0x208   :  { %2428 = vmatpush1.bf16.msra.mxu1 %v6339_v52  ;;  %2373 = vmatprep.subr.bf16.mxu0 %v6450_v19  ;;  %v878_v52 = vld [vmem:[%s10614_s7 + $0x388] sm:$0xff]  ;;  %v6466_v18 = vcombine.high %v901_v11, %v905_v13  ;;  %v6465_v24 = vcombine.low %v901_v11, %v905_v13 }
 0x209   :  { %2429 = vmatprep.subr.bf16.mxu1 %v6348_v53  ;;  %v882_v53 = vld [vmem:[%s10614_s7 + $0x3a8] sm:$0xff] }
 0x20a   :  { %v6444_v56 = vcombine.high %v878_v52, %v882_v53  ;;  %v6443_v59 = vcombine.low %v878_v52, %v882_v53  ;;  %v6500_v53 = vcombine.high %v934_v47, %v938_v48  ;;  %v962_v11 = vld [vmem:[%s10614_s7 + $0x628] sm:$0xff] }
 0x20b   :  { %2374 = vmatpush1.bf16.msra.mxu0 %v6449_v21  ;;  %v913_v21 = vld [vmem:[%s10614_s7 + $0x4a0] sm:$0xff] }
 0x20c   :  { %2430 = vmatpush1.bf16.msra.mxu1 %v6347_v57  ;;  %2384 = vmatprep.subr.bf16.mxu0 %v6458_v28  ;;  %v886_v57 = vld [vmem:[%s10614_s7 + $0x3c8] sm:$0xff] }
 0x20d   :  { %2431 = vmatprep.subr.bf16.mxu1 %v6356_v58  ;;  %v890_v58 = vld [vmem:[%s10614_s7 + $0x3e8] sm:$0xff] }
 0x20e   :  { %v6452_v60 = vcombine.high %v886_v57, %v890_v58 }
 0x210   :  { %2432 = vmatpush1.bf16.msra.mxu1 %v6355_v61  ;;  %v6451_v61 = vcombine.low %v886_v57, %v890_v58  ;;  %v942_v57 = vld [vmem:[%s10614_s7 + $0x588] sm:$0xff] }
 0x211   :  { %2433 = vmatprep.subr.bf16.mxu1 %v6364_v62  ;;  %v6460_v62 = vcombine.high %v8486_v27, %v8493_v29  ;;  %v946_v58 = vld [vmem:[%s10614_s7 + $0x5a8] sm:$0xff] }
 0x214   :  { %2434 = vmatpush1.bf16.msra.mxu1 %v6363_v1  ;;  %v338_v1 = vrot.slane %v8540_v63, %v8294_v54 }
 0x215   :  { %2435 = vmatprep.subr.bf16.mxu1 %v6372_v2 }
 0x218   :  { %2436 = vmatpush1.bf16.msra.mxu1 %v6371_v5 }
 0x219   :  { %2437 = vmatprep.subr.bf16.mxu1 %v6380_v6 }
 0x21c   :  { %2438 = vmatpush1.bf16.msra.mxu1 %v6379_v12 }
 0x21d   :  { %2439 = vmatprep.subr.bf16.mxu1 %v6388_v14  ;;  %v902_v14 = vld [vmem:[%s10614_s7 + $0x448] sm:$0xff] }
 0x21e   :  { %v6468_v19 = vcombine.high %v902_v14, %v906_v15  ;;  %v6467_v28 = vcombine.low %v902_v14, %v906_v15 }
 0x220   :  { %2440 = vmatpush1.bf16.msra.mxu1 %v6387_v20  ;;  %v909_v20 = vld [vmem:[%s10614_s7 + $0x480] sm:$0xff] }
 0x221   :  { %2441 = vmatprep.subr.bf16.mxu1 %v6396_v22  ;;  %v910_v22 = vld [vmem:[%s10614_s7 + $0x488] sm:$0xff]  ;;  %v6473_v27 = vcombine.low %v909_v20, %v913_v21 }
 0x222   :  { %v6475_v29 = vcombine.low %v910_v22, %v914_v23 }
 0x224   :  { %2442 = vmatpush1.bf16.msra.mxu1 %v6395_v30  ;;  %v6474_v30 = vcombine.high %v909_v20, %v913_v21  ;;  %v966_v20 = vld [vmem:[%s10614_s7 + $0x648] sm:$0xff] }
 0x225   :  { %2443 = vmatprep.subr.bf16.mxu1 %v6404_v33  ;;  %v6476_v33 = vcombine.high %v910_v22, %v914_v23  ;;  %v970_v21 = vld [vmem:[%s10614_s7 + $0x668] sm:$0xff] }
 0x228   :  { %2444 = vmatpush1.bf16.msra.mxu1 %v6403_v36  ;;  %v925_v36 = vld [vmem:[%s10614_s7 + $0x500] sm:$0xff] }
 0x229   :  { %2445 = vmatprep.subr.bf16.mxu1 %v6412_v37  ;;  %v929_v37 = vld [vmem:[%s10614_s7 + $0x520] sm:$0xff] }
 0x22a   :  { %v6490_v42 = vcombine.high %v925_v36, %v929_v37 }
 0x22c   :  { %2446 = vmatpush1.bf16.msra.mxu1 %v6411_v40  ;;  %v6481_v40 = vcombine.low %v917_v34, %v921_v35 }
 0x22d   :  { %2447 = vmatprep.subr.bf16.mxu1 %v6420_v41  ;;  %v6483_v41 = vcombine.low %v918_v25, %v922_v26 }
 0x230   :  { %2448 = vmatpush1.bf16.msra.mxu1 %v6419_v44  ;;  %v933_v44 = vld [vmem:[%s10614_s7 + $0x540] sm:$0xff] }
 0x231   :  { %2449 = vmatprep.subr.bf16.mxu1 %v6428_v45  ;;  %v937_v45 = vld [vmem:[%s10614_s7 + $0x560] sm:$0xff] }
 0x232   :  { %v6498_v52 = vcombine.high %v933_v44, %v937_v45 }
 0x234   :  { %2450 = vmatpush1.bf16.msra.mxu1 %v6427_v49  ;;  %v6489_v49 = vcombine.low %v925_v36, %v929_v37  ;;  %v982_v36 = vld [vmem:[%s10614_s7 + $0x6c8] sm:$0xff] }
 0x235   :  { %2451 = vmatprep.subr.bf16.mxu1 %v6436_v50  ;;  %v6491_v50 = vcombine.low %v926_v38, %v930_v39  ;;  %v986_v37 = vld [vmem:[%s10614_s7 + $0x6e8] sm:$0xff] }
 0x238   :  { %2452 = vmatpush1.bf16.msra.mxu1 %v6435_v55  ;;  %v941_v55 = vld [vmem:[%s10614_s7 + $0x580] sm:$0xff] }
 0x239   :  { %2453 = vmatprep.subr.bf16.mxu1 %v6444_v56  ;;  %v945_v56 = vld [vmem:[%s10614_s7 + $0x5a0] sm:$0xff] }
 0x23c   :  { %2454 = vmatpush1.bf16.msra.mxu1 %v6443_v59  ;;  %v6497_v59 = vcombine.low %v933_v44, %v937_v45  ;;  %v990_v44 = vld [vmem:[%s10614_s7 + $0x708] sm:$0xff] }
 0x23d   :  { %2455 = vmatprep.subr.bf16.mxu1 %v6452_v60  ;;  %v6499_v60 = vcombine.low %v934_v47, %v938_v48  ;;  %v994_v45 = vld [vmem:[%s10614_s7 + $0x728] sm:$0xff]  ;;  %v6547_v48 = vcombine.low %v982_v36, %v986_v37 }
 0x240   :  { %2456 = vmatpush1.bf16.msra.mxu1 %v6451_v61  ;;  %v6506_v61 = vcombine.high %v941_v55, %v945_v56 }
 0x241   :  { %2466 = vmatprep.subr.bf16.mxu1 %v6460_v62  ;;  %v6508_v62 = vcombine.high %v942_v57, %v946_v58 }
 0x296   :  { %v705_v2 = vpop.f32.mrb[4].mxu1 }
 0x297   :  { %v706_v3 = vadd.f32 %v705_v2, %v334_v0  ;;  %v707_v4 = vpop.f32.mrb[5].mxu1  ;;  %v949_v0 = vld [vmem:[%s10614_s7 + $0x5c0] sm:$0xff]  ;;  %v950_v2 = vld [vmem:[%s10614_s7 + $0x5c8] sm:$0xff] }
 0x298   :  { %v708_v5 = vadd.f32 %v707_v4, %v338_v1  ;;  %v709_v6 = vpop.f32.mrb[6].mxu1  ;;  %v953_v1 = vld [vmem:[%s10614_s7 + $0x5e0] sm:$0xff]  ;;  %v6505_v4 = vcombine.low %v941_v55, %v945_v56  ;;  %v998_v55 = vld [vmem:[%s10614_s7 + $0x748] sm:$0xff] }
 0x299   :  { %v753_v7 = vmul.f32 0.2, %v706_v3  ;;  %v710_v8 = vpop.f32.mrb[7].mxu1  ;;  %v6514_v6 = vcombine.high %v949_v0, %v953_v1  ;;  %v1002_v56 = vld [vmem:[%s10614_s7 + $0x768] sm:$0xff] }
 0x29a   :  { %v754_v9 = vmul.f32 0.2, %v708_v5  ;;  %v957_v8 = vld [vmem:[%s10614_s7 + $0x600] sm:$0xff] }
 0x29b   :  { %v757_v10 = vmax.f32 %v706_v3, %v753_v7  ;;  %v954_v3 = vld [vmem:[%s10614_s7 + $0x5e8] sm:$0xff] }
 0x29c   :  { %v758_v12 = vmax.f32 %v708_v5, %v754_v9  ;;  %v6507_v5 = vcombine.low %v942_v57, %v946_v58  ;;  %v6516_v7 = vcombine.high %v950_v2, %v954_v3  ;;  %v961_v9 = vld [vmem:[%s10614_s7 + $0x620] sm:$0xff]  ;;  %v6515_v13 = vcombine.low %v950_v2, %v954_v3  ;;  %v1006_v2 = vld [vmem:[%s10614_s7 + $0x788] sm:$0xff] }
 0x29d   :  { %v8560_v17 = vpack.c.bf16 %v757_v10, %v757_v10  ;;  %v958_v10 = vld [vmem:[%s10614_s7 + $0x608] sm:$0xff]  ;;  %v6522_v14 = vcombine.high %v957_v8, %v961_v9  ;;  %v6521_v22 = vcombine.low %v957_v8, %v961_v9  ;;  %v6555_v58 = vcombine.low %v990_v44, %v994_v45  ;;  %v1013_v9 = vld [vmem:[%s10614_s7 + $0x7c0] sm:$0xff] }
 0x29e   :  { %v8558_v16 = vpack.c.bf16 %v758_v12, %v758_v12  ;;  %v6513_v12 = vcombine.low %v949_v0, %v953_v1  ;;  %v6524_v15 = vcombine.high %v958_v10, %v962_v11  ;;  %v6523_v23 = vcombine.low %v958_v10, %v962_v11  ;;  %v1009_v1 = vld [vmem:[%s10614_s7 + $0x7a0] sm:$0xff]  ;;  %v1010_v3 = vld [vmem:[%s10614_s7 + $0x7a8] sm:$0xff] }
 0x29f   :  { %v8723_v0 = vsub.s32 3, %v8279_v46  ;;  %v6572_v8 = vcombine.high %v1006_v2, %v1010_v3  ;;  %v1017_v11 = vld [vmem:[%s10614_s7 + $0x7e0] sm:$0xff] }
 0x2a0   :  { %2375 = vmatprep.mubr.bf16.mxu0 %v8558_v16  ;;  %2457 = vmatprep.mubr.bf16.mxu1 %v8558_v16 }
 0x2a1   :  { %2376 = vmatmul.mubr.bf16.vlgmr.msra.gmra.mrb[4].mxu0 %v8560_v17  ;;  %2458 = vmatmul.mubr.bf16.vlgmr.msra.gmra.mrb[12].mxu1 %v8560_v17  ;;  %v346_v10 = vrot.slane %v8540_v63, %v8723_v0 }
 0x2a2   :  { %2385 = vmatpush1.bf16.msra.mxu0 %v6457_v31  ;;  %2467 = vmatpush1.bf16.msra.mxu1 %v6459_v32  ;;  %v6482_v31 = vcombine.high %v917_v34, %v921_v35  ;;  %v6484_v32 = vcombine.high %v918_v25, %v922_v26  ;;  %v974_v34 = vld [vmem:[%s10614_s7 + $0x688] sm:$0xff]  ;;  %v6531_v26 = vcombine.low %v966_v20, %v970_v21 }
 0x2a3   :  { %2386 = vmatprep.subr.bf16.mxu0 %v6466_v18  ;;  %2468 = vmatprep.subr.bf16.mxu1 %v6468_v19  ;;  %v965_v18 = vld [vmem:[%s10614_s7 + $0x640] sm:$0xff]  ;;  %v978_v35 = vld [vmem:[%s10614_s7 + $0x6a8] sm:$0xff] }
 0x2a4   :  { %v969_v19 = vld [vmem:[%s10614_s7 + $0x660] sm:$0xff]  ;;  %v6539_v39 = vcombine.low %v974_v34, %v978_v35 }
 0x2a5   :  { %v6529_v25 = vcombine.low %v965_v18, %v969_v19 }
 0x2a6   :  { %2387 = vmatpush1.bf16.msra.mxu0 %v6465_v24  ;;  %2469 = vmatpush1.bf16.msra.mxu1 %v6467_v28  ;;  %v6530_v24 = vcombine.high %v965_v18, %v969_v19  ;;  %v6532_v28 = vcombine.high %v966_v20, %v970_v21  ;;  %v6571_v18 = vcombine.low %v1006_v2, %v1010_v3  ;;  %v799_v3 = vld [vmem:[%s10614_s7 + $0x110] sm:$0xff] }
 0x2a7   :  { %2388 = vmatprep.subr.bf16.mxu0 %v6474_v30  ;;  %2470 = vmatprep.subr.bf16.mxu1 %v6476_v33  ;;  %v973_v30 = vld [vmem:[%s10614_s7 + $0x680] sm:$0xff] }
 0x2a8   :  { %v977_v33 = vld [vmem:[%s10614_s7 + $0x6a0] sm:$0xff] }
 0x2a9   :  { %v6537_v38 = vcombine.low %v973_v30, %v977_v33 }
 0x2aa   :  { %2389 = vmatpush1.bf16.msra.mxu0 %v6473_v27  ;;  %2471 = vmatpush1.bf16.msra.mxu1 %v6475_v29  ;;  %v6538_v27 = vcombine.high %v973_v30, %v977_v33  ;;  %v6540_v29 = vcombine.high %v974_v34, %v978_v35  ;;  %v768_v30 = vld [vmem:[%s10614_s7 + $0x18] sm:$0xff] }
 0x2ab   :  { %2390 = vmatprep.subr.bf16.mxu0 %v6482_v31  ;;  %2472 = vmatprep.subr.bf16.mxu1 %v6484_v32  ;;  %v981_v31 = vld [vmem:[%s10614_s7 + $0x6c0] sm:$0xff]  ;;  %v772_v33 = vld [vmem:[%s10614_s7 + $0x38] sm:$0xff] }
 0x2ac   :  { %v985_v32 = vld [vmem:[%s10614_s7 + $0x6e0] sm:$0xff] }
 0x2ad   :  { %v6545_v47 = vcombine.low %v981_v31, %v985_v32 }
 0x2ae   :  { %2391 = vmatpush1.bf16.msra.mxu0 %v6481_v40  ;;  %2473 = vmatpush1.bf16.msra.mxu1 %v6483_v41  ;;  %v6546_v40 = vcombine.high %v981_v31, %v985_v32  ;;  %v6548_v41 = vcombine.high %v982_v36, %v986_v37  ;;  %v6336_v32 = vcombine.high %v768_v30, %v772_v33  ;;  %v775_v37 = vld [vmem:[%s10614_s7 + $0x50] sm:$0xff] }
 0x2af   :  { %2392 = vmatprep.subr.bf16.mxu0 %v6490_v42  ;;  %2474 = vmatprep.subr.bf16.mxu1 %v6492_v43  ;;  %v989_v42 = vld [vmem:[%s10614_s7 + $0x700] sm:$0xff] }
 0x2b0   :  { %v993_v43 = vld [vmem:[%s10614_s7 + $0x720] sm:$0xff] }
 0x2b1   :  { %v6553_v57 = vcombine.low %v989_v42, %v993_v43 }
 0x2b2   :  { %2393 = vmatpush1.bf16.msra.mxu0 %v6489_v49  ;;  %2475 = vmatpush1.bf16.msra.mxu1 %v6491_v50  ;;  %v6554_v49 = vcombine.high %v989_v42, %v993_v43  ;;  %v6556_v50 = vcombine.high %v990_v44, %v994_v45  ;;  %v6335_v44 = vcombine.low %v768_v30, %v772_v33 }
 0x2b3   :  { %2394 = vmatprep.subr.bf16.mxu0 %v6498_v52  ;;  %2476 = vmatprep.subr.bf16.mxu1 %v6500_v53  ;;  %v997_v52 = vld [vmem:[%s10614_s7 + $0x740] sm:$0xff] }
 0x2b4   :  { %v1001_v53 = vld [vmem:[%s10614_s7 + $0x760] sm:$0xff] }
 0x2b6   :  { %2395 = vmatpush1.bf16.msra.mxu0 %v6497_v59  ;;  %2477 = vmatpush1.bf16.msra.mxu1 %v6499_v60  ;;  %v6562_v59 = vcombine.high %v997_v52, %v1001_v53  ;;  %v6564_v60 = vcombine.high %v998_v55, %v1002_v56 }
 0x2b7   :  { %2396 = vmatprep.subr.bf16.mxu0 %v6506_v61  ;;  %2478 = vmatprep.subr.bf16.mxu1 %v6508_v62  ;;  %v8717_v61 = vsub.s32 2, %v8279_v46  ;;  %v1005_v62 = vld [vmem:[%s10614_s7 + $0x780] sm:$0xff] }
 0x2ba   :  { %2397 = vmatpush1.bf16.msra.mxu0 %v6505_v4  ;;  %2479 = vmatpush1.bf16.msra.mxu1 %v6507_v5  ;;  %v6561_v4 = vcombine.low %v997_v52, %v1001_v53  ;;  %v6563_v5 = vcombine.low %v998_v55, %v1002_v56  ;;  %v788_v52 = vld [vmem:[%s10614_s7 + $0xb8] sm:$0xff] }
 0x2bb   :  { %2398 = vmatprep.subr.bf16.mxu0 %v6514_v6  ;;  %2480 = vmatprep.subr.bf16.mxu1 %v6516_v7  ;;  %v342_v6 = vrot.slane %v8540_v63, %v8717_v61  ;;  %v6570_v7 = vcombine.high %v1005_v62, %v1009_v1  ;;  %v6578_v63 = vcombine.high %v1013_v9, %v1017_v11 }
 0x2be   :  { %2399 = vmatpush1.bf16.msra.mxu0 %v6513_v12  ;;  %2481 = vmatpush1.bf16.msra.mxu1 %v6515_v13  ;;  %v1014_v12 = vld [vmem:[%s10614_s7 + $0x7c8] sm:$0xff] }
 0x2bf   :  { %2400 = vmatprep.subr.bf16.mxu0 %v6522_v14  ;;  %2482 = vmatprep.subr.bf16.mxu1 %v6524_v15  ;;  %v1018_v13 = vld [vmem:[%s10614_s7 + $0x7e8] sm:$0xff]  ;;  %v6569_v15 = vcombine.low %v1005_v62, %v1009_v1 }
 0x2c0   :  { %v6580_v21 = vcombine.high %v1014_v12, %v1018_v13 }
 0x2c2   :  { %2401 = vmatpush1.bf16.msra.mxu0 %v6521_v22  ;;  %2483 = vmatpush1.bf16.msra.mxu1 %v6523_v23  ;;  %v767_v22 = vld [vmem:[%s10614_s7 + $0x10] sm:$0xff] }
 0x2c3   :  { %2402 = vmatprep.subr.bf16.mxu0 %v6530_v24  ;;  %2484 = vmatprep.subr.bf16.mxu1 %v6532_v28  ;;  %v771_v28 = vld [vmem:[%s10614_s7 + $0x30] sm:$0xff] }
 0x2c4   :  { %v6334_v31 = vcombine.high %v767_v22, %v771_v28  ;;  %v6333_v42 = vcombine.low %v767_v22, %v771_v28  ;;  %v816_v22 = vld [vmem:[%s10614_s7 + $0x198] sm:$0xff] }
 0x2c6   :  { %2403 = vmatpush1.bf16.msra.mxu0 %v6529_v25  ;;  %2485 = vmatpush1.bf16.msra.mxu1 %v6531_v26  ;;  %v6577_v26 = vcombine.low %v1013_v9, %v1017_v11  ;;  %v807_v11 = vld [vmem:[%s10614_s7 + $0x150] sm:$0xff] }
 0x2c7   :  { %2404 = vmatprep.subr.bf16.mxu0 %v6538_v27  ;;  %2486 = vmatprep.subr.bf16.mxu1 %v6540_v29  ;;  %v6579_v27 = vcombine.low %v1014_v12, %v1018_v13  ;;  %v811_v13 = vld [vmem:[%s10614_s7 + $0x170] sm:$0xff] }
 0x2c8   :  { %v6373_v28 = vcombine.low %v807_v11, %v811_v13 }
 0x2ca   :  { %2405 = vmatpush1.bf16.msra.mxu0 %v6537_v38  ;;  %2487 = vmatpush1.bf16.msra.mxu1 %v6539_v39  ;;  %v779_v38 = vld [vmem:[%s10614_s7 + $0x70] sm:$0xff]  ;;  %v776_v39 = vld [vmem:[%s10614_s7 + $0x58] sm:$0xff] }
 0x2cb   :  { %2406 = vmatprep.subr.bf16.mxu0 %v6546_v40  ;;  %2488 = vmatprep.subr.bf16.mxu1 %v6548_v41  ;;  %v780_v40 = vld [vmem:[%s10614_s7 + $0x78] sm:$0xff]  ;;  %v6342_v45 = vcombine.high %v775_v37, %v779_v38  ;;  %v6341_v53 = vcombine.low %v775_v37, %v779_v38  ;;  %v835_v37 = vld [vmem:[%s10614_s7 + $0x230] sm:$0xff] }
 0x2cc   :  { %v6343_v55 = vcombine.low %v776_v39, %v780_v40  ;;  %v832_v38 = vld [vmem:[%s10614_s7 + $0x218] sm:$0xff] }
 0x2ce   :  { %2407 = vmatpush1.bf16.msra.mxu0 %v6545_v47  ;;  %2489 = vmatpush1.bf16.msra.mxu1 %v6547_v48  ;;  %v6344_v47 = vcombine.high %v776_v39, %v780_v40  ;;  %v783_v48 = vld [vmem:[%s10614_s7 + $0x90] sm:$0xff]  ;;  %v836_v40 = vld [vmem:[%s10614_s7 + $0x238] sm:$0xff] }
 0x2cf   :  { %2408 = vmatprep.subr.bf16.mxu0 %v6554_v49  ;;  %2490 = vmatprep.subr.bf16.mxu1 %v6556_v50  ;;  %v787_v49 = vld [vmem:[%s10614_s7 + $0xb0] sm:$0xff]  ;;  %v784_v50 = vld [vmem:[%s10614_s7 + $0x98] sm:$0xff] }
 0x2d0   :  { %v6350_v56 = vcombine.high %v783_v48, %v787_v49  ;;  %v6349_v62 = vcombine.low %v783_v48, %v787_v49  ;;  %v6351_v1 = vcombine.low %v784_v50, %v788_v52  ;;  %v843_v48 = vld [vmem:[%s10614_s7 + $0x270] sm:$0xff]  ;;  %v840_v49 = vld [vmem:[%s10614_s7 + $0x258] sm:$0xff] }
 0x2d2   :  { %2409 = vmatpush1.bf16.msra.mxu0 %v6553_v57  ;;  %2491 = vmatpush1.bf16.msra.mxu1 %v6555_v58  ;;  %v791_v57 = vld [vmem:[%s10614_s7 + $0xd0] sm:$0xff]  ;;  %v6352_v58 = vcombine.high %v784_v50, %v788_v52  ;;  %v6400_v50 = vcombine.high %v832_v38, %v836_v40  ;;  %v844_v52 = vld [vmem:[%s10614_s7 + $0x278] sm:$0xff] }
 0x2d3   :  { %2410 = vmatprep.subr.bf16.mxu0 %v6562_v59  ;;  %2492 = vmatprep.subr.bf16.mxu1 %v6564_v60  ;;  %v795_v59 = vld [vmem:[%s10614_s7 + $0xf0] sm:$0xff]  ;;  %v792_v60 = vld [vmem:[%s10614_s7 + $0xd8] sm:$0xff] }
 0x2d4   :  { %v6358_v2 = vcombine.high %v791_v57, %v795_v59 }
 0x2d6   :  { %v746_v14 = vpop.f32.mrb[8].mxu1  ;;  %2411 = vmatpush1.bf16.msra.mxu0 %v6561_v4  ;;  %2493 = vmatpush1.bf16.msra.mxu1 %v6563_v5  ;;  %v803_v5 = vld [vmem:[%s10614_s7 + $0x130] sm:$0xff] }
 0x2d7   :  { %v747_v19 = vadd.f32 %v746_v14, %v342_v6  ;;  %v748_v20 = vpop.f32.mrb[9].mxu1  ;;  %2412 = vmatprep.subr.bf16.mxu0 %v6570_v7  ;;  %2494 = vmatprep.subr.bf16.mxu1 %v6572_v8  ;;  %v800_v6 = vld [vmem:[%s10614_s7 + $0x118] sm:$0xff]  ;;  %v6357_v8 = vcombine.low %v791_v57, %v795_v59  ;;  %v847_v57 = vld [vmem:[%s10614_s7 + $0x290] sm:$0xff] }
 0x2d8   :  { %v749_v23 = vadd.f32 %v748_v20, %v346_v10  ;;  %v750_v24 = vpop.f32.mrb[10].mxu1  ;;  %v804_v7 = vld [vmem:[%s10614_s7 + $0x138] sm:$0xff]  ;;  %v6366_v10 = vcombine.high %v799_v3, %v803_v5  ;;  %v6374_v20 = vcombine.high %v807_v11, %v811_v13  ;;  %v863_v11 = vld [vmem:[%s10614_s7 + $0x310] sm:$0xff] }
 0x2d9   :  { %v755_v34 = vmul.f32 0.2, %v747_v19  ;;  %v751_v35 = vpop.f32.mrb[11].mxu1  ;;  %v6368_v12 = vcombine.high %v800_v6, %v804_v7  ;;  %v808_v14 = vld [vmem:[%s10614_s7 + $0x158] sm:$0xff] }
 0x2da   :  { %v756_v25 = vmul.f32 0.2, %v749_v23  ;;  %2413 = vmatpush1.bf16.msra.mxu0 %v6569_v15  ;;  %2495 = vmatpush1.bf16.msra.mxu1 %v6571_v18  ;;  %v812_v15 = vld [vmem:[%s10614_s7 + $0x178] sm:$0xff]  ;;  %v6365_v18 = vcombine.low %v799_v3, %v803_v5  ;;  %v827_v35 = vld [vmem:[%s10614_s7 + $0x1f0] sm:$0xff] }
 0x2db   :  { %v759_v29 = vmax.f32 %v747_v19, %v755_v34  ;;  %2414 = vmatprep.subr.bf16.mxu0 %v6578_v63  ;;  %2496 = vmatprep.subr.bf16.mxu1 %v6580_v21  ;;  %v6367_v19 = vcombine.low %v800_v6, %v804_v7  ;;  %v815_v63 = vld [vmem:[%s10614_s7 + $0x190] sm:$0xff]  ;;  %v820_v24 = vld [vmem:[%s10614_s7 + $0x1b8] sm:$0xff]  ;;  %v6375_v30 = vcombine.low %v808_v14, %v812_v15 }
 0x2dc   :  { %v760_v36 = vmax.f32 %v749_v23, %v756_v25  ;;  %v819_v21 = vld [vmem:[%s10614_s7 + $0x1b0] sm:$0xff]  ;;  %v6376_v23 = vcombine.high %v808_v14, %v812_v15  ;;  %v824_v25 = vld [vmem:[%s10614_s7 + $0x1d8] sm:$0xff] }
 0x2dd   :  { %v8776_v43 = vpack.c.bf16 %v759_v29, %v759_v29  ;;  %v6382_v33 = vcombine.high %v815_v63, %v819_v21  ;;  %v823_v34 = vld [vmem:[%s10614_s7 + $0x1d0] sm:$0xff]  ;;  %v6381_v29 = vcombine.low %v815_v63, %v819_v21  ;;  %v848_v59 = vld [vmem:[%s10614_s7 + $0x298] sm:$0xff] }
 0x2de   :  { %v8774_v41 = vpack.c.bf16 %v760_v36, %v760_v36  ;;  %2415 = vmatpush1.bf16.msra.mxu0 %v6577_v26  ;;  %2497 = vmatpush1.bf16.msra.mxu1 %v6579_v27  ;;  %v6384_v26 = vcombine.high %v816_v22, %v820_v24  ;;  %v828_v27 = vld [vmem:[%s10614_s7 + $0x1f8] sm:$0xff]  ;;  %v831_v36 = vld [vmem:[%s10614_s7 + $0x210] sm:$0xff] }
 0x2df   :  { %2507 = vmatprep.subr.bf16.mxu0 %v6334_v31  ;;  %2589 = vmatprep.subr.bf16.mxu1 %v6336_v32  ;;  %v6383_v31 = vcombine.low %v816_v22, %v820_v24  ;;  %v6390_v32 = vcombine.high %v823_v34, %v827_v35  ;;  %v6392_v39 = vcombine.high %v824_v25, %v828_v27  ;;  %v855_v3 = vld [vmem:[%s10614_s7 + $0x2d0] sm:$0xff]  ;;  %v856_v5 = vld [vmem:[%s10614_s7 + $0x2d8] sm:$0xff] }
 0x2e0   :  { %2416 = vmatprep.mubr.bf16.mxu0 %v8774_v41  ;;  %2498 = vmatprep.mubr.bf16.mxu1 %v8774_v41  ;;  %v860_v7 = vld [vmem:[%s10614_s7 + $0x2f8] sm:$0xff]  ;;  %v871_v63 = vld [vmem:[%s10614_s7 + $0x350] sm:$0xff] }
 0x2e1   :  { %2417 = vmatmul.mubr.bf16.vlgmr.msra.gmra.mrb[4].mxu0 %v8776_v43  ;;  %2499 = vmatmul.mubr.bf16.vlgmr.msra.gmra.mrb[12].mxu1 %v8776_v43  ;;  %v864_v13 = vld [vmem:[%s10614_s7 + $0x318] sm:$0xff]  ;;  %v6424_v14 = vcombine.high %v856_v5, %v860_v7  ;;  %v875_v21 = vld [vmem:[%s10614_s7 + $0x370] sm:$0xff] }
 0x2e2   :  { %2508 = vmatpush1.bf16.msra.mxu0 %v6333_v42  ;;  %2539 = vmatprep.mubr.bf16.mxu0 %v8558_v16  ;;  %v6389_v42 = vcombine.low %v823_v34, %v827_v35  ;;  %v868_v15 = vld [vmem:[%s10614_s7 + $0x338] sm:$0xff]  ;;  %v879_v34 = vld [vmem:[%s10614_s7 + $0x390] sm:$0xff] }
 0x2e3   :  { %2590 = vmatpush1.bf16.msra.mxu1 %v6335_v44  ;;  %2621 = vmatprep.mubr.bf16.mxu1 %v8558_v16  ;;  %v796_v16 = vld [vmem:[%s10614_s7 + $0xf8] sm:$0xff]  ;;  %v6391_v44 = vcombine.low %v824_v25, %v828_v27  ;;  %v883_v35 = vld [vmem:[%s10614_s7 + $0x3b0] sm:$0xff] }
 0x2e4   :  { %2509 = vmatprep.subr.bf16.mxu0 %v6342_v45  ;;  %2591 = vmatprep.subr.bf16.mxu1 %v6344_v47  ;;  %v6360_v4 = vcombine.high %v792_v60, %v796_v16  ;;  %v6359_v9 = vcombine.low %v792_v60, %v796_v16  ;;  %v6398_v45 = vcombine.high %v831_v36, %v835_v37  ;;  %v839_v47 = vld [vmem:[%s10614_s7 + $0x250] sm:$0xff]  ;;  %v852_v16 = vld [vmem:[%s10614_s7 + $0x2b8] sm:$0xff] }
 0x2e5   :  { %v6408_v60 = vcombine.high %v840_v49, %v844_v52  ;;  %v6416_v6 = vcombine.high %v848_v59, %v852_v16  ;;  %v872_v22 = vld [vmem:[%s10614_s7 + $0x358] sm:$0xff] }
 0x2e6   :  { %2510 = vmatpush1.bf16.msra.mxu0 %v6341_v53  ;;  %v6397_v53 = vcombine.low %v831_v36, %v835_v37  ;;  %v876_v24 = vld [vmem:[%s10614_s7 + $0x378] sm:$0xff]  ;;  %v887_v36 = vld [vmem:[%s10614_s7 + $0x3d0] sm:$0xff] }
 0x2e7   :  { %2592 = vmatpush1.bf16.msra.mxu1 %v6343_v55  ;;  %2511 = vmatprep.subr.bf16.mxu0 %v6350_v56  ;;  %v6399_v55 = vcombine.low %v832_v38, %v836_v40  ;;  %v6406_v56 = vcombine.high %v839_v47, %v843_v48  ;;  %v880_v25 = vld [vmem:[%s10614_s7 + $0x398] sm:$0xff]  ;;  %v891_v37 = vld [vmem:[%s10614_s7 + $0x3f0] sm:$0xff] }
 0x2e8   :  { %2593 = vmatprep.subr.bf16.mxu1 %v6352_v58  ;;  %v851_v58 = vld [vmem:[%s10614_s7 + $0x2b0] sm:$0xff]  ;;  %v884_v27 = vld [vmem:[%s10614_s7 + $0x3b8] sm:$0xff] }
 0x2e9   :  { %v888_v38 = vld [vmem:[%s10614_s7 + $0x3d8] sm:$0xff] }
 0x2ea   :  { %2512 = vmatpush1.bf16.msra.mxu0 %v6349_v62  ;;  %v6405_v62 = vcombine.low %v839_v47, %v843_v48  ;;  %v892_v40 = vld [vmem:[%s10614_s7 + $0x3f8] sm:$0xff]  ;;  %v6447_v47 = vcombine.low %v880_v25, %v884_v27  ;;  %v6454_v48 = vcombine.high %v887_v36, %v891_v37 }
 0x2eb   :  { %2594 = vmatpush1.bf16.msra.mxu1 %v6351_v1  ;;  %2513 = vmatprep.subr.bf16.mxu0 %v6358_v2  ;;  %v6407_v1 = vcombine.low %v840_v49, %v844_v52  ;;  %v6414_v2 = vcombine.high %v847_v57, %v851_v58  ;;  %v896_v49 = vld [vmem:[%s10614_s7 + $0x418] sm:$0xff] }
 0x2ec   :  { %2595 = vmatprep.subr.bf16.mxu1 %v6360_v4  ;;  %v859_v4 = vld [vmem:[%s10614_s7 + $0x2f0] sm:$0xff]  ;;  %v900_v52 = vld [vmem:[%s10614_s7 + $0x438] sm:$0xff] }
 0x2ee   :  { %2514 = vmatpush1.bf16.msra.mxu0 %v6357_v8  ;;  %v6413_v8 = vcombine.low %v847_v57, %v851_v58  ;;  %v903_v57 = vld [vmem:[%s10614_s7 + $0x450] sm:$0xff] }
 0x2ef   :  { %2596 = vmatpush1.bf16.msra.mxu1 %v6359_v9  ;;  %2515 = vmatprep.subr.bf16.mxu0 %v6366_v10  ;;  %v6415_v9 = vcombine.low %v848_v59, %v852_v16  ;;  %v6422_v10 = vcombine.high %v855_v3, %v859_v4  ;;  %v907_v58 = vld [vmem:[%s10614_s7 + $0x470] sm:$0xff]  ;;  %v6464_v59 = vcombine.high %v896_v49, %v900_v52  ;;  %v908_v16 = vld [vmem:[%s10614_s7 + $0x478] sm:$0xff] }
 0x2f0   :  { %2597 = vmatprep.subr.bf16.mxu1 %v6368_v12  ;;  %v867_v12 = vld [vmem:[%s10614_s7 + $0x330] sm:$0xff] }
 0x2f2   :  { %2516 = vmatpush1.bf16.msra.mxu0 %v6365_v18  ;;  %v6421_v18 = vcombine.low %v855_v3, %v859_v4  ;;  %v6463_v3 = vcombine.low %v896_v49, %v900_v52  ;;  %v912_v4 = vld [vmem:[%s10614_s7 + $0x498] sm:$0xff]  ;;  %v959_v52 = vld [vmem:[%s10614_s7 + $0x610] sm:$0xff] }
 0x2f3   :  { %2598 = vmatpush1.bf16.msra.mxu1 %v6367_v19  ;;  %2517 = vmatprep.subr.bf16.mxu0 %v6374_v20  ;;  %v6423_v19 = vcombine.low %v856_v5, %v860_v7  ;;  %v6430_v20 = vcombine.high %v863_v11, %v867_v12  ;;  %v916_v5 = vld [vmem:[%s10614_s7 + $0x4b8] sm:$0xff] }
 0x2f4   :  { %2599 = vmatprep.subr.bf16.mxu1 %v6376_v23  ;;  %v6432_v23 = vcombine.high %v864_v13, %v868_v15 }
 0x2f6   :  { %2518 = vmatpush1.bf16.msra.mxu0 %v6373_v28  ;;  %v6429_v28 = vcombine.low %v863_v11, %v867_v12 }
 0x2f7   :  { %2600 = vmatpush1.bf16.msra.mxu1 %v6375_v30  ;;  %2519 = vmatprep.subr.bf16.mxu0 %v6382_v33  ;;  %v6431_v30 = vcombine.low %v864_v13, %v868_v15  ;;  %v6438_v33 = vcombine.high %v871_v63, %v875_v21  ;;  %v920_v13 = vld [vmem:[%s10614_s7 + $0x4d8] sm:$0xff] }
 0x2f8   :  { %2601 = vmatprep.subr.bf16.mxu1 %v6384_v26  ;;  %v6440_v26 = vcombine.high %v872_v22, %v876_v24 }
 0x2fa   :  { %2520 = vmatpush1.bf16.msra.mxu0 %v6381_v29  ;;  %v6437_v29 = vcombine.low %v871_v63, %v875_v21  ;;  %v932_v21 = vld [vmem:[%s10614_s7 + $0x538] sm:$0xff] }
 0x2fb   :  { %2602 = vmatpush1.bf16.msra.mxu1 %v6383_v31  ;;  %2521 = vmatprep.subr.bf16.mxu0 %v6390_v32  ;;  %v6439_v31 = vcombine.low %v872_v22, %v876_v24  ;;  %v6446_v32 = vcombine.high %v879_v34, %v883_v35  ;;  %v935_v24 = vld [vmem:[%s10614_s7 + $0x550] sm:$0xff] }
 0x2fc   :  { %2603 = vmatprep.subr.bf16.mxu1 %v6392_v39  ;;  %v6448_v39 = vcombine.high %v880_v25, %v884_v27  ;;  %v943_v27 = vld [vmem:[%s10614_s7 + $0x590] sm:$0xff] }
 0x2fe   :  { %2522 = vmatpush1.bf16.msra.mxu0 %v6389_v42  ;;  %v6445_v42 = vcombine.low %v879_v34, %v883_v35  ;;  %v936_v34 = vld [vmem:[%s10614_s7 + $0x558] sm:$0xff] }
 0x2ff   :  { %2604 = vmatpush1.bf16.msra.mxu1 %v6391_v44  ;;  %2523 = vmatprep.subr.bf16.mxu0 %v6398_v45  ;;  %v895_v44 = vld [vmem:[%s10614_s7 + $0x410] sm:$0xff]  ;;  %v940_v35 = vld [vmem:[%s10614_s7 + $0x578] sm:$0xff] }
 0x300   :  { %2605 = vmatprep.subr.bf16.mxu1 %v6400_v50  ;;  %v899_v45 = vld [vmem:[%s10614_s7 + $0x430] sm:$0xff]  ;;  %v6456_v50 = vcombine.high %v888_v38, %v892_v40 }
 0x302   :  { %2524 = vmatpush1.bf16.msra.mxu0 %v6397_v53  ;;  %v6453_v53 = vcombine.low %v887_v36, %v891_v37  ;;  %v944_v36 = vld [vmem:[%s10614_s7 + $0x598] sm:$0xff] }
 0x303   :  { %2606 = vmatpush1.bf16.msra.mxu1 %v6399_v55  ;;  %2525 = vmatprep.subr.bf16.mxu0 %v6406_v56  ;;  %v6455_v55 = vcombine.low %v888_v38, %v892_v40  ;;  %v6462_v56 = vcombine.high %v895_v44, %v899_v45  ;;  %v948_v37 = vld [vmem:[%s10614_s7 + $0x5b8] sm:$0xff]  ;;  %v6504_v38 = vcombine.high %v936_v34, %v940_v35  ;;  %v951_v40 = vld [vmem:[%s10614_s7 + $0x5d0] sm:$0xff] }
 0x304   :  { %2607 = vmatprep.subr.bf16.mxu1 %v6408_v60  ;;  %v904_v60 = vld [vmem:[%s10614_s7 + $0x458] sm:$0xff]  ;;  %v6512_v49 = vcombine.high %v944_v36, %v948_v37 }
 0x305   :  { %v6472_v7 = vcombine.high %v904_v60, %v908_v16  ;;  %v6471_v11 = vcombine.low %v904_v60, %v908_v16  ;;  %v967_v16 = vld [vmem:[%s10614_s7 + $0x650] sm:$0xff] }
 0x306   :  { %2526 = vmatpush1.bf16.msra.mxu0 %v6405_v62  ;;  %v6461_v62 = vcombine.low %v895_v44, %v899_v45  ;;  %v6503_v44 = vcombine.low %v936_v34, %v940_v35  ;;  %v996_v34 = vld [vmem:[%s10614_s7 + $0x738] sm:$0xff] }
 0x307   :  { %2608 = vmatpush1.bf16.msra.mxu1 %v6407_v1  ;;  %2527 = vmatprep.subr.bf16.mxu0 %v6414_v2  ;;  %v911_v1 = vld [vmem:[%s10614_s7 + $0x490] sm:$0xff] }
 0x308   :  { %2609 = vmatprep.subr.bf16.mxu1 %v6416_v6  ;;  %v915_v2 = vld [vmem:[%s10614_s7 + $0x4b0] sm:$0xff]  ;;  %v6470_v6 = vcombine.high %v903_v57, %v907_v58 }
 0x309   :  { %v6478_v12 = vcombine.high %v911_v1, %v915_v2  ;;  %v6477_v15 = vcombine.low %v911_v1, %v915_v2 }
 0x30a   :  { %2528 = vmatpush1.bf16.msra.mxu0 %v6413_v8  ;;  %v6469_v8 = vcombine.low %v903_v57, %v907_v58  ;;  %v960_v57 = vld [vmem:[%s10614_s7 + $0x618] sm:$0xff] }
 0x30b   :  { %2610 = vmatpush1.bf16.msra.mxu1 %v6415_v9  ;;  %2529 = vmatprep.subr.bf16.mxu0 %v6422_v10  ;;  %v919_v9 = vld [vmem:[%s10614_s7 + $0x4d0] sm:$0xff]  ;;  %v964_v58 = vld [vmem:[%s10614_s7 + $0x638] sm:$0xff] }
 0x30c   :  { %2611 = vmatprep.subr.bf16.mxu1 %v6424_v14  ;;  %v923_v10 = vld [vmem:[%s10614_s7 + $0x4f0] sm:$0xff]  ;;  %v6480_v14 = vcombine.high %v912_v4, %v916_v5 }
 0x30d   :  { %v6486_v63 = vcombine.high %v919_v9, %v923_v10 }
 0x30e   :  { %2530 = vmatpush1.bf16.msra.mxu0 %v6421_v18  ;;  %v927_v18 = vld [vmem:[%s10614_s7 + $0x510] sm:$0xff] }
 0x30f   :  { %2612 = vmatpush1.bf16.msra.mxu1 %v6423_v19  ;;  %2531 = vmatprep.subr.bf16.mxu0 %v6430_v20  ;;  %v931_v19 = vld [vmem:[%s10614_s7 + $0x530] sm:$0xff]  ;;  %v6479_v20 = vcombine.low %v912_v4, %v916_v5  ;;  %v972_v4 = vld [vmem:[%s10614_s7 + $0x678] sm:$0xff]  ;;  %v6528_v5 = vcombine.high %v960_v57, %v964_v58 }
 0x310   :  { %2613 = vmatprep.subr.bf16.mxu1 %v6432_v23  ;;  %v6485_v23 = vcombine.low %v919_v9, %v923_v10  ;;  %v979_v10 = vld [vmem:[%s10614_s7 + $0x6b0] sm:$0xff] }
 0x312   :  { %2532 = vmatpush1.bf16.msra.mxu0 %v6429_v28  ;;  %v939_v28 = vld [vmem:[%s10614_s7 + $0x570] sm:$0xff] }
 0x313   :  { %2614 = vmatpush1.bf16.msra.mxu1 %v6431_v30  ;;  %2533 = vmatprep.subr.bf16.mxu0 %v6438_v33  ;;  %v6494_v33 = vcombine.high %v927_v18, %v931_v19 }
 0x314   :  { %2615 = vmatprep.subr.bf16.mxu1 %v6440_v26  ;;  %v6493_v26 = vcombine.low %v927_v18, %v931_v19  ;;  %v983_v19 = vld [vmem:[%s10614_s7 + $0x6d0] sm:$0xff] }
 0x316   :  { %2534 = vmatpush1.bf16.msra.mxu0 %v6437_v29  ;;  %v947_v29 = vld [vmem:[%s10614_s7 + $0x5b0] sm:$0xff] }
 0x317   :  { %2616 = vmatpush1.bf16.msra.mxu1 %v6439_v31  ;;  %2535 = vmatprep.subr.bf16.mxu0 %v6446_v32  ;;  %v6502_v32 = vcombine.high %v935_v24, %v939_v28  ;;  %v6510_v45 = vcombine.high %v943_v27, %v947_v29 }
 0x318   :  { %2617 = vmatprep.subr.bf16.mxu1 %v6448_v39  ;;  %v6501_v39 = vcombine.low %v935_v24, %v939_v28  ;;  %v991_v28 = vld [vmem:[%s10614_s7 + $0x710] sm:$0xff] }
 0x31a   :  { %2536 = vmatpush1.bf16.msra.mxu0 %v6445_v42  ;;  %v955_v42 = vld [vmem:[%s10614_s7 + $0x5f0] sm:$0xff] }
 0x31b   :  { %2618 = vmatpush1.bf16.msra.mxu1 %v6447_v47  ;;  %2537 = vmatprep.subr.bf16.mxu0 %v6454_v48  ;;  %v952_v47 = vld [vmem:[%s10614_s7 + $0x5d8] sm:$0xff]  ;;  %v6517_v60 = vcombine.low %v951_v40, %v955_v42 }
 0x31c   :  { %2619 = vmatprep.subr.bf16.mxu1 %v6456_v50  ;;  %v956_v48 = vld [vmem:[%s10614_s7 + $0x5f8] sm:$0xff]  ;;  %v6509_v50 = vcombine.low %v943_v27, %v947_v29  ;;  %v999_v29 = vld [vmem:[%s10614_s7 + $0x750] sm:$0xff] }
 0x31d   :  { %v6519_v1 = vcombine.low %v952_v47, %v956_v48 }
 0x31e   :  { %2538 = vmatpush1.bf16.msra.mxu0 %v6453_v53  ;;  %v963_v53 = vld [vmem:[%s10614_s7 + $0x630] sm:$0xff] }
 0x31f   :  { %2620 = vmatpush1.bf16.msra.mxu1 %v6455_v55  ;;  %2548 = vmatprep.subr.bf16.mxu0 %v6462_v56  ;;  %v6511_v55 = vcombine.low %v944_v36, %v948_v37  ;;  %v6518_v56 = vcombine.high %v951_v40, %v955_v42  ;;  %v6526_v2 = vcombine.high %v959_v52, %v963_v53  ;;  %v1004_v36 = vld [vmem:[%s10614_s7 + $0x778] sm:$0xff]  ;;  %v1007_v42 = vld [vmem:[%s10614_s7 + $0x790] sm:$0xff] }
 0x320   :  { %2630 = vmatprep.subr.bf16.mxu1 %v6464_v59  ;;  %v6520_v59 = vcombine.high %v952_v47, %v956_v48  ;;  %v1012_v47 = vld [vmem:[%s10614_s7 + $0x7b8] sm:$0xff] }
 0x321   :  { %2540 = vmatmul.mubr.bf16.vlgmr.msra.gmra.mrb[8].mxu0 %v8560_v17 }
 0x322   :  { %2622 = vmatmul.mubr.bf16.vlgmr.msra.gmra.mrb[16].mxu1 %v8560_v17  ;;  %2549 = vmatpush1.bf16.msra.mxu0 %v6461_v62  ;;  %v924_v17 = vld [vmem:[%s10614_s7 + $0x4f8] sm:$0xff]  ;;  %v971_v62 = vld [vmem:[%s10614_s7 + $0x670] sm:$0xff] }
 0x323   :  { %2580 = vmatprep.mubr.bf16.mxu0 %v8774_v41  ;;  %2631 = vmatpush1.bf16.msra.mxu1 %v6463_v3  ;;  %v6488_v22 = vcombine.high %v920_v13, %v924_v17  ;;  %v6487_v30 = vcombine.low %v920_v13, %v924_v17  ;;  %v968_v3 = vld [vmem:[%s10614_s7 + $0x658] sm:$0xff]  ;;  %v6534_v9 = vcombine.high %v967_v16, %v971_v62 }
 0x324   :  { %2662 = vmatprep.mubr.bf16.mxu1 %v8774_v41  ;;  %2550 = vmatprep.subr.bf16.mxu0 %v6470_v6  ;;  %v928_v41 = vld [vmem:[%s10614_s7 + $0x518] sm:$0xff]  ;;  %v6525_v6 = vcombine.low %v959_v52, %v963_v53  ;;  %v6533_v17 = vcombine.low %v967_v16, %v971_v62  ;;  %v1015_v53 = vld [vmem:[%s10614_s7 + $0x7d0] sm:$0xff]  ;;  %v7333_v62 = vld [vmem:[%s10617_s9 + $0x4] ss:$28 sps:$4 sm:$0xff]  }
 0x325   :  { %2632 = vmatprep.subr.bf16.mxu1 %v6472_v7  ;;  %v6496_v25 = vcombine.high %v928_v41, %v932_v21  ;;  %v6495_v31 = vcombine.low %v928_v41, %v932_v21  ;;  %v975_v7 = vld [vmem:[%s10614_s7 + $0x690] sm:$0xff]  ;;  %v980_v13 = vld [vmem:[%s10614_s7 + $0x6b8] sm:$0xff] }
 0x326   :  { %2551 = vmatpush1.bf16.msra.mxu0 %v6469_v8  ;;  %v6527_v8 = vcombine.low %v960_v57, %v964_v58  ;;  %v988_v41 = vld [vmem:[%s10614_s7 + $0x6f8] sm:$0xff]  ;;  %v6541_v21 = vcombine.low %v975_v7, %v979_v10 }
 0x327   :  { %2633 = vmatpush1.bf16.msra.mxu1 %v6471_v11  ;;  %2552 = vmatprep.subr.bf16.mxu0 %v6478_v12  ;;  %v6536_v11 = vcombine.high %v968_v3, %v972_v4  ;;  %v976_v12 = vld [vmem:[%s10614_s7 + $0x698] sm:$0xff] }
 0x328   :  { %2634 = vmatprep.subr.bf16.mxu1 %v6480_v14  ;;  %v6535_v14 = vcombine.low %v968_v3, %v972_v4  ;;  %v6544_v18 = vcombine.high %v976_v12, %v980_v13  ;;  %v1020_v57 = vld [vmem:[%s10614_s7 + $0x7f8] sm:$0xff]  ;;  %v7336_v4 = vld [vmem:[%s10617_s9 + $0xc] ss:$28 sps:$4 sm:$0xff]  }
 0x329   :  { %v7331_v3 = vld [vmem:[%s10617_s9] ss:$28 sps:$4 sm:$0xff]  }
 0x32a   :  { %2553 = vmatpush1.bf16.msra.mxu0 %v6477_v15  ;;  %v6542_v15 = vcombine.high %v975_v7, %v979_v10  ;;  %v7337_v7 = vld [vmem:[%s10617_s9 + $0x38] ss:$28 sps:$4 sm:$0xff]  }
 0x32b   :  { %2635 = vmatpush1.bf16.msra.mxu1 %v6479_v20  ;;  %2554 = vmatprep.subr.bf16.mxu0 %v6486_v63  ;;  %v987_v20 = vld [vmem:[%s10614_s7 + $0x6f0] sm:$0xff]  ;;  %v984_v63 = vld [vmem:[%s10614_s7 + $0x6d8] sm:$0xff] }
 0x32c   :  { %2636 = vmatprep.subr.bf16.mxu1 %v6488_v22  ;;  %v6543_v22 = vcombine.low %v976_v12, %v980_v13  ;;  %v6552_v24 = vcombine.high %v984_v63, %v988_v41  ;;  %v6549_v35 = vcombine.low %v983_v19, %v987_v20  ;;  %v7345_v10 = vld [vmem:[%s10617_s9 + $0x74] ss:$28 sps:$4 sm:$0xff]   ;;  %v7348_v12 = vld [vmem:[%s10617_s9 + $0x7c] ss:$28 sps:$4 sm:$0xff]  }
 0x32d   :  { %v7346_v13 = vld [vmem:[%s10617_s9 + $0x78] ss:$28 sps:$4 sm:$0xff]  }
 0x32e   :  { %2555 = vmatpush1.bf16.msra.mxu0 %v6485_v23  ;;  %v6550_v23 = vcombine.high %v983_v19, %v987_v20  ;;  %v7355_v19 = vld [vmem:[%s10617_s9 + $0xe0] ss:$28 sps:$4 sm:$0xff]   ;;  %v7360_v20 = vld [vmem:[%s10617_s9 + $0xec] ss:$28 sps:$4 sm:$0xff]  }
 0x32f   :  { %2637 = vmatpush1.bf16.msra.mxu1 %v6487_v30  ;;  %2556 = vmatprep.subr.bf16.mxu0 %v6494_v33  ;;  %v995_v30 = vld [vmem:[%s10614_s7 + $0x730] sm:$0xff]  ;;  %v992_v33 = vld [vmem:[%s10614_s7 + $0x718] sm:$0xff] }
 0x330   :  { %2638 = vmatprep.subr.bf16.mxu1 %v6496_v25  ;;  %v6551_v25 = vcombine.low %v984_v63, %v988_v41  ;;  %v6560_v27 = vcombine.high %v992_v33, %v996_v34  ;;  %v6557_v37 = vcombine.low %v991_v28, %v995_v30  ;;  %v7358_v63 = vld [vmem:[%s10617_s9 + $0xe8] ss:$28 sps:$4 sm:$0xff]   ;;  %v7363_v41 = vld [vmem:[%s10617_s9 + $0x11c] ss:$28 sps:$4 sm:$0xff]  }
 0x332   :  { %2557 = vmatpush1.bf16.msra.mxu0 %v6493_v26  ;;  %v6558_v26 = vcombine.high %v991_v28, %v995_v30  ;;  %v7367_v28 = vld [vmem:[%s10617_s9 + $0x150] ss:$28 sps:$4 sm:$0xff]   ;;  %v7372_v30 = vld [vmem:[%s10617_s9 + $0x15c] ss:$28 sps:$4 sm:$0xff]  }
 0x333   :  { %2639 = vmatpush1.bf16.msra.mxu1 %v6495_v31  ;;  %2558 = vmatprep.subr.bf16.mxu0 %v6502_v32  ;;  %v1003_v31 = vld [vmem:[%s10614_s7 + $0x770] sm:$0xff]  ;;  %v1000_v32 = vld [vmem:[%s10614_s7 + $0x758] sm:$0xff] }
 0x334   :  { %2640 = vmatprep.subr.bf16.mxu1 %v6504_v38  ;;  %v6559_v38 = vcombine.low %v992_v33, %v996_v34  ;;  %v6568_v40 = vcombine.high %v1000_v32, %v1004_v36  ;;  %v6565_v48 = vcombine.low %v999_v29, %v1003_v31  ;;  %v7370_v33 = vld [vmem:[%s10617_s9 + $0x158] ss:$28 sps:$4 sm:$0xff]   ;;  %v7375_v34 = vld [vmem:[%s10617_s9 + $0x18c] ss:$28 sps:$4 sm:$0xff]  }
 0x336   :  { %2559 = vmatpush1.bf16.msra.mxu0 %v6501_v39  ;;  %v6566_v39 = vcombine.high %v999_v29, %v1003_v31  ;;  %v7384_v29 = vld [vmem:[%s10617_s9 + $0x1cc] ss:$28 sps:$4 sm:$0xff]   ;;  %v7379_v31 = vld [vmem:[%s10617_s9 + $0x1c0] ss:$28 sps:$4 sm:$0xff]  }
 0x337   :  { %2641 = vmatpush1.bf16.msra.mxu1 %v6503_v44  ;;  %2560 = vmatprep.subr.bf16.mxu0 %v6510_v45  ;;  %v1011_v44 = vld [vmem:[%s10614_s7 + $0x7b0] sm:$0xff]  ;;  %v1008_v45 = vld [vmem:[%s10614_s7 + $0x798] sm:$0xff] }
 0x338   :  { %2642 = vmatprep.subr.bf16.mxu1 %v6512_v49  ;;  %v6567_v49 = vcombine.low %v1000_v32, %v1004_v36  ;;  %v6576_v52 = vcombine.high %v1008_v45, %v1012_v47  ;;  %v6573_v58 = vcombine.low %v1007_v42, %v1011_v44  ;;  %v7382_v32 = vld [vmem:[%s10617_s9 + $0x1c8] ss:$28 sps:$4 sm:$0xff]   ;;  %v7387_v36 = vld [vmem:[%s10617_s9 + $0x1fc] ss:$28 sps:$4 sm:$0xff]  }
 0x33a   :  { %2561 = vmatpush1.bf16.msra.mxu0 %v6509_v50  ;;  %v6574_v50 = vcombine.high %v1007_v42, %v1011_v44  ;;  %v7391_v42 = vld [vmem:[%s10617_s9 + $0x230] ss:$28 sps:$4 sm:$0xff]   ;;  %v7396_v44 = vld [vmem:[%s10617_s9 + $0x23c] ss:$28 sps:$4 sm:$0xff]  }
 0x33b   :  { %2643 = vmatpush1.bf16.msra.mxu1 %v6511_v55  ;;  %2562 = vmatprep.subr.bf16.mxu0 %v6518_v56  ;;  %v1019_v55 = vld [vmem:[%s10614_s7 + $0x7f0] sm:$0xff]  ;;  %v1016_v56 = vld [vmem:[%s10614_s7 + $0x7d8] sm:$0xff] }
 0x33c   :  { %2644 = vmatprep.subr.bf16.mxu1 %v6520_v59  ;;  %v6575_v59 = vcombine.low %v1008_v45, %v1012_v47  ;;  %v6584_v16 = vcombine.high %v1016_v56, %v1020_v57  ;;  %v7394_v45 = vld [vmem:[%s10617_s9 + $0x238] ss:$28 sps:$4 sm:$0xff]   ;;  %v7399_v47 = vld [vmem:[%s10617_s9 + $0x26c] ss:$28 sps:$4 sm:$0xff]  }
 0x33e   :  { %2563 = vmatpush1.bf16.msra.mxu0 %v6517_v60  ;;  %v6582_v60 = vcombine.high %v1015_v53, %v1019_v55 }
 0x33f   :  { %2645 = vmatpush1.bf16.msra.mxu1 %v6519_v1  ;;  %2564 = vmatprep.subr.bf16.mxu0 %v6526_v2  ;;  %v6581_v1 = vcombine.low %v1015_v53, %v1019_v55  ;;  %v6583_v2 = vcombine.low %v1016_v56, %v1020_v57  ;;  %v7403_v53 = vld [vmem:[%s10617_s9 + $0x2a0] ss:$28 sps:$4 sm:$0xff]   ;;  %v7408_v55 = vld [vmem:[%s10617_s9 + $0x2ac] ss:$28 sps:$4 sm:$0xff]  }
 0x340   :  { %2646 = vmatprep.subr.bf16.mxu1 %v6528_v5  ;;  %v7334_v5 = vld [vmem:[%s10617_s9 + $0x8] ss:$28 sps:$4 sm:$0xff]   ;;  %v7411_v57 = vld [vmem:[%s10617_s9 + $0x2dc] ss:$28 sps:$4 sm:$0xff]  }
 0x341   :  { %v7406_v56 = vld [vmem:[%s10617_s9 + $0x2a8] ss:$28 sps:$4 sm:$0xff]  }
 0x342   :  { %2565 = vmatpush1.bf16.msra.mxu0 %v6525_v6  ;;  %v7339_v6 = vld [vmem:[%s10617_s9 + $0x3c] ss:$28 sps:$4 sm:$0xff]  }
 0x343   :  { %2647 = vmatpush1.bf16.msra.mxu1 %v6527_v8  ;;  %2566 = vmatprep.subr.bf16.mxu0 %v6534_v9  ;;  %v7342_v8 = vld [vmem:[%s10617_s9 + $0x44] ss:$28 sps:$4 sm:$0xff]  }
 0x344   :  { %2648 = vmatprep.subr.bf16.mxu1 %v6536_v11  ;;  %v7340_v9 = vld [vmem:[%s10617_s9 + $0x40] ss:$28 sps:$4 sm:$0xff]   ;;  %v7343_v11 = vld [vmem:[%s10617_s9 + $0x70] ss:$28 sps:$4 sm:$0xff]  }
 0x346   :  { %2567 = vmatpush1.bf16.msra.mxu0 %v6533_v17  ;;  %v7349_v17 = vld [vmem:[%s10617_s9 + $0xa8] ss:$28 sps:$4 sm:$0xff]  }
 0x347   :  { %2649 = vmatpush1.bf16.msra.mxu1 %v6535_v14  ;;  %2568 = vmatprep.subr.bf16.mxu0 %v6542_v15  ;;  %v7354_v14 = vld [vmem:[%s10617_s9 + $0xb4] ss:$28 sps:$4 sm:$0xff]  }
 0x348   :  { %2650 = vmatprep.subr.bf16.mxu1 %v6544_v18  ;;  %v7352_v15 = vld [vmem:[%s10617_s9 + $0xb0] ss:$28 sps:$4 sm:$0xff]   ;;  %v7357_v18 = vld [vmem:[%s10617_s9 + $0xe4] ss:$28 sps:$4 sm:$0xff]  }
 0x34a   :  { %2569 = vmatpush1.bf16.msra.mxu0 %v6541_v21  ;;  %v7361_v21 = vld [vmem:[%s10617_s9 + $0x118] ss:$28 sps:$4 sm:$0xff]  }
 0x34b   :  { %2651 = vmatpush1.bf16.msra.mxu1 %v6543_v22  ;;  %2570 = vmatprep.subr.bf16.mxu0 %v6550_v23  ;;  %v7366_v22 = vld [vmem:[%s10617_s9 + $0x124] ss:$28 sps:$4 sm:$0xff]  }
 0x34c   :  { %2652 = vmatprep.subr.bf16.mxu1 %v6552_v24  ;;  %v7364_v23 = vld [vmem:[%s10617_s9 + $0x120] ss:$28 sps:$4 sm:$0xff]   ;;  %v7369_v24 = vld [vmem:[%s10617_s9 + $0x154] ss:$28 sps:$4 sm:$0xff]  }
 0x34e   :  { %2571 = vmatpush1.bf16.msra.mxu0 %v6549_v35  ;;  %v7373_v35 = vld [vmem:[%s10617_s9 + $0x188] ss:$28 sps:$4 sm:$0xff]  }
 0x34f   :  { %2653 = vmatpush1.bf16.msra.mxu1 %v6551_v25  ;;  %2572 = vmatprep.subr.bf16.mxu0 %v6558_v26  ;;  %v7378_v25 = vld [vmem:[%s10617_s9 + $0x194] ss:$28 sps:$4 sm:$0xff]  }
 0x350   :  { %2654 = vmatprep.subr.bf16.mxu1 %v6560_v27  ;;  %v7376_v26 = vld [vmem:[%s10617_s9 + $0x190] ss:$28 sps:$4 sm:$0xff]   ;;  %v7381_v27 = vld [vmem:[%s10617_s9 + $0x1c4] ss:$28 sps:$4 sm:$0xff]  }
 0x352   :  { %2573 = vmatpush1.bf16.msra.mxu0 %v6557_v37  ;;  %v7385_v37 = vld [vmem:[%s10617_s9 + $0x1f8] ss:$28 sps:$4 sm:$0xff]  }
 0x353   :  { %2655 = vmatpush1.bf16.msra.mxu1 %v6559_v38  ;;  %2574 = vmatprep.subr.bf16.mxu0 %v6566_v39  ;;  %v7390_v38 = vld [vmem:[%s10617_s9 + $0x204] ss:$28 sps:$4 sm:$0xff]  }
 0x354   :  { %2656 = vmatprep.subr.bf16.mxu1 %v6568_v40  ;;  %v7388_v39 = vld [vmem:[%s10617_s9 + $0x200] ss:$28 sps:$4 sm:$0xff]   ;;  %v7393_v40 = vld [vmem:[%s10617_s9 + $0x234] ss:$28 sps:$4 sm:$0xff]  }
 0x356   :  { %2575 = vmatpush1.bf16.msra.mxu0 %v6565_v48  ;;  %v7397_v48 = vld [vmem:[%s10617_s9 + $0x268] ss:$28 sps:$4 sm:$0xff]  }
 0x357   :  { %2657 = vmatpush1.bf16.msra.mxu1 %v6567_v49  ;;  %2576 = vmatprep.subr.bf16.mxu0 %v6574_v50  ;;  %v7402_v49 = vld [vmem:[%s10617_s9 + $0x274] ss:$28 sps:$4 sm:$0xff]  }
 0x358   :  { %2658 = vmatprep.subr.bf16.mxu1 %v6576_v52  ;;  %v7400_v50 = vld [vmem:[%s10617_s9 + $0x270] ss:$28 sps:$4 sm:$0xff]   ;;  %v7405_v52 = vld [vmem:[%s10617_s9 + $0x2a4] ss:$28 sps:$4 sm:$0xff]  }
 0x35a   :  { %2577 = vmatpush1.bf16.msra.mxu0 %v6573_v58  ;;  %v7409_v58 = vld [vmem:[%s10617_s9 + $0x2d8] ss:$28 sps:$4 sm:$0xff]  }
 0x35b   :  { %2659 = vmatpush1.bf16.msra.mxu1 %v6575_v59  ;;  %2578 = vmatprep.subr.bf16.mxu0 %v6582_v60  ;;  %v7414_v59 = vld [vmem:[%s10617_s9 + $0x2e4] ss:$28 sps:$4 sm:$0xff]  }
 0x35c   :  { %2660 = vmatprep.subr.bf16.mxu1 %v6584_v16  ;;  %v7412_v60 = vld [vmem:[%s10617_s9 + $0x2e0] ss:$28 sps:$4 sm:$0xff]   ;;  %v7417_v16 = vld [vmem:[%s10617_s9 + $0x314] ss:$28 sps:$4 sm:$0xff]  }
 0x35e   :  { %2579 = vmatpush1.bf16.msra.mxu0 %v6581_v1  ;;  %v7420_v1 = vld [vmem:[%s10617_s9 + $0x31c] ss:$28 sps:$4 sm:$0xff]  }
 0x35f   :  { %2661 = vmatpush1.bf16.msra.mxu1 %v6583_v2  ;;  %5548 = vmatprep.subr.bf16.mxu0 %v7333_v62  ;;  %v7415_v62 = vld [vmem:[%s10617_s9 + $0x310] ss:$28 sps:$4 sm:$0xff]   ;;  %v7418_v2 = vld [vmem:[%s10617_s9 + $0x318] ss:$28 sps:$4 sm:$0xff]  }
 0x360   :  { %5712 = vmatprep.subr.bf16.mxu1 %v7336_v4  ;;  %v7421_v4 = vld [vmem:[%s10617_s9 + $0x348] ss:$28 sps:$4 sm:$0xff]  }
 0x361   :  { %2581 = vmatmul.mubr.bf16.vlgmr.msra.gmra.mrb[8].mxu0 %v8776_v43 }
 0x362   :  { %2663 = vmatmul.mubr.bf16.vlgmr.msra.gmra.mrb[16].mxu1 %v8776_v43  ;;  %5549 = vmatpush1.bf16.msra.mxu0 %v7331_v3  ;;  %v7351_v43 = vld [vmem:[%s10617_s9 + $0xac] ss:$28 sps:$4 sm:$0xff]  }
 0x363   :  { %5713 = vmatpush1.bf16.msra.mxu1 %v7334_v5  ;;  %5550 = vmatprep.subr.bf16.mxu0 %v7339_v6  ;;  %v7423_v3 = vld [vmem:[%s10617_s9 + $0x34c] ss:$28 sps:$4 sm:$0xff]   ;;  %v7426_v5 = vld [vmem:[%s10617_s9 + $0x354] ss:$28 sps:$4 sm:$0xff]  }
 0x364   :  { %5714 = vmatprep.subr.bf16.mxu1 %v7342_v8  ;;  %v7424_v6 = vld [vmem:[%s10617_s9 + $0x350] ss:$28 sps:$4 sm:$0xff]  }
 0x365   :  { %v7432_v8 = vld [vmem:[%s10617_s9 + $0x38c] ss:$28 sps:$4 sm:$0xff]  }
 0x366   :  { %5551 = vmatpush1.bf16.msra.mxu0 %v7337_v7  ;;  %v7429_v7 = vld [vmem:[%s10617_s9 + $0x384] ss:$28 sps:$4 sm:$0xff]  }
 0x367   :  { %5715 = vmatpush1.bf16.msra.mxu1 %v7340_v9  ;;  %5552 = vmatprep.subr.bf16.mxu0 %v7345_v10  ;;  %v9351_v9 = vld [vmem:[%s10618_s8] sm:$0xff] }
 0x368   :  { %5716 = vmatprep.subr.bf16.mxu1 %v7348_v12  ;;  %v1026_v10 = vrot.slane %v9351_v9, %v8288_v51  ;;  %v1038_v12 = vrot.slane %v9351_v9, %v8723_v0 }
 0x36a   :  { %5553 = vmatpush1.bf16.msra.mxu0 %v7343_v11  ;;  %v1030_v11 = vrot.slane %v9351_v9, %v8294_v54 }
 0x36b   :  { %5717 = vmatpush1.bf16.msra.mxu1 %v7346_v13  ;;  %5554 = vmatprep.subr.bf16.mxu0 %v7351_v43 }
 0x36c   :  { %5718 = vmatprep.subr.bf16.mxu1 %v7354_v14 }
 0x36e   :  { %5555 = vmatpush1.bf16.msra.mxu0 %v7349_v17 }
 0x36f   :  { %5719 = vmatpush1.bf16.msra.mxu1 %v7352_v15  ;;  %5556 = vmatprep.subr.bf16.mxu0 %v7357_v18 }
 0x370   :  { %5720 = vmatprep.subr.bf16.mxu1 %v7360_v20 }
 0x372   :  { %5557 = vmatpush1.bf16.msra.mxu0 %v7355_v19 }
 0x373   :  { %5721 = vmatpush1.bf16.msra.mxu1 %v7358_v63  ;;  %5558 = vmatprep.subr.bf16.mxu0 %v7363_v41 }
 0x374   :  { %5722 = vmatprep.subr.bf16.mxu1 %v7366_v22 }
 0x376   :  { %5559 = vmatpush1.bf16.msra.mxu0 %v7361_v21 }
 0x377   :  { %5723 = vmatpush1.bf16.msra.mxu1 %v7364_v23  ;;  %5560 = vmatprep.subr.bf16.mxu0 %v7369_v24 }
 0x378   :  { %5724 = vmatprep.subr.bf16.mxu1 %v7372_v30 }
 0x37a   :  { %5561 = vmatpush1.bf16.msra.mxu0 %v7367_v28 }
 0x37b   :  { %5725 = vmatpush1.bf16.msra.mxu1 %v7370_v33  ;;  %5562 = vmatprep.subr.bf16.mxu0 %v7375_v34  ;;  %v7427_v34 = vld [vmem:[%s10617_s9 + $0x380] ss:$28 sps:$4 sm:$0xff]  }
 0x37c   :  { %5726 = vmatprep.subr.bf16.mxu1 %v7378_v25 }
 0x37e   :  { %5563 = vmatpush1.bf16.msra.mxu0 %v7373_v35  ;;  %v7430_v35 = vld [vmem:[%s10617_s9 + $0x388] ss:$28 sps:$4 sm:$0xff]  }
 0x37f   :  { %5727 = vmatpush1.bf16.msra.mxu1 %v7376_v26  ;;  %5564 = vmatprep.subr.bf16.mxu0 %v7381_v27  ;;  %v7433_v27 = vld [vmem:[%s10617_s9 + $0x3b8] ss:$28 sps:$4 sm:$0xff]  }
 0x380   :  { %5728 = vmatprep.subr.bf16.mxu1 %v7384_v29  ;;  %v7435_v29 = vld [vmem:[%s10617_s9 + $0x3bc] ss:$28 sps:$4 sm:$0xff]  }
 0x382   :  { %5565 = vmatpush1.bf16.msra.mxu0 %v7379_v31  ;;  %v7438_v31 = vld [vmem:[%s10617_s9 + $0x3c4] ss:$28 sps:$4 sm:$0xff]  }
 0x383   :  { %5729 = vmatpush1.bf16.msra.mxu1 %v7382_v32  ;;  %5566 = vmatprep.subr.bf16.mxu0 %v7387_v36  ;;  %v7436_v36 = vld [vmem:[%s10617_s9 + $0x3c0] ss:$28 sps:$4 sm:$0xff]  }
 0x384   :  { %5730 = vmatprep.subr.bf16.mxu1 %v7390_v38  ;;  %v7444_v38 = vld [vmem:[%s10617_s9 + $0x3fc] ss:$28 sps:$4 sm:$0xff]  }
 0x386   :  { %5567 = vmatpush1.bf16.msra.mxu0 %v7385_v37  ;;  %v7441_v37 = vld [vmem:[%s10617_s9 + $0x3f4] ss:$28 sps:$4 sm:$0xff]  }
 0x387   :  { %5731 = vmatpush1.bf16.msra.mxu1 %v7388_v39  ;;  %5568 = vmatprep.subr.bf16.mxu0 %v7393_v40  ;;  %v7439_v39 = vld [vmem:[%s10617_s9 + $0x3f0] ss:$28 sps:$4 sm:$0xff]   ;;  %v7442_v40 = vld [vmem:[%s10617_s9 + $0x3f8] ss:$28 sps:$4 sm:$0xff]  }
 0x388   :  { %5732 = vmatprep.subr.bf16.mxu1 %v7396_v44  ;;  %v7450_v44 = vld [vmem:[%s10617_s9 + $0x434] ss:$28 sps:$4 sm:$0xff]  }
 0x38a   :  { %5569 = vmatpush1.bf16.msra.mxu0 %v7391_v42  ;;  %v7447_v42 = vld [vmem:[%s10617_s9 + $0x42c] ss:$28 sps:$4 sm:$0xff]  }
 0x38b   :  { %5733 = vmatpush1.bf16.msra.mxu1 %v7394_v45  ;;  %5570 = vmatprep.subr.bf16.mxu0 %v7399_v47  ;;  %v7445_v45 = vld [vmem:[%s10617_s9 + $0x428] ss:$28 sps:$4 sm:$0xff]   ;;  %v7448_v47 = vld [vmem:[%s10617_s9 + $0x430] ss:$28 sps:$4 sm:$0xff]  }
 0x38c   :  { %5734 = vmatprep.subr.bf16.mxu1 %v7402_v49  ;;  %v7456_v49 = vld [vmem:[%s10617_s9 + $0x46c] ss:$28 sps:$4 sm:$0xff]  }
 0x38e   :  { %5571 = vmatpush1.bf16.msra.mxu0 %v7397_v48  ;;  %v7453_v48 = vld [vmem:[%s10617_s9 + $0x464] ss:$28 sps:$4 sm:$0xff]  }
 0x38f   :  { %5735 = vmatpush1.bf16.msra.mxu1 %v7400_v50  ;;  %5572 = vmatprep.subr.bf16.mxu0 %v7405_v52  ;;  %v7451_v50 = vld [vmem:[%s10617_s9 + $0x460] ss:$28 sps:$4 sm:$0xff]   ;;  %v7454_v52 = vld [vmem:[%s10617_s9 + $0x468] ss:$28 sps:$4 sm:$0xff]  }
 0x390   :  { %5736 = vmatprep.subr.bf16.mxu1 %v7408_v55  ;;  %v7462_v55 = vld [vmem:[%s10617_s9 + $0x4a4] ss:$28 sps:$4 sm:$0xff]  }
 0x392   :  { %5573 = vmatpush1.bf16.msra.mxu0 %v7403_v53  ;;  %v7459_v53 = vld [vmem:[%s10617_s9 + $0x49c] ss:$28 sps:$4 sm:$0xff]  }
 0x393   :  { %5737 = vmatpush1.bf16.msra.mxu1 %v7406_v56  ;;  %5574 = vmatprep.subr.bf16.mxu0 %v7411_v57  ;;  %v7457_v56 = vld [vmem:[%s10617_s9 + $0x498] ss:$28 sps:$4 sm:$0xff]   ;;  %v7460_v57 = vld [vmem:[%s10617_s9 + $0x4a0] ss:$28 sps:$4 sm:$0xff]  }
 0x394   :  { %5738 = vmatprep.subr.bf16.mxu1 %v7414_v59  ;;  %v7468_v59 = vld [vmem:[%s10617_s9 + $0x4dc] ss:$28 sps:$4 sm:$0xff]  }
 0x396   :  { %5575 = vmatpush1.bf16.msra.mxu0 %v7409_v58  ;;  %v7465_v58 = vld [vmem:[%s10617_s9 + $0x4d4] ss:$28 sps:$4 sm:$0xff]  }
 0x397   :  { %5739 = vmatpush1.bf16.msra.mxu1 %v7412_v60  ;;  %5576 = vmatprep.subr.bf16.mxu0 %v7417_v16  ;;  %v7463_v60 = vld [vmem:[%s10617_s9 + $0x4d0] ss:$28 sps:$4 sm:$0xff]   ;;  %v7466_v16 = vld [vmem:[%s10617_s9 + $0x4d8] ss:$28 sps:$4 sm:$0xff]  }
 0x398   :  { %5740 = vmatprep.subr.bf16.mxu1 %v7420_v1  ;;  %v7474_v1 = vld [vmem:[%s10617_s9 + $0x514] ss:$28 sps:$4 sm:$0xff]  }
 0x39a   :  { %5577 = vmatpush1.bf16.msra.mxu0 %v7415_v62  ;;  %v7471_v62 = vld [vmem:[%s10617_s9 + $0x50c] ss:$28 sps:$4 sm:$0xff]  }
 0x39b   :  { %5741 = vmatpush1.bf16.msra.mxu1 %v7418_v2  ;;  %5578 = vmatprep.subr.bf16.mxu0 %v7423_v3  ;;  %v7469_v2 = vld [vmem:[%s10617_s9 + $0x508] ss:$28 sps:$4 sm:$0xff]   ;;  %v7472_v3 = vld [vmem:[%s10617_s9 + $0x510] ss:$28 sps:$4 sm:$0xff]  }
 0x39c   :  { %5742 = vmatprep.subr.bf16.mxu1 %v7426_v5  ;;  %v7480_v5 = vld [vmem:[%s10617_s9 + $0x54c] ss:$28 sps:$4 sm:$0xff]  }
 0x39e   :  { %5579 = vmatpush1.bf16.msra.mxu0 %v7421_v4  ;;  %v7477_v4 = vld [vmem:[%s10617_s9 + $0x544] ss:$28 sps:$4 sm:$0xff]  }
 0x39f   :  { %5743 = vmatpush1.bf16.msra.mxu1 %v7424_v6  ;;  %5589 = vmatprep.subr.bf16.mxu0 %v7429_v7  ;;  %v7475_v6 = vld [vmem:[%s10617_s9 + $0x540] ss:$28 sps:$4 sm:$0xff]   ;;  %v7478_v7 = vld [vmem:[%s10617_s9 + $0x548] ss:$28 sps:$4 sm:$0xff]  }
 0x3a0   :  { %5753 = vmatprep.subr.bf16.mxu1 %v7432_v8  ;;  %v7483_v8 = vld [vmem:[%s10617_s9 + $0x57c] ss:$28 sps:$4 sm:$0xff]  }
 0x3b4   :  { %v2418_v13 = vpop.f32.mrb[4].mxu0  ;;  %v9359_v43 = vpop.f32.mrb[12].mxu1 }
 0x3b5   :  { %v7140_v17 = vadd.f32 %v2418_v13, %v1026_v10  ;;  %v2420_v14 = vpop.f32.mrb[5].mxu0  ;;  %v2502_v15 = vpop.f32.mrb[13].mxu1  ;;  %v7486_v10 = vld [vmem:[%s10617_s9 + $0x584] ss:$28 sps:$4 sm:$0xff]   ;;  %v7489_v13 = vld [vmem:[%s10617_s9 + $0x5b4] ss:$28 sps:$4 sm:$0xff]  }
 0x3b6   :  { %v7141_v18 = vadd.f32 %v2420_v14, %v1030_v11  ;;  %v7143_v19 = vadd.f32 %v2502_v15, %v1038_v12  ;;  %v2422_v20 = vpop.f32.mrb[6].mxu0  ;;  %v2504_v63 = vpop.f32.mrb[14].mxu1  ;;  %v7481_v11 = vld [vmem:[%s10617_s9 + $0x578] ss:$28 sps:$4 sm:$0xff]   ;;  %v7484_v12 = vld [vmem:[%s10617_s9 + $0x580] ss:$28 sps:$4 sm:$0xff]  }
 0x3b7   :  { %v2671_v41 = vmul.f32 0.2, %v7140_v17  ;;  %v2423_v21 = vpop.f32.mrb[7].mxu0  ;;  %v2505_v22 = vpop.f32.mrb[15].mxu1  ;;  %v7487_v14 = vld [vmem:[%s10617_s9 + $0x5b0] ss:$28 sps:$4 sm:$0xff]  }
 0x3b8   :  { %v2672_v23 = vmul.f32 0.2, %v7141_v18  ;;  %v2674_v24 = vmul.f32 0.2, %v7143_v19  ;;  %v7490_v15 = vld [vmem:[%s10617_s9 + $0x5b8] ss:$28 sps:$4 sm:$0xff]  }
 0x3b9   :  { %v2679_v28 = vmax.f32 %v7140_v17, %v2671_v41  ;;  %v7492_v17 = vld [vmem:[%s10617_s9 + $0x5bc] ss:$28 sps:$4 sm:$0xff]   ;;  %v7493_v20 = vld [vmem:[%s10617_s9 + $0x5e8] ss:$28 sps:$4 sm:$0xff]   ;;  %v7496_v63 = vld [vmem:[%s10617_s9 + $0x5f0] ss:$28 sps:$4 sm:$0xff]  }
 0x3ba   :  { %v2680_v30 = vmax.f32 %v7141_v18, %v2672_v23  ;;  %v2682_v33 = vmax.f32 %v7143_v19, %v2674_v24  ;;  %v7495_v18 = vld [vmem:[%s10617_s9 + $0x5ec] ss:$28 sps:$4 sm:$0xff]   ;;  %v7498_v19 = vld [vmem:[%s10617_s9 + $0x5f4] ss:$28 sps:$4 sm:$0xff]   ;;  %v7501_v41 = vld [vmem:[%s10617_s9 + $0x624] ss:$28 sps:$4 sm:$0xff]   ;;  %v1034_v24 = vrot.slane %v9351_v9, %v8717_v61 }
 0x3bb   :  { %v9369_v26 = vpack.c.bf16 %v2679_v28, %v2679_v28  ;;  %v7504_v21 = vld [vmem:[%s10617_s9 + $0x62c] ss:$28 sps:$4 sm:$0xff]   ;;  %v7499_v22 = vld [vmem:[%s10617_s9 + $0x620] ss:$28 sps:$4 sm:$0xff]  }
 0x3bc   :  { %v9367_v25 = vpack.c.bf16 %v2680_v30, %v2680_v30  ;;  %v9382_v32 = vpack.c.bf16 %v2682_v33, %v2682_v33  ;;  %v7502_v23 = vld [vmem:[%s10617_s9 + $0x628] ss:$28 sps:$4 sm:$0xff]   ;;  %v7507_v28 = vld [vmem:[%s10617_s9 + $0x65c] ss:$28 sps:$4 sm:$0xff]  }
 0x3bd   :  { %v7510_v30 = vld [vmem:[%s10617_s9 + $0x664] ss:$28 sps:$4 sm:$0xff]   ;;  %v7505_v33 = vld [vmem:[%s10617_s9 + $0x658] ss:$28 sps:$4 sm:$0xff]  }
 0x3be   :  { %5580 = vmatprep.mubr.bf16.mxu0 %v9367_v25  ;;  %5744 = vmatprep.mubr.bf16.mxu1 %v9367_v25 }
 0x3bf   :  { %5581 = vmatmul.mubr.bf16.vlgmr.msra.gmra.mrb[12].mxu0 %v9369_v26  ;;  %5745 = vmatmul.mubr.bf16.vlgmr.msra.gmra.mrb[20].mxu1 %v9369_v26 }
 0x3c0   :  { %5590 = vmatpush1.bf16.msra.mxu0 %v7427_v34  ;;  %5754 = vmatpush1.bf16.msra.mxu1 %v7430_v35  ;;  %v7508_v34 = vld [vmem:[%s10617_s9 + $0x660] ss:$28 sps:$4 sm:$0xff]   ;;  %v7142_v35 = vadd.f32 %v9359_v43, %v1034_v24  ;;  %v7514_v43 = vld [vmem:[%s10617_s9 + $0x698] ss:$28 sps:$4 sm:$0xff]  }
 0x3c1   :  { %5621 = vmatprep.mubr.bf16.mxu0 %v9382_v32  ;;  %5785 = vmatprep.mubr.bf16.mxu1 %v9382_v32  ;;  %v7577_v24 = vld [vmem:[%s10617_s9 + $0x8f8] ss:$28 sps:$4 sm:$0xff]  }
 0x3c2   :  { %5591 = vmatprep.subr.bf16.mxu0 %v7435_v29  ;;  %5755 = vmatprep.subr.bf16.mxu1 %v7438_v31  ;;  %v7516_v29 = vld [vmem:[%s10617_s9 + $0x69c] ss:$28 sps:$4 sm:$0xff]   ;;  %v7511_v31 = vld [vmem:[%s10617_s9 + $0x690] ss:$28 sps:$4 sm:$0xff]  }
 0x3c4   :  { %5592 = vmatpush1.bf16.msra.mxu0 %v7433_v27  ;;  %5756 = vmatpush1.bf16.msra.mxu1 %v7436_v36  ;;  %v7513_v27 = vld [vmem:[%s10617_s9 + $0x694] ss:$28 sps:$4 sm:$0xff]   ;;  %v2673_v36 = vmul.f32 0.2, %v7142_v35 }
 0x3c5   :  { %5593 = vmatprep.subr.bf16.mxu0 %v7441_v37  ;;  %5757 = vmatprep.subr.bf16.mxu1 %v7444_v38  ;;  %v7519_v37 = vld [vmem:[%s10617_s9 + $0x6cc] ss:$28 sps:$4 sm:$0xff]   ;;  %v7522_v38 = vld [vmem:[%s10617_s9 + $0x6d4] ss:$28 sps:$4 sm:$0xff]  }
 0x3c8   :  { %5594 = vmatpush1.bf16.msra.mxu0 %v7439_v39  ;;  %5758 = vmatpush1.bf16.msra.mxu1 %v7442_v40  ;;  %v7517_v39 = vld [vmem:[%s10617_s9 + $0x6c8] ss:$28 sps:$4 sm:$0xff]   ;;  %v7520_v40 = vld [vmem:[%s10617_s9 + $0x6d0] ss:$28 sps:$4 sm:$0xff]  }
 0x3c9   :  { %5595 = vmatprep.subr.bf16.mxu0 %v7447_v42  ;;  %5759 = vmatprep.subr.bf16.mxu1 %v7450_v44  ;;  %v2681_v42 = vmax.f32 %v7142_v35, %v2673_v36  ;;  %v7525_v44 = vld [vmem:[%s10617_s9 + $0x704] ss:$28 sps:$4 sm:$0xff]   ;;  %v7586_v35 = vld [vmem:[%s10617_s9 + $0x938] ss:$28 sps:$4 sm:$0xff]  }
 0x3ca   :  { %v7597_v36 = vld [vmem:[%s10617_s9 + $0x9a4] ss:$28 sps:$4 sm:$0xff]  }
 0x3cc   :  { %5596 = vmatpush1.bf16.msra.mxu0 %v7445_v45  ;;  %5760 = vmatpush1.bf16.msra.mxu1 %v7448_v47  ;;  %v7528_v45 = vld [vmem:[%s10617_s9 + $0x70c] ss:$28 sps:$4 sm:$0xff]   ;;  %v7523_v47 = vld [vmem:[%s10617_s9 + $0x700] ss:$28 sps:$4 sm:$0xff]  }
 0x3cd   :  { %5597 = vmatprep.subr.bf16.mxu0 %v7453_v48  ;;  %5761 = vmatprep.subr.bf16.mxu1 %v7456_v49  ;;  %v7526_v48 = vld [vmem:[%s10617_s9 + $0x708] ss:$28 sps:$4 sm:$0xff]   ;;  %v9574_v49 = vpack.c.bf16 %v2681_v42, %v2681_v42 }
 0x3ce   :  { %v7606_v42 = vld [vmem:[%s10617_s9 + $0x9e4] ss:$28 sps:$4 sm:$0xff]  }
 0x3d0   :  { %5598 = vmatpush1.bf16.msra.mxu0 %v7451_v50  ;;  %5762 = vmatpush1.bf16.msra.mxu1 %v7454_v52  ;;  %v7531_v50 = vld [vmem:[%s10617_s9 + $0x73c] ss:$28 sps:$4 sm:$0xff]   ;;  %v7534_v52 = vld [vmem:[%s10617_s9 + $0x744] ss:$28 sps:$4 sm:$0xff]  }
 0x3d1   :  { %5599 = vmatprep.subr.bf16.mxu0 %v7459_v53  ;;  %5763 = vmatprep.subr.bf16.mxu1 %v7462_v55  ;;  %v7529_v53 = vld [vmem:[%s10617_s9 + $0x738] ss:$28 sps:$4 sm:$0xff]   ;;  %v7532_v55 = vld [vmem:[%s10617_s9 + $0x740] ss:$28 sps:$4 sm:$0xff]  }
 0x3d4   :  { %5600 = vmatpush1.bf16.msra.mxu0 %v7457_v56  ;;  %5764 = vmatpush1.bf16.msra.mxu1 %v7460_v57  ;;  %v7537_v56 = vld [vmem:[%s10617_s9 + $0x774] ss:$28 sps:$4 sm:$0xff]   ;;  %v7540_v57 = vld [vmem:[%s10617_s9 + $0x77c] ss:$28 sps:$4 sm:$0xff]  }
 0x3d5   :  { %5601 = vmatprep.subr.bf16.mxu0 %v7465_v58  ;;  %5765 = vmatprep.subr.bf16.mxu1 %v7468_v59  ;;  %v7535_v58 = vld [vmem:[%s10617_s9 + $0x770] ss:$28 sps:$4 sm:$0xff]   ;;  %v7538_v59 = vld [vmem:[%s10617_s9 + $0x778] ss:$28 sps:$4 sm:$0xff]  }
 0x3d8   :  { %5602 = vmatpush1.bf16.msra.mxu0 %v7463_v60  ;;  %5766 = vmatpush1.bf16.msra.mxu1 %v7466_v16  ;;  %v7543_v60 = vld [vmem:[%s10617_s9 + $0x7ac] ss:$28 sps:$4 sm:$0xff]   ;;  %v7546_v16 = vld [vmem:[%s10617_s9 + $0x7b4] ss:$28 sps:$4 sm:$0xff]  }
 0x3d9   :  { %5603 = vmatprep.subr.bf16.mxu0 %v7471_v62  ;;  %5767 = vmatprep.subr.bf16.mxu1 %v7474_v1  ;;  %v7541_v62 = vld [vmem:[%s10617_s9 + $0x7a8] ss:$28 sps:$4 sm:$0xff]   ;;  %v7544_v1 = vld [vmem:[%s10617_s9 + $0x7b0] ss:$28 sps:$4 sm:$0xff]  }
 0x3dc   :  { %5604 = vmatpush1.bf16.msra.mxu0 %v7469_v2  ;;  %5768 = vmatpush1.bf16.msra.mxu1 %v7472_v3  ;;  %v7549_v2 = vld [vmem:[%s10617_s9 + $0x7e4] ss:$28 sps:$4 sm:$0xff]   ;;  %v7552_v3 = vld [vmem:[%s10617_s9 + $0x7ec] ss:$28 sps:$4 sm:$0xff]  }
 0x3dd   :  { %5605 = vmatprep.subr.bf16.mxu0 %v7477_v4  ;;  %5769 = vmatprep.subr.bf16.mxu1 %v7480_v5  ;;  %v7547_v4 = vld [vmem:[%s10617_s9 + $0x7e0] ss:$28 sps:$4 sm:$0xff]   ;;  %v7550_v5 = vld [vmem:[%s10617_s9 + $0x7e8] ss:$28 sps:$4 sm:$0xff]  }
 0x3e0   :  { %5606 = vmatpush1.bf16.msra.mxu0 %v7475_v6  ;;  %5770 = vmatpush1.bf16.msra.mxu1 %v7478_v7  ;;  %v7555_v6 = vld [vmem:[%s10617_s9 + $0x81c] ss:$28 sps:$4 sm:$0xff]   ;;  %v7558_v7 = vld [vmem:[%s10617_s9 + $0x824] ss:$28 sps:$4 sm:$0xff]  }
 0x3e1   :  { %5607 = vmatprep.subr.bf16.mxu0 %v7483_v8  ;;  %5771 = vmatprep.subr.bf16.mxu1 %v7486_v10  ;;  %v7553_v8 = vld [vmem:[%s10617_s9 + $0x818] ss:$28 sps:$4 sm:$0xff]   ;;  %v7556_v10 = vld [vmem:[%s10617_s9 + $0x820] ss:$28 sps:$4 sm:$0xff]  }
 0x3e4   :  { %5608 = vmatpush1.bf16.msra.mxu0 %v7481_v11  ;;  %5772 = vmatpush1.bf16.msra.mxu1 %v7484_v12  ;;  %v7561_v11 = vld [vmem:[%s10617_s9 + $0x854] ss:$28 sps:$4 sm:$0xff]   ;;  %v7564_v12 = vld [vmem:[%s10617_s9 + $0x85c] ss:$28 sps:$4 sm:$0xff]  }
 0x3e5   :  { %5609 = vmatprep.subr.bf16.mxu0 %v7489_v13  ;;  %5773 = vmatprep.subr.bf16.mxu1 %v7492_v17  ;;  %v7559_v13 = vld [vmem:[%s10617_s9 + $0x850] ss:$28 sps:$4 sm:$0xff]   ;;  %v7562_v17 = vld [vmem:[%s10617_s9 + $0x858] ss:$28 sps:$4 sm:$0xff]  }
 0x3e8   :  { %5610 = vmatpush1.bf16.msra.mxu0 %v7487_v14  ;;  %5774 = vmatpush1.bf16.msra.mxu1 %v7490_v15  ;;  %v7567_v14 = vld [vmem:[%s10617_s9 + $0x88c] ss:$28 sps:$4 sm:$0xff]   ;;  %v7570_v15 = vld [vmem:[%s10617_s9 + $0x894] ss:$28 sps:$4 sm:$0xff]  }
 0x3e9   :  { %5611 = vmatprep.subr.bf16.mxu0 %v7495_v18  ;;  %5775 = vmatprep.subr.bf16.mxu1 %v7498_v19  ;;  %v7565_v18 = vld [vmem:[%s10617_s9 + $0x888] ss:$28 sps:$4 sm:$0xff]   ;;  %v7568_v19 = vld [vmem:[%s10617_s9 + $0x890] ss:$28 sps:$4 sm:$0xff]  }
 0x3ec   :  { %5612 = vmatpush1.bf16.msra.mxu0 %v7493_v20  ;;  %5776 = vmatpush1.bf16.msra.mxu1 %v7496_v63  ;;  %v7573_v20 = vld [vmem:[%s10617_s9 + $0x8c4] ss:$28 sps:$4 sm:$0xff]   ;;  %v7576_v63 = vld [vmem:[%s10617_s9 + $0x8cc] ss:$28 sps:$4 sm:$0xff]  }
 0x3ed   :  { %5613 = vmatprep.subr.bf16.mxu0 %v7501_v41  ;;  %5777 = vmatprep.subr.bf16.mxu1 %v7504_v21  ;;  %v7571_v41 = vld [vmem:[%s10617_s9 + $0x8c0] ss:$28 sps:$4 sm:$0xff]   ;;  %v7574_v21 = vld [vmem:[%s10617_s9 + $0x8c8] ss:$28 sps:$4 sm:$0xff]  }
 0x3f0   :  { %5614 = vmatpush1.bf16.msra.mxu0 %v7499_v22  ;;  %5778 = vmatpush1.bf16.msra.mxu1 %v7502_v23  ;;  %v7579_v22 = vld [vmem:[%s10617_s9 + $0x8fc] ss:$28 sps:$4 sm:$0xff]   ;;  %v7582_v23 = vld [vmem:[%s10617_s9 + $0x904] ss:$28 sps:$4 sm:$0xff]  }
 0x3f1   :  { %5615 = vmatprep.subr.bf16.mxu0 %v7507_v28  ;;  %5779 = vmatprep.subr.bf16.mxu1 %v7510_v30  ;;  %v7580_v28 = vld [vmem:[%s10617_s9 + $0x900] ss:$28 sps:$4 sm:$0xff]   ;;  %v7585_v30 = vld [vmem:[%s10617_s9 + $0x934] ss:$28 sps:$4 sm:$0xff]  }
 0x3f4   :  { %5616 = vmatpush1.bf16.msra.mxu0 %v7505_v33  ;;  %5780 = vmatpush1.bf16.msra.mxu1 %v7508_v34  ;;  %v7588_v33 = vld [vmem:[%s10617_s9 + $0x93c] ss:$28 sps:$4 sm:$0xff]   ;;  %v7583_v34 = vld [vmem:[%s10617_s9 + $0x930] ss:$28 sps:$4 sm:$0xff]  }
 0x3f5   :  { %5617 = vmatprep.subr.bf16.mxu0 %v7513_v27  ;;  %5781 = vmatprep.subr.bf16.mxu1 %v7516_v29  ;;  %v7591_v27 = vld [vmem:[%s10617_s9 + $0x96c] ss:$28 sps:$4 sm:$0xff]   ;;  %v7594_v29 = vld [vmem:[%s10617_s9 + $0x974] ss:$28 sps:$4 sm:$0xff]  }
 0x3f8   :  { %5618 = vmatpush1.bf16.msra.mxu0 %v7511_v31  ;;  %5782 = vmatpush1.bf16.msra.mxu1 %v7514_v43  ;;  %v7589_v31 = vld [vmem:[%s10617_s9 + $0x968] ss:$28 sps:$4 sm:$0xff]   ;;  %v7592_v43 = vld [vmem:[%s10617_s9 + $0x970] ss:$28 sps:$4 sm:$0xff]  }
 0x3f9   :  { %5619 = vmatprep.subr.bf16.mxu0 %v7519_v37  ;;  %5783 = vmatprep.subr.bf16.mxu1 %v7522_v38  ;;  %v7600_v37 = vld [vmem:[%s10617_s9 + $0x9ac] ss:$28 sps:$4 sm:$0xff]   ;;  %v7595_v38 = vld [vmem:[%s10617_s9 + $0x9a0] ss:$28 sps:$4 sm:$0xff]  }
 0x3fc   :  { %5620 = vmatpush1.bf16.msra.mxu0 %v7517_v39  ;;  %5784 = vmatpush1.bf16.msra.mxu1 %v7520_v40  ;;  %v7598_v39 = vld [vmem:[%s10617_s9 + $0x9a8] ss:$28 sps:$4 sm:$0xff]   ;;  %v7603_v40 = vld [vmem:[%s10617_s9 + $0x9dc] ss:$28 sps:$4 sm:$0xff]  }
 0x3fd   :  { %5630 = vmatprep.subr.bf16.mxu0 %v7525_v44  ;;  %5794 = vmatprep.subr.bf16.mxu1 %v7528_v45  ;;  %v1041_v44 = vsub.s32 4, %v8279_v46  ;;  %v1045_v45 = vsub.s32 5, %v8279_v46 }
 0x3ff   :  { %5622 = vmatmul.mubr.bf16.vlgmr.msra.gmra.mrb[12].mxu0 %v9574_v49  ;;  %5786 = vmatmul.mubr.bf16.vlgmr.msra.gmra.mrb[20].mxu1 %v9574_v49 }
 0x400   :  { %5631 = vmatpush1.bf16.msra.mxu0 %v7523_v47  ;;  %5795 = vmatpush1.bf16.msra.mxu1 %v7526_v48  ;;  %v1053_v47 = vsub.s32 7, %v8279_v46  ;;  %v7601_v48 = vld [vmem:[%s10617_s9 + $0x9d8] ss:$28 sps:$4 sm:$0xff]  }
 0x401   :  { %5632 = vmatprep.subr.bf16.mxu0 %v7531_v50  ;;  %5796 = vmatprep.subr.bf16.mxu1 %v7534_v52  ;;  %v7604_v50 = vld [vmem:[%s10617_s9 + $0x9e0] ss:$28 sps:$4 sm:$0xff]   ;;  %v1042_v52 = vrot.slane %v9351_v9, %v1041_v44 }
 0x404   :  { %5633 = vmatpush1.bf16.msra.mxu0 %v7529_v53  ;;  %5797 = vmatpush1.bf16.msra.mxu1 %v7532_v55  ;;  %v7609_v53 = vld [vmem:[%s10617_s9 + $0xa14] ss:$28 sps:$4 sm:$0xff]   ;;  %v7612_v55 = vld [vmem:[%s10617_s9 + $0xa1c] ss:$28 sps:$4 sm:$0xff]  }
 0x405   :  { %5634 = vmatprep.subr.bf16.mxu0 %v7537_v56  ;;  %5798 = vmatprep.subr.bf16.mxu1 %v7540_v57  ;;  %v1046_v56 = vrot.slane %v9351_v9, %v1045_v45  ;;  %v1054_v57 = vrot.slane %v9351_v9, %v1053_v47  ;;  %v7643_v47 = vld [vmem:[%s10617_s9 + $0xb60] ss:$28 sps:$4 sm:$0xff]  }
 0x408   :  { %5635 = vmatpush1.bf16.msra.mxu0 %v7535_v58  ;;  %5799 = vmatpush1.bf16.msra.mxu1 %v7538_v59  ;;  %v7607_v59 = vld [vmem:[%s10617_s9 + $0xa10] ss:$28 sps:$4 sm:$0xff]  }
 0x409   :  { %5636 = vmatprep.subr.bf16.mxu0 %v7543_v60  ;;  %5800 = vmatprep.subr.bf16.mxu1 %v7546_v16  ;;  %v7610_v60 = vld [vmem:[%s10617_s9 + $0xa18] ss:$28 sps:$4 sm:$0xff]  }
 0x40c   :  { %5637 = vmatpush1.bf16.msra.mxu0 %v7541_v62  ;;  %5801 = vmatpush1.bf16.msra.mxu1 %v7544_v1 }
 0x40d   :  { %5638 = vmatprep.subr.bf16.mxu0 %v7549_v2  ;;  %5802 = vmatprep.subr.bf16.mxu1 %v7552_v3  ;;  %v7615_v2 = vld [vmem:[%s10617_s9 + $0xa4c] ss:$28 sps:$4 sm:$0xff]   ;;  %v7618_v3 = vld [vmem:[%s10617_s9 + $0xa54] ss:$28 sps:$4 sm:$0xff]  }
 0x410   :  { %5639 = vmatpush1.bf16.msra.mxu0 %v7547_v4  ;;  %5803 = vmatpush1.bf16.msra.mxu1 %v7550_v5 }
 0x411   :  { %5640 = vmatprep.subr.bf16.mxu0 %v7555_v6  ;;  %5804 = vmatprep.subr.bf16.mxu1 %v7558_v7 }
 0x414   :  { %5641 = vmatpush1.bf16.msra.mxu0 %v7553_v8  ;;  %5805 = vmatpush1.bf16.msra.mxu1 %v7556_v10 }
 0x415   :  { %5642 = vmatprep.subr.bf16.mxu0 %v7561_v11  ;;  %5806 = vmatprep.subr.bf16.mxu1 %v7564_v12  ;;  %v7613_v12 = vld [vmem:[%s10617_s9 + $0xa48] ss:$28 sps:$4 sm:$0xff]  }
 0x418   :  { %5643 = vmatpush1.bf16.msra.mxu0 %v7559_v13  ;;  %5807 = vmatpush1.bf16.msra.mxu1 %v7562_v17 }
 0x419   :  { %5644 = vmatprep.subr.bf16.mxu0 %v7567_v14  ;;  %5808 = vmatprep.subr.bf16.mxu1 %v7570_v15  ;;  %v7616_v14 = vld [vmem:[%s10617_s9 + $0xa50] ss:$28 sps:$4 sm:$0xff]  }
 0x41c   :  { %5645 = vmatpush1.bf16.msra.mxu0 %v7565_v18  ;;  %5809 = vmatpush1.bf16.msra.mxu1 %v7568_v19  ;;  %v7621_v19 = vld [vmem:[%s10617_s9 + $0xa84] ss:$28 sps:$4 sm:$0xff]  }
 0x41d   :  { %5646 = vmatprep.subr.bf16.mxu0 %v7573_v20  ;;  %5810 = vmatprep.subr.bf16.mxu1 %v7576_v63  ;;  %v7624_v20 = vld [vmem:[%s10617_s9 + $0xa8c] ss:$28 sps:$4 sm:$0xff]  }
 0x420   :  { %5647 = vmatpush1.bf16.msra.mxu0 %v7571_v41  ;;  %5811 = vmatpush1.bf16.msra.mxu1 %v7574_v21 }
 0x421   :  { %5648 = vmatprep.subr.bf16.mxu0 %v7579_v22  ;;  %5812 = vmatprep.subr.bf16.mxu1 %v7582_v23  ;;  %v7619_v22 = vld [vmem:[%s10617_s9 + $0xa80] ss:$28 sps:$4 sm:$0xff]   ;;  %v7622_v23 = vld [vmem:[%s10617_s9 + $0xa88] ss:$28 sps:$4 sm:$0xff]  }
 0x424   :  { %5649 = vmatpush1.bf16.msra.mxu0 %v7577_v24  ;;  %5813 = vmatpush1.bf16.msra.mxu1 %v7580_v28  ;;  %v7627_v28 = vld [vmem:[%s10617_s9 + $0xabc] ss:$28 sps:$4 sm:$0xff]  }
 0x425   :  { %5650 = vmatprep.subr.bf16.mxu0 %v7585_v30  ;;  %5814 = vmatprep.subr.bf16.mxu1 %v7588_v33  ;;  %v7630_v30 = vld [vmem:[%s10617_s9 + $0xac4] ss:$28 sps:$4 sm:$0xff]  }
 0x428   :  { %5651 = vmatpush1.bf16.msra.mxu0 %v7583_v34  ;;  %5815 = vmatpush1.bf16.msra.mxu1 %v7586_v35  ;;  %v7625_v34 = vld [vmem:[%s10617_s9 + $0xab8] ss:$28 sps:$4 sm:$0xff]   ;;  %v7628_v35 = vld [vmem:[%s10617_s9 + $0xac0] ss:$28 sps:$4 sm:$0xff]  }
 0x429   :  { %5652 = vmatprep.subr.bf16.mxu0 %v7591_v27  ;;  %5816 = vmatprep.subr.bf16.mxu1 %v7594_v29  ;;  %v7633_v27 = vld [vmem:[%s10617_s9 + $0xaf4] ss:$28 sps:$4 sm:$0xff]   ;;  %v7636_v29 = vld [vmem:[%s10617_s9 + $0xafc] ss:$28 sps:$4 sm:$0xff]  }
 0x42c   :  { %5653 = vmatpush1.bf16.msra.mxu0 %v7589_v31  ;;  %5817 = vmatpush1.bf16.msra.mxu1 %v7592_v43  ;;  %v7631_v31 = vld [vmem:[%s10617_s9 + $0xaf0] ss:$28 sps:$4 sm:$0xff]   ;;  %v7634_v43 = vld [vmem:[%s10617_s9 + $0xaf8] ss:$28 sps:$4 sm:$0xff]  }
 0x42d   :  { %5654 = vmatprep.subr.bf16.mxu0 %v7597_v36  ;;  %5818 = vmatprep.subr.bf16.mxu1 %v7600_v37  ;;  %v7639_v36 = vld [vmem:[%s10617_s9 + $0xb2c] ss:$28 sps:$4 sm:$0xff]   ;;  %v7642_v37 = vld [vmem:[%s10617_s9 + $0xb34] ss:$28 sps:$4 sm:$0xff]  }
 0x430   :  { %5655 = vmatpush1.bf16.msra.mxu0 %v7595_v38  ;;  %5819 = vmatpush1.bf16.msra.mxu1 %v7598_v39  ;;  %v7637_v38 = vld [vmem:[%s10617_s9 + $0xb28] ss:$28 sps:$4 sm:$0xff]   ;;  %v7640_v39 = vld [vmem:[%s10617_s9 + $0xb30] ss:$28 sps:$4 sm:$0xff]  }
 0x431   :  { %5656 = vmatprep.subr.bf16.mxu0 %v7603_v40  ;;  %5820 = vmatprep.subr.bf16.mxu1 %v7606_v42  ;;  %v7645_v40 = vld [vmem:[%s10617_s9 + $0xb64] ss:$28 sps:$4 sm:$0xff]   ;;  %v7648_v42 = vld [vmem:[%s10617_s9 + $0xb6c] ss:$28 sps:$4 sm:$0xff]  }
 0x434   :  { %5657 = vmatpush1.bf16.msra.mxu0 %v7601_v48  ;;  %5821 = vmatpush1.bf16.msra.mxu1 %v7604_v50  ;;  %v2582_v58 = vpop.f32.mrb[8].mxu0  ;;  %v7646_v48 = vld [vmem:[%s10617_s9 + $0xb68] ss:$28 sps:$4 sm:$0xff]   ;;  %v7651_v50 = vld [vmem:[%s10617_s9 + $0xb9c] ss:$28 sps:$4 sm:$0xff]  }
 0x435   :  { %v7144_v16 = vadd.f32 %v2582_v58, %v1042_v52  ;;  %v9756_v62 = vpop.f32.mrb[16].mxu1  ;;  %v2584_v1 = vpop.f32.mrb[9].mxu0  ;;  %5658 = vmatprep.subr.bf16.mxu0 %v7609_v53  ;;  %5822 = vmatprep.subr.bf16.mxu1 %v7612_v55  ;;  %v7654_v52 = vld [vmem:[%s10617_s9 + $0xba4] ss:$28 sps:$4 sm:$0xff]   ;;  %v7649_v53 = vld [vmem:[%s10617_s9 + $0xb98] ss:$28 sps:$4 sm:$0xff]  }
 0x436   :  { %v7145_v4 = vadd.f32 %v2584_v1, %v1046_v56  ;;  %v2666_v5 = vpop.f32.mrb[17].mxu1  ;;  %v2586_v6 = vpop.f32.mrb[10].mxu0  ;;  %v7652_v55 = vld [vmem:[%s10617_s9 + $0xba0] ss:$28 sps:$4 sm:$0xff]   ;;  %v7657_v56 = vld [vmem:[%s10617_s9 + $0xbd4] ss:$28 sps:$4 sm:$0xff]  }
 0x437   :  { %v2675_v7 = vmul.f32 0.2, %v7144_v16  ;;  %v7147_v8 = vadd.f32 %v2666_v5, %v1054_v57  ;;  %v2668_v10 = vpop.f32.mrb[18].mxu1  ;;  %v2587_v11 = vpop.f32.mrb[11].mxu0  ;;  %v7660_v57 = vld [vmem:[%s10617_s9 + $0xbdc] ss:$28 sps:$4 sm:$0xff]  }
 0x438   :  { %v2676_v13 = vmul.f32 0.2, %v7145_v4  ;;  %v2669_v17 = vpop.f32.mrb[19].mxu1  ;;  %5659 = vmatpush1.bf16.msra.mxu0 %v7607_v59  ;;  %5823 = vmatpush1.bf16.msra.mxu1 %v7610_v60  ;;  %v7655_v58 = vld [vmem:[%s10617_s9 + $0xbd0] ss:$28 sps:$4 sm:$0xff]  }
 0x439   :  { %v2683_v15 = vmax.f32 %v7144_v16, %v2675_v7  ;;  %v2678_v18 = vmul.f32 0.2, %v7147_v8  ;;  %5660 = vmatprep.subr.bf16.mxu0 %v7615_v2  ;;  %5824 = vmatprep.subr.bf16.mxu1 %v7618_v3  ;;  %v7658_v59 = vld [vmem:[%s10617_s9 + $0xbd8] ss:$28 sps:$4 sm:$0xff]   ;;  %v7663_v60 = vld [vmem:[%s10617_s9 + $0xc0c] ss:$28 sps:$4 sm:$0xff]  }
 0x43a   :  { %v2684_v63 = vmax.f32 %v7145_v4, %v2676_v13  ;;  %v7666_v16 = vld [vmem:[%s10617_s9 + $0xc14] ss:$28 sps:$4 sm:$0xff]   ;;  %v7661_v1 = vld [vmem:[%s10617_s9 + $0xc08] ss:$28 sps:$4 sm:$0xff]   ;;  %v7667_v5 = vld [vmem:[%s10617_s9 + $0xc40] ss:$28 sps:$4 sm:$0xff]  }
 0x43b   :  { %v2686_v41 = vmax.f32 %v7147_v8, %v2678_v18  ;;  %v9784_v24 = vpack.c.bf16 %v2683_v15, %v2683_v15  ;;  %v7664_v2 = vld [vmem:[%s10617_s9 + $0xc10] ss:$28 sps:$4 sm:$0xff]   ;;  %v7669_v3 = vld [vmem:[%s10617_s9 + $0xc44] ss:$28 sps:$4 sm:$0xff]   ;;  %v7675_v7 = vld [vmem:[%s10617_s9 + $0xc7c] ss:$28 sps:$4 sm:$0xff]  }
 0x43c   :  { %v9776_v21 = vpack.c.bf16 %v2684_v63, %v2684_v63  ;;  %5661 = vmatpush1.bf16.msra.mxu0 %v7613_v12  ;;  %5825 = vmatpush1.bf16.msra.mxu1 %v7616_v14  ;;  %v7672_v4 = vld [vmem:[%s10617_s9 + $0xc4c] ss:$28 sps:$4 sm:$0xff]   ;;  %v7678_v8 = vld [vmem:[%s10617_s9 + $0xc84] ss:$28 sps:$4 sm:$0xff]   ;;  %v7673_v10 = vld [vmem:[%s10617_s9 + $0xc78] ss:$28 sps:$4 sm:$0xff]  }
 0x43d   :  { %5671 = vmatprep.subr.bf16.mxu0 %v7621_v19  ;;  %5835 = vmatprep.subr.bf16.mxu1 %v7624_v20  ;;  %v9794_v33 = vpack.c.bf16 %v2686_v41, %v2686_v41  ;;  %v7670_v6 = vld [vmem:[%s10617_s9 + $0xc48] ss:$28 sps:$4 sm:$0xff]   ;;  %v7676_v11 = vld [vmem:[%s10617_s9 + $0xc80] ss:$28 sps:$4 sm:$0xff]   ;;  %v7681_v12 = vld [vmem:[%s10617_s9 + $0xcb4] ss:$28 sps:$4 sm:$0xff]  }
 0x43e   :  { %5662 = vmatprep.mubr.bf16.mxu0 %v9776_v21  ;;  %5826 = vmatprep.mubr.bf16.mxu1 %v9776_v21  ;;  %v7684_v13 = vld [vmem:[%s10617_s9 + $0xcbc] ss:$28 sps:$4 sm:$0xff]   ;;  %v7679_v17 = vld [vmem:[%s10617_s9 + $0xcb0] ss:$28 sps:$4 sm:$0xff]   ;;  %v7685_v19 = vld [vmem:[%s10617_s9 + $0xce8] ss:$28 sps:$4 sm:$0xff]  }
 0x43f   :  { %5663 = vmatmul.mubr.bf16.vlgmr.msra.gmra.mrb[12].mxu0 %v9784_v24  ;;  %5827 = vmatmul.mubr.bf16.vlgmr.msra.gmra.mrb[20].mxu1 %v9784_v24  ;;  %v7682_v14 = vld [vmem:[%s10617_s9 + $0xcb8] ss:$28 sps:$4 sm:$0xff]   ;;  %v7687_v15 = vld [vmem:[%s10617_s9 + $0xcec] ss:$28 sps:$4 sm:$0xff]   ;;  %v1049_v63 = vsub.s32 6, %v8279_v46 }
 0x440   :  { %5672 = vmatpush1.bf16.msra.mxu0 %v7619_v22  ;;  %5836 = vmatpush1.bf16.msra.mxu1 %v7622_v23  ;;  %v7690_v18 = vld [vmem:[%s10617_s9 + $0xcf4] ss:$28 sps:$4 sm:$0xff]   ;;  %v7693_v41 = vld [vmem:[%s10617_s9 + $0xd24] ss:$28 sps:$4 sm:$0xff]   ;;  %v7696_v22 = vld [vmem:[%s10617_s9 + $0xd2c] ss:$28 sps:$4 sm:$0xff]  }
 0x441   :  { %5703 = vmatprep.mubr.bf16.mxu0 %v9794_v33  ;;  %5867 = vmatprep.mubr.bf16.mxu1 %v9794_v33  ;;  %v7688_v20 = vld [vmem:[%s10617_s9 + $0xcf0] ss:$28 sps:$4 sm:$0xff]   ;;  %v7691_v23 = vld [vmem:[%s10617_s9 + $0xd20] ss:$28 sps:$4 sm:$0xff]  }
 0x442   :  { %5673 = vmatprep.subr.bf16.mxu0 %v7627_v28  ;;  %5837 = vmatprep.subr.bf16.mxu1 %v7630_v30  ;;  %v7694_v28 = vld [vmem:[%s10617_s9 + $0xd28] ss:$28 sps:$4 sm:$0xff]   ;;  %v1050_v30 = vrot.slane %v9351_v9, %v1049_v63  ;;  %v7700_v9 = vld [vmem:[%s10617_s9 + $0xd60] ss:$28 sps:$4 sm:$0xff]  }
 0x444   :  { %5674 = vmatpush1.bf16.msra.mxu0 %v7625_v34  ;;  %5838 = vmatpush1.bf16.msra.mxu1 %v7628_v35  ;;  %v7699_v34 = vld [vmem:[%s10617_s9 + $0xd5c] ss:$28 sps:$4 sm:$0xff]   ;;  %v7702_v35 = vld [vmem:[%s10617_s9 + $0xd64] ss:$28 sps:$4 sm:$0xff]  }
 0x445   :  { %5675 = vmatprep.subr.bf16.mxu0 %v7633_v27  ;;  %5839 = vmatprep.subr.bf16.mxu1 %v7636_v29  ;;  %v7697_v27 = vld [vmem:[%s10617_s9 + $0xd58] ss:$28 sps:$4 sm:$0xff]   ;;  %v7146_v29 = vadd.f32 %v9756_v62, %v1050_v30 }
 0x446   :  { %v7706_v62 = vld [vmem:[%s10617_s9 + $0xd98] ss:$28 sps:$4 sm:$0xff]  }
 0x447   :  { %v7758_v30 = vld [vmem:[%s10617_s9 + $0x558] ss:$28 sps:$4 sm:$0xff]  }
 0x448   :  { %5676 = vmatpush1.bf16.msra.mxu0 %v7631_v31  ;;  %5840 = vmatpush1.bf16.msra.mxu1 %v7634_v43  ;;  %v7705_v31 = vld [vmem:[%s10617_s9 + $0xd94] ss:$28 sps:$4 sm:$0xff]   ;;  %v7708_v43 = vld [vmem:[%s10617_s9 + $0xd9c] ss:$28 sps:$4 sm:$0xff]  }
 0x449   :  { %5677 = vmatprep.subr.bf16.mxu0 %v7639_v36  ;;  %5841 = vmatprep.subr.bf16.mxu1 %v7642_v37  ;;  %v7703_v36 = vld [vmem:[%s10617_s9 + $0xd90] ss:$28 sps:$4 sm:$0xff]   ;;  %v2677_v37 = vmul.f32 0.2, %v7146_v29 }
 0x44c   :  { %5678 = vmatpush1.bf16.msra.mxu0 %v7637_v38  ;;  %5842 = vmatpush1.bf16.msra.mxu1 %v7640_v39  ;;  %v7711_v38 = vld [vmem:[%s10617_s9 + $0xdcc] ss:$28 sps:$4 sm:$0xff]   ;;  %v7714_v39 = vld [vmem:[%s10617_s9 + $0xdd4] ss:$28 sps:$4 sm:$0xff]  }
 0x44d   :  { %5679 = vmatprep.subr.bf16.mxu0 %v7645_v40  ;;  %5843 = vmatprep.subr.bf16.mxu1 %v7648_v42  ;;  %v7709_v40 = vld [vmem:[%s10617_s9 + $0xdc8] ss:$28 sps:$4 sm:$0xff]   ;;  %v7712_v42 = vld [vmem:[%s10617_s9 + $0xdd0] ss:$28 sps:$4 sm:$0xff]  }
 0x450   :  { %5680 = vmatpush1.bf16.msra.mxu0 %v7643_v47  ;;  %5844 = vmatpush1.bf16.msra.mxu1 %v7646_v48  ;;  %v2685_v47 = vmax.f32 %v7146_v29, %v2677_v37  ;;  %v7717_v48 = vld [vmem:[%s10617_s9 + $0x14] ss:$28 sps:$4 sm:$0xff]   ;;  %v7760_v29 = vld [vmem:[%s10617_s9 + $0x208] ss:$28 sps:$4 sm:$0xff]  }
 0x451   :  { %5681 = vmatprep.subr.bf16.mxu0 %v7651_v50  ;;  %5845 = vmatprep.subr.bf16.mxu1 %v7654_v52  ;;  %v7718_v50 = vld [vmem:[%s10617_s9 + $0x1d8] ss:$28 sps:$4 sm:$0xff]   ;;  %v7715_v52 = vld [vmem:[%s10617_s9 + $0x10] ss:$28 sps:$4 sm:$0xff]   ;;  %v7769_v37 = vld [vmem:[%s10617_s9 + $0x408] ss:$28 sps:$4 sm:$0xff]  }
 0x454   :  { %5682 = vmatpush1.bf16.msra.mxu0 %v7649_v53  ;;  %5846 = vmatpush1.bf16.msra.mxu1 %v7652_v55  ;;  %v9988_v53 = vpack.c.bf16 %v2685_v47, %v2685_v47  ;;  %v7719_v55 = vld [vmem:[%s10617_s9 + $0x18] ss:$28 sps:$4 sm:$0xff]  }
 0x455   :  { %5683 = vmatprep.subr.bf16.mxu0 %v7657_v56  ;;  %5847 = vmatprep.subr.bf16.mxu1 %v7660_v57  ;;  %v7722_v56 = vld [vmem:[%s10617_s9 + $0x4c] ss:$28 sps:$4 sm:$0xff]   ;;  %v7777_v47 = vld [vmem:[%s10617_s9 + $0x2b4] ss:$28 sps:$4 sm:$0xff]  }
 0x456   :  { %v7723_v57 = vld [vmem:[%s10617_s9 + $0x210] ss:$28 sps:$4 sm:$0xff]  }
 0x458   :  { %5684 = vmatpush1.bf16.msra.mxu0 %v7655_v58  ;;  %5848 = vmatpush1.bf16.msra.mxu1 %v7658_v59  ;;  %v7720_v58 = vld [vmem:[%s10617_s9 + $0x48] ss:$28 sps:$4 sm:$0xff]   ;;  %v7724_v59 = vld [vmem:[%s10617_s9 + $0x50] ss:$28 sps:$4 sm:$0xff]  }
 0x459   :  { %5685 = vmatprep.subr.bf16.mxu0 %v7663_v60  ;;  %5849 = vmatprep.subr.bf16.mxu1 %v7666_v16  ;;  %v7727_v60 = vld [vmem:[%s10617_s9 + $0x84] ss:$28 sps:$4 sm:$0xff]  }
 0x45a   :  { %v7728_v16 = vld [vmem:[%s10617_s9 + $0x248] ss:$28 sps:$4 sm:$0xff]  }
 0x45c   :  { %5686 = vmatpush1.bf16.msra.mxu0 %v7661_v1  ;;  %5850 = vmatpush1.bf16.msra.mxu1 %v7664_v2  ;;  %v7725_v1 = vld [vmem:[%s10617_s9 + $0x80] ss:$28 sps:$4 sm:$0xff]  }
 0x45d   :  { %5687 = vmatprep.subr.bf16.mxu0 %v7669_v3  ;;  %5851 = vmatprep.subr.bf16.mxu1 %v7672_v4  ;;  %v7732_v2 = vld [vmem:[%s10617_s9 + $0xbc] ss:$28 sps:$4 sm:$0xff]  }
 0x45e   :  { %v7733_v3 = vld [vmem:[%s10617_s9 + $0x280] ss:$28 sps:$4 sm:$0xff]   ;;  %v7730_v4 = vld [vmem:[%s10617_s9 + $0xb8] ss:$28 sps:$4 sm:$0xff]  }
 0x460   :  { %5688 = vmatpush1.bf16.msra.mxu0 %v7667_v5  ;;  %5852 = vmatpush1.bf16.msra.mxu1 %v7670_v6  ;;  %v7734_v5 = vld [vmem:[%s10617_s9 + $0xc0] ss:$28 sps:$4 sm:$0xff]   ;;  %v7737_v6 = vld [vmem:[%s10617_s9 + $0xf4] ss:$28 sps:$4 sm:$0xff]  }
 0x461   :  { %5689 = vmatprep.subr.bf16.mxu0 %v7675_v7  ;;  %5853 = vmatprep.subr.bf16.mxu1 %v7678_v8  ;;  %v7738_v7 = vld [vmem:[%s10617_s9 + $0x2b8] ss:$28 sps:$4 sm:$0xff]   ;;  %v7735_v8 = vld [vmem:[%s10617_s9 + $0xf0] ss:$28 sps:$4 sm:$0xff]  }
 0x464   :  { %5690 = vmatpush1.bf16.msra.mxu0 %v7673_v10  ;;  %5854 = vmatpush1.bf16.msra.mxu1 %v7676_v11  ;;  %v7739_v10 = vld [vmem:[%s10617_s9 + $0xf8] ss:$28 sps:$4 sm:$0xff]   ;;  %v7742_v11 = vld [vmem:[%s10617_s9 + $0x12c] ss:$28 sps:$4 sm:$0xff]  }
 0x465   :  { %5691 = vmatprep.subr.bf16.mxu0 %v7681_v12  ;;  %5855 = vmatprep.subr.bf16.mxu1 %v7684_v13  ;;  %v7743_v12 = vld [vmem:[%s10617_s9 + $0x2f0] ss:$28 sps:$4 sm:$0xff]   ;;  %v7740_v13 = vld [vmem:[%s10617_s9 + $0x128] ss:$28 sps:$4 sm:$0xff]  }
 0x468   :  { %5692 = vmatpush1.bf16.msra.mxu0 %v7679_v17  ;;  %5856 = vmatpush1.bf16.msra.mxu1 %v7682_v14  ;;  %v7744_v17 = vld [vmem:[%s10617_s9 + $0x130] ss:$28 sps:$4 sm:$0xff]   ;;  %v7747_v14 = vld [vmem:[%s10617_s9 + $0x164] ss:$28 sps:$4 sm:$0xff]  }
 0x469   :  { %5693 = vmatprep.subr.bf16.mxu0 %v7687_v15  ;;  %5857 = vmatprep.subr.bf16.mxu1 %v7690_v18  ;;  %v7748_v15 = vld [vmem:[%s10617_s9 + $0x328] ss:$28 sps:$4 sm:$0xff]   ;;  %v7745_v18 = vld [vmem:[%s10617_s9 + $0x160] ss:$28 sps:$4 sm:$0xff]  }
 0x46c   :  { %5694 = vmatpush1.bf16.msra.mxu0 %v7685_v19  ;;  %5858 = vmatpush1.bf16.msra.mxu1 %v7688_v20  ;;  %v7749_v19 = vld [vmem:[%s10617_s9 + $0x168] ss:$28 sps:$4 sm:$0xff]   ;;  %v7752_v20 = vld [vmem:[%s10617_s9 + $0x19c] ss:$28 sps:$4 sm:$0xff]  }
 0x46d   :  { %5695 = vmatprep.subr.bf16.mxu0 %v7693_v41  ;;  %5859 = vmatprep.subr.bf16.mxu1 %v7696_v22  ;;  %v7753_v41 = vld [vmem:[%s10617_s9 + $0x360] ss:$28 sps:$4 sm:$0xff]   ;;  %v7750_v22 = vld [vmem:[%s10617_s9 + $0x198] ss:$28 sps:$4 sm:$0xff]  }
 0x470   :  { %5696 = vmatpush1.bf16.msra.mxu0 %v7691_v23  ;;  %5860 = vmatpush1.bf16.msra.mxu1 %v7694_v28  ;;  %v7754_v23 = vld [vmem:[%s10617_s9 + $0x1a0] ss:$28 sps:$4 sm:$0xff]   ;;  %v7757_v28 = vld [vmem:[%s10617_s9 + $0x1d4] ss:$28 sps:$4 sm:$0xff]  }
 0x471   :  { %5697 = vmatprep.subr.bf16.mxu0 %v7699_v34  ;;  %5861 = vmatprep.subr.bf16.mxu1 %v7702_v35  ;;  %v7755_v34 = vld [vmem:[%s10617_s9 + $0x1d0] ss:$28 sps:$4 sm:$0xff]   ;;  %v7759_v35 = vld [vmem:[%s10617_s9 + $0x398] ss:$28 sps:$4 sm:$0xff]  }
 0x474   :  { %5698 = vmatpush1.bf16.msra.mxu0 %v7697_v27  ;;  %5862 = vmatpush1.bf16.msra.mxu1 %v7700_v9  ;;  %v7762_v27 = vld [vmem:[%s10617_s9 + $0x20c] ss:$28 sps:$4 sm:$0xff]  }
 0x475   :  { %5699 = vmatprep.subr.bf16.mxu0 %v7705_v31  ;;  %5863 = vmatprep.subr.bf16.mxu1 %v7708_v43  ;;  %v7763_v9 = vld [vmem:[%s10617_s9 + $0x590] ss:$28 sps:$4 sm:$0xff]   ;;  %v7767_v43 = vld [vmem:[%s10617_s9 + $0x244] ss:$28 sps:$4 sm:$0xff]  }
 0x476   :  { %v7764_v31 = vld [vmem:[%s10617_s9 + $0x3d0] ss:$28 sps:$4 sm:$0xff]  }
 0x478   :  { %5700 = vmatpush1.bf16.msra.mxu0 %v7703_v36  ;;  %5864 = vmatpush1.bf16.msra.mxu1 %v7706_v62  ;;  %v7768_v36 = vld [vmem:[%s10617_s9 + $0x5c8] ss:$28 sps:$4 sm:$0xff]   ;;  %v7765_v62 = vld [vmem:[%s10617_s9 + $0x240] ss:$28 sps:$4 sm:$0xff]  }
 0x479   :  { %5701 = vmatprep.subr.bf16.mxu0 %v7711_v38  ;;  %5865 = vmatprep.subr.bf16.mxu1 %v7714_v39  ;;  %v7772_v38 = vld [vmem:[%s10617_s9 + $0x27c] ss:$28 sps:$4 sm:$0xff]  }
 0x47a   :  { %v7773_v39 = vld [vmem:[%s10617_s9 + $0x600] ss:$28 sps:$4 sm:$0xff]  }
 0x47c   :  { %5702 = vmatpush1.bf16.msra.mxu0 %v7709_v40  ;;  %5866 = vmatpush1.bf16.msra.mxu1 %v7712_v42  ;;  %v7770_v40 = vld [vmem:[%s10617_s9 + $0x278] ss:$28 sps:$4 sm:$0xff]   ;;  %v7774_v42 = vld [vmem:[%s10617_s9 + $0x440] ss:$28 sps:$4 sm:$0xff]  }
 0x47d   :  { %5876 = vmatprep.subr.bf16.mxu0 %v7717_v48  ;;  %7044 = vmatprep.subr.bf16.mxu1 %v7718_v50  ;;  %v7778_v48 = vld [vmem:[%s10617_s9 + $0x638] ss:$28 sps:$4 sm:$0xff]   ;;  %v7775_v50 = vld [vmem:[%s10617_s9 + $0x2b0] ss:$28 sps:$4 sm:$0xff]  }
 0x47f   :  { %5704 = vmatmul.mubr.bf16.vlgmr.msra.gmra.mrb[12].mxu0 %v9988_v53  ;;  %5868 = vmatmul.mubr.bf16.vlgmr.msra.gmra.mrb[20].mxu1 %v9988_v53 }
 0x480   :  { %5877 = vmatpush1.bf16.msra.mxu0 %v7715_v52  ;;  %5908 = vmatprep.mubr.bf16.mxu0 %v9367_v25  ;;  %v7779_v52 = vld [vmem:[%s10617_s9 + $0x478] ss:$28 sps:$4 sm:$0xff]  }
 0x481   :  { %7045 = vmatpush3.bf16.msra.mxu1 %v7719_v55  ;;  %6072 = vmatprep.mubr.bf16.mxu1 %v9367_v25  ;;  %v7729_v25 = vld [vmem:[%s10617_s9 + $0x88] ss:$28 sps:$4 sm:$0xff]  }
 0x482   :  { %5878 = vmatprep.subr.bf16.mxu0 %v7722_v56  ;;  %7046 = vmatprep.subr.bf16.mxu1 %v7723_v57  ;;  %v7782_v55 = vld [vmem:[%s10617_s9 + $0x2ec] ss:$28 sps:$4 sm:$0xff]  }
 0x483   :  { %v7783_v56 = vld [vmem:[%s10617_s9 + $0x670] ss:$28 sps:$4 sm:$0xff]   ;;  %v7780_v57 = vld [vmem:[%s10617_s9 + $0x2e8] ss:$28 sps:$4 sm:$0xff]  }
 0x484   :  { %5879 = vmatpush1.bf16.msra.mxu0 %v7720_v58  ;;  %v7784_v58 = vld [vmem:[%s10617_s9 + $0x4b0] ss:$28 sps:$4 sm:$0xff]  }
 0x485   :  { %7047 = vmatpush3.bf16.msra.mxu1 %v7724_v59  ;;  %5880 = vmatprep.subr.bf16.mxu0 %v7727_v60  ;;  %v7787_v59 = vld [vmem:[%s10617_s9 + $0x324] ss:$28 sps:$4 sm:$0xff]  }
 0x486   :  { %7048 = vmatprep.subr.bf16.mxu1 %v7728_v16  ;;  %v7788_v60 = vld [vmem:[%s10617_s9 + $0x6a8] ss:$28 sps:$4 sm:$0xff]   ;;  %v7785_v16 = vld [vmem:[%s10617_s9 + $0x320] ss:$28 sps:$4 sm:$0xff]  }
 0x488   :  { %5881 = vmatpush1.bf16.msra.mxu0 %v7725_v1  ;;  %v7789_v1 = vld [vmem:[%s10617_s9 + $0x4e8] ss:$28 sps:$4 sm:$0xff]  }
 0x489   :  { %7049 = vmatpush3.bf16.msra.mxu1 %v7729_v25  ;;  %5882 = vmatprep.subr.bf16.mxu0 %v7732_v2  ;;  %v7792_v25 = vld [vmem:[%s10617_s9 + $0x35c] ss:$28 sps:$4 sm:$0xff]  }
 0x48a   :  { %7050 = vmatprep.subr.bf16.mxu1 %v7733_v3  ;;  %v7793_v2 = vld [vmem:[%s10617_s9 + $0x6e0] ss:$28 sps:$4 sm:$0xff]   ;;  %v7790_v3 = vld [vmem:[%s10617_s9 + $0x358] ss:$28 sps:$4 sm:$0xff]  }
 0x48c   :  { %5883 = vmatpush1.bf16.msra.mxu0 %v7730_v4  ;;  %v7794_v4 = vld [vmem:[%s10617_s9 + $0x520] ss:$28 sps:$4 sm:$0xff]  }
 0x48d   :  { %7051 = vmatpush3.bf16.msra.mxu1 %v7734_v5  ;;  %5884 = vmatprep.subr.bf16.mxu0 %v7737_v6  ;;  %v7797_v5 = vld [vmem:[%s10617_s9 + $0x394] ss:$28 sps:$4 sm:$0xff]  }
 0x48e   :  { %7052 = vmatprep.subr.bf16.mxu1 %v7738_v7  ;;  %v7798_v6 = vld [vmem:[%s10617_s9 + $0x8d8] ss:$28 sps:$4 sm:$0xff]   ;;  %v7795_v7 = vld [vmem:[%s10617_s9 + $0x390] ss:$28 sps:$4 sm:$0xff]  }
 0x490   :  { %5885 = vmatpush1.bf16.msra.mxu0 %v7735_v8  ;;  %v7799_v8 = vld [vmem:[%s10617_s9 + $0x718] ss:$28 sps:$4 sm:$0xff]  }
 0x491   :  { %7053 = vmatpush3.bf16.msra.mxu1 %v7739_v10  ;;  %5886 = vmatprep.subr.bf16.mxu0 %v7742_v11  ;;  %v7802_v10 = vld [vmem:[%s10617_s9 + $0x3cc] ss:$28 sps:$4 sm:$0xff]  }
 0x492   :  { %7054 = vmatprep.subr.bf16.mxu1 %v7743_v12  ;;  %v7803_v11 = vld [vmem:[%s10617_s9 + $0x910] ss:$28 sps:$4 sm:$0xff]   ;;  %v7800_v12 = vld [vmem:[%s10617_s9 + $0x3c8] ss:$28 sps:$4 sm:$0xff]  }
 0x494   :  { %5887 = vmatpush1.bf16.msra.mxu0 %v7740_v13  ;;  %v7804_v13 = vld [vmem:[%s10617_s9 + $0x750] ss:$28 sps:$4 sm:$0xff]  }
 0x495   :  { %7055 = vmatpush3.bf16.msra.mxu1 %v7744_v17  ;;  %5888 = vmatprep.subr.bf16.mxu0 %v7747_v14  ;;  %v7808_v17 = vld [vmem:[%s10617_s9 + $0x948] ss:$28 sps:$4 sm:$0xff]  }
 0x496   :  { %7056 = vmatprep.subr.bf16.mxu1 %v7748_v15  ;;  %v7809_v14 = vld [vmem:[%s10617_s9 + $0x788] ss:$28 sps:$4 sm:$0xff]   ;;  %v7812_v15 = vld [vmem:[%s10617_s9 + $0x43c] ss:$28 sps:$4 sm:$0xff]  }
 0x498   :  { %5889 = vmatpush1.bf16.msra.mxu0 %v7745_v18  ;;  %v7813_v18 = vld [vmem:[%s10617_s9 + $0x980] ss:$28 sps:$4 sm:$0xff]  }
 0x499   :  { %7057 = vmatpush3.bf16.msra.mxu1 %v7749_v19  ;;  %5890 = vmatprep.subr.bf16.mxu0 %v7752_v20  ;;  %v7810_v19 = vld [vmem:[%s10617_s9 + $0x438] ss:$28 sps:$4 sm:$0xff]   ;;  %v7814_v20 = vld [vmem:[%s10617_s9 + $0x7c0] ss:$28 sps:$4 sm:$0xff]  }
 0x49a   :  { %7058 = vmatprep.subr.bf16.mxu1 %v7753_v41  ;;  %v7817_v41 = vld [vmem:[%s10617_s9 + $0x474] ss:$28 sps:$4 sm:$0xff]  }
 0x49c   :  { %5891 = vmatpush1.bf16.msra.mxu0 %v7750_v22  ;;  %v7818_v22 = vld [vmem:[%s10617_s9 + $0x9b8] ss:$28 sps:$4 sm:$0xff]  }
 0x49d   :  { %7059 = vmatpush3.bf16.msra.mxu1 %v7754_v23  ;;  %5892 = vmatprep.subr.bf16.mxu0 %v7757_v28  ;;  %v7815_v23 = vld [vmem:[%s10617_s9 + $0x470] ss:$28 sps:$4 sm:$0xff]   ;;  %v7819_v28 = vld [vmem:[%s10617_s9 + $0x7f8] ss:$28 sps:$4 sm:$0xff]  }
 0x49e   :  { %7066 = vmatprep.subr.bf16.mxu1 %v7758_v30  ;;  %v7822_v30 = vld [vmem:[%s10617_s9 + $0x4ac] ss:$28 sps:$4 sm:$0xff]  }
 0x4a0   :  { %6073 = vmatmul.mubr.bf16.vlgmr.msra.gmra.mrb[24].mxu1 %v9369_v26  ;;  %5893 = vmatpush1.bf16.msra.mxu0 %v7755_v34  ;;  %v7823_v34 = vld [vmem:[%s10617_s9 + $0x9f0] ss:$28 sps:$4 sm:$0xff]  }
 0x4a1   :  { %7067 = vmatpush3.bf16.msra.mxu1 %v7759_v35  ;;  %6112 = vmatprep.mubr.bf16.mxu1 %v9382_v32  ;;  %v7820_v35 = vld [vmem:[%s10617_s9 + $0x4a8] ss:$28 sps:$4 sm:$0xff]  }
 0x4a2   :  { %5894 = vmatprep.subr.bf16.mxu0 %v7762_v27  ;;  %7068 = vmatprep.subr.bf16.mxu1 %v7763_v9  ;;  %v7824_v27 = vld [vmem:[%s10617_s9 + $0x830] ss:$28 sps:$4 sm:$0xff]   ;;  %v7827_v9 = vld [vmem:[%s10617_s9 + $0x4e4] ss:$28 sps:$4 sm:$0xff]  }
 0x4a4   :  { %5895 = vmatpush1.bf16.msra.mxu0 %v7760_v29  ;;  %v7828_v29 = vld [vmem:[%s10617_s9 + $0xa28] ss:$28 sps:$4 sm:$0xff]  }
 0x4a5   :  { %7069 = vmatpush3.bf16.msra.mxu1 %v7764_v31  ;;  %5896 = vmatprep.subr.bf16.mxu0 %v7767_v43  ;;  %v7825_v31 = vld [vmem:[%s10617_s9 + $0x4e0] ss:$28 sps:$4 sm:$0xff]   ;;  %v7829_v43 = vld [vmem:[%s10617_s9 + $0x868] ss:$28 sps:$4 sm:$0xff]  }
 0x4a6   :  { %7070 = vmatprep.subr.bf16.mxu1 %v7768_v36  ;;  %v7832_v36 = vld [vmem:[%s10617_s9 + $0x51c] ss:$28 sps:$4 sm:$0xff]  }
 0x4a8   :  { %5897 = vmatpush1.bf16.msra.mxu0 %v7765_v62  ;;  %v7833_v62 = vld [vmem:[%s10617_s9 + $0xa60] ss:$28 sps:$4 sm:$0xff]  }
 0x4a9   :  { %7071 = vmatpush3.bf16.msra.mxu1 %v7769_v37  ;;  %5898 = vmatprep.subr.bf16.mxu0 %v7772_v38  ;;  %v7830_v37 = vld [vmem:[%s10617_s9 + $0x518] ss:$28 sps:$4 sm:$0xff]   ;;  %v7834_v38 = vld [vmem:[%s10617_s9 + $0x8a0] ss:$28 sps:$4 sm:$0xff]  }
 0x4aa   :  { %7072 = vmatprep.subr.bf16.mxu1 %v7773_v39  ;;  %v7837_v39 = vld [vmem:[%s10617_s9 + $0x554] ss:$28 sps:$4 sm:$0xff]  }
 0x4ac   :  { %5899 = vmatpush1.bf16.msra.mxu0 %v7770_v40  ;;  %v7838_v40 = vld [vmem:[%s10617_s9 + $0xc58] ss:$28 sps:$4 sm:$0xff]  }
 0x4ad   :  { %7073 = vmatpush3.bf16.msra.mxu1 %v7774_v42  ;;  %5900 = vmatprep.subr.bf16.mxu0 %v7777_v47  ;;  %v7835_v42 = vld [vmem:[%s10617_s9 + $0x550] ss:$28 sps:$4 sm:$0xff]   ;;  %v7839_v47 = vld [vmem:[%s10617_s9 + $0xa98] ss:$28 sps:$4 sm:$0xff]  }
 0x4ae   :  { %7074 = vmatprep.subr.bf16.mxu1 %v7778_v48  ;;  %v7842_v48 = vld [vmem:[%s10617_s9 + $0x58c] ss:$28 sps:$4 sm:$0xff]  }
 0x4b0   :  { %5901 = vmatpush1.bf16.msra.mxu0 %v7775_v50  ;;  %v7843_v50 = vld [vmem:[%s10617_s9 + $0xc90] ss:$28 sps:$4 sm:$0xff]  }
 0x4b1   :  { %7075 = vmatpush3.bf16.msra.mxu1 %v7779_v52  ;;  %5902 = vmatprep.subr.bf16.mxu0 %v7782_v55  ;;  %v7840_v52 = vld [vmem:[%s10617_s9 + $0x588] ss:$28 sps:$4 sm:$0xff]   ;;  %v7844_v55 = vld [vmem:[%s10617_s9 + $0xad0] ss:$28 sps:$4 sm:$0xff]  }
 0x4b2   :  { %7076 = vmatprep.subr.bf16.mxu1 %v7783_v56  ;;  %v7847_v56 = vld [vmem:[%s10617_s9 + $0x5c4] ss:$28 sps:$4 sm:$0xff]  }
 0x4b4   :  { %5903 = vmatpush1.bf16.msra.mxu0 %v7780_v57  ;;  %v7848_v57 = vld [vmem:[%s10617_s9 + $0xcc8] ss:$28 sps:$4 sm:$0xff]  }
 0x4b5   :  { %7077 = vmatpush3.bf16.msra.mxu1 %v7784_v58  ;;  %5904 = vmatprep.subr.bf16.mxu0 %v7787_v59  ;;  %v7845_v58 = vld [vmem:[%s10617_s9 + $0x5c0] ss:$28 sps:$4 sm:$0xff]   ;;  %v7849_v59 = vld [vmem:[%s10617_s9 + $0xb08] ss:$28 sps:$4 sm:$0xff]  }
 0x4b6   :  { %7078 = vmatprep.subr.bf16.mxu1 %v7788_v60  ;;  %v7852_v60 = vld [vmem:[%s10617_s9 + $0x5fc] ss:$28 sps:$4 sm:$0xff]  }
 0x4b8   :  { %5905 = vmatpush1.bf16.msra.mxu0 %v7785_v16  ;;  %v7853_v16 = vld [vmem:[%s10617_s9 + $0xd00] ss:$28 sps:$4 sm:$0xff]  }
 0x4b9   :  { %7079 = vmatpush3.bf16.msra.mxu1 %v7789_v1  ;;  %5906 = vmatprep.subr.bf16.mxu0 %v7792_v25  ;;  %v7850_v1 = vld [vmem:[%s10617_s9 + $0x5f8] ss:$28 sps:$4 sm:$0xff]   ;;  %v7854_v25 = vld [vmem:[%s10617_s9 + $0xb40] ss:$28 sps:$4 sm:$0xff]  }
 0x4ba   :  { %7080 = vmatprep.subr.bf16.mxu1 %v7793_v2  ;;  %v7857_v2 = vld [vmem:[%s10617_s9 + $0x634] ss:$28 sps:$4 sm:$0xff]  }
 0x4bc   :  { %5907 = vmatpush1.bf16.msra.mxu0 %v7790_v3  ;;  %v7858_v3 = vld [vmem:[%s10617_s9 + $0xd38] ss:$28 sps:$4 sm:$0xff]  }
 0x4bd   :  { %7081 = vmatpush3.bf16.msra.mxu1 %v7794_v4  ;;  %5917 = vmatprep.subr.bf16.mxu0 %v7797_v5  ;;  %v7855_v4 = vld [vmem:[%s10617_s9 + $0x630] ss:$28 sps:$4 sm:$0xff]   ;;  %v7859_v5 = vld [vmem:[%s10617_s9 + $0xb78] ss:$28 sps:$4 sm:$0xff]  }
 0x4be   :  { %7088 = vmatprep.subr.bf16.mxu1 %v7798_v6  ;;  %v7862_v6 = vld [vmem:[%s10617_s9 + $0x66c] ss:$28 sps:$4 sm:$0xff]  }
 0x4bf   :  { %5909 = vmatmul.mubr.bf16.vlgmr.msra.gmra.mrb[16].mxu0 %v9369_v26  ;;  %v7807_v26 = vld [vmem:[%s10617_s9 + $0x404] ss:$28 sps:$4 sm:$0xff]  }
 0x4c0   :  { %6113 = vmatmul.mubr.bf16.vlgmr.msra.gmra.mrb[28].mxu1 %v9574_v49  ;;  %5918 = vmatpush1.bf16.msra.mxu0 %v7795_v7  ;;  %v7863_v7 = vld [vmem:[%s10617_s9 + $0xd70] ss:$28 sps:$4 sm:$0xff]  }
 0x4c1   :  { %5949 = vmatprep.mubr.bf16.mxu0 %v9382_v32  ;;  %7089 = vmatpush3.bf16.msra.mxu1 %v7799_v8  ;;  %v7805_v32 = vld [vmem:[%s10617_s9 + $0x400] ss:$28 sps:$4 sm:$0xff]   ;;  %v7860_v8 = vld [vmem:[%s10617_s9 + $0x668] ss:$28 sps:$4 sm:$0xff]  }
 0x4c2   :  { %6152 = vmatprep.mubr.bf16.mxu1 %v9776_v21  ;;  %5919 = vmatprep.subr.bf16.mxu0 %v7802_v10  ;;  %v7864_v10 = vld [vmem:[%s10617_s9 + $0xbb0] ss:$28 sps:$4 sm:$0xff]  }
 0x4c3   :  { %7090 = vmatprep.subr.bf16.mxu1 %v7803_v11  ;;  %v7867_v11 = vld [vmem:[%s10617_s9 + $0x6a4] ss:$28 sps:$4 sm:$0xff]  }
 0x4c4   :  { %5920 = vmatpush1.bf16.msra.mxu0 %v7800_v12  ;;  %v7868_v12 = vld [vmem:[%s10617_s9 + $0xda8] ss:$28 sps:$4 sm:$0xff]  }
 0x4c5   :  { %7091 = vmatpush3.bf16.msra.mxu1 %v7804_v13  ;;  %5921 = vmatprep.subr.bf16.mxu0 %v7807_v26  ;;  %v7865_v13 = vld [vmem:[%s10617_s9 + $0x6a0] ss:$28 sps:$4 sm:$0xff]   ;;  %v7869_v26 = vld [vmem:[%s10617_s9 + $0xbe8] ss:$28 sps:$4 sm:$0xff]  }
 0x4c6   :  { %7092 = vmatprep.subr.bf16.mxu1 %v7808_v17  ;;  %v7872_v17 = vld [vmem:[%s10617_s9 + $0x6dc] ss:$28 sps:$4 sm:$0xff]  }
 0x4c8   :  { %5922 = vmatpush1.bf16.msra.mxu0 %v7805_v32  ;;  %v7873_v32 = vld [vmem:[%s10617_s9 + $0xde0] ss:$28 sps:$4 sm:$0xff]  }
 0x4c9   :  { %7093 = vmatpush3.bf16.msra.mxu1 %v7809_v14  ;;  %5923 = vmatprep.subr.bf16.mxu0 %v7812_v15  ;;  %v7870_v14 = vld [vmem:[%s10617_s9 + $0x6d8] ss:$28 sps:$4 sm:$0xff]   ;;  %v7874_v15 = vld [vmem:[%s10617_s9 + $0xc20] ss:$28 sps:$4 sm:$0xff]  }
 0x4ca   :  { %7094 = vmatprep.subr.bf16.mxu1 %v7813_v18  ;;  %v7877_v18 = vld [vmem:[%s10617_s9 + $0x714] ss:$28 sps:$4 sm:$0xff]  }
 0x4cc   :  { %5924 = vmatpush1.bf16.msra.mxu0 %v7810_v19  ;;  %v7875_v19 = vld [vmem:[%s10617_s9 + $0x710] ss:$28 sps:$4 sm:$0xff]  }
 0x4cd   :  { %7095 = vmatpush3.bf16.msra.mxu1 %v7814_v20  ;;  %5925 = vmatprep.subr.bf16.mxu0 %v7817_v41  ;;  %v7880_v20 = vld [vmem:[%s10617_s9 + $0x74c] ss:$28 sps:$4 sm:$0xff]  }
 0x4ce   :  { %7096 = vmatprep.subr.bf16.mxu1 %v7818_v22  ;;  %v7878_v41 = vld [vmem:[%s10617_s9 + $0x748] ss:$28 sps:$4 sm:$0xff]  }
 0x4cf   :  { %v7883_v22 = vld [vmem:[%s10617_s9 + $0x784] ss:$28 sps:$4 sm:$0xff]  }
 0x4d0   :  { %5926 = vmatpush1.bf16.msra.mxu0 %v7815_v23  ;;  %v7881_v23 = vld [vmem:[%s10617_s9 + $0x780] ss:$28 sps:$4 sm:$0xff]  }
 0x4d1   :  { %7097 = vmatpush3.bf16.msra.mxu1 %v7819_v28  ;;  %5927 = vmatprep.subr.bf16.mxu0 %v7822_v30  ;;  %v7889_v28 = vld [vmem:[%s10617_s9 + $0x7f4] ss:$28 sps:$4 sm:$0xff]  }
 0x4d2   :  { %7098 = vmatprep.subr.bf16.mxu1 %v7823_v34  ;;  %v7887_v30 = vld [vmem:[%s10617_s9 + $0x7f0] ss:$28 sps:$4 sm:$0xff]  }
 0x4d3   :  { %v7892_v34 = vld [vmem:[%s10617_s9 + $0x82c] ss:$28 sps:$4 sm:$0xff]  }
 0x4d4   :  { %5928 = vmatpush1.bf16.msra.mxu0 %v7820_v35  ;;  %v7890_v35 = vld [vmem:[%s10617_s9 + $0x828] ss:$28 sps:$4 sm:$0xff]  }
 0x4d5   :  { %7099 = vmatpush3.bf16.msra.mxu1 %v7824_v27  ;;  %5929 = vmatprep.subr.bf16.mxu0 %v7827_v9  ;;  %v7895_v27 = vld [vmem:[%s10617_s9 + $0x864] ss:$28 sps:$4 sm:$0xff]  }
 0x4d6   :  { %7100 = vmatprep.subr.bf16.mxu1 %v7828_v29  ;;  %v7893_v9 = vld [vmem:[%s10617_s9 + $0x860] ss:$28 sps:$4 sm:$0xff]  }
 0x4d7   :  { %v7898_v29 = vld [vmem:[%s10617_s9 + $0x89c] ss:$28 sps:$4 sm:$0xff]  }
 0x4d8   :  { %5930 = vmatpush1.bf16.msra.mxu0 %v7825_v31  ;;  %v7896_v31 = vld [vmem:[%s10617_s9 + $0x898] ss:$28 sps:$4 sm:$0xff]  }
 0x4d9   :  { %7101 = vmatpush3.bf16.msra.mxu1 %v7829_v43  ;;  %5931 = vmatprep.subr.bf16.mxu0 %v7832_v36  ;;  %v7901_v43 = vld [vmem:[%s10617_s9 + $0x8d4] ss:$28 sps:$4 sm:$0xff]  }
 0x4da   :  { %7102 = vmatprep.subr.bf16.mxu1 %v7833_v62  ;;  %v7899_v36 = vld [vmem:[%s10617_s9 + $0x8d0] ss:$28 sps:$4 sm:$0xff]  }
 0x4db   :  { %v7904_v62 = vld [vmem:[%s10617_s9 + $0x90c] ss:$28 sps:$4 sm:$0xff]  }
 0x4dc   :  { %5932 = vmatpush1.bf16.msra.mxu0 %v7830_v37  ;;  %v7902_v37 = vld [vmem:[%s10617_s9 + $0x908] ss:$28 sps:$4 sm:$0xff]  }
 0x4dd   :  { %7103 = vmatpush3.bf16.msra.mxu1 %v7834_v38  ;;  %5933 = vmatprep.subr.bf16.mxu0 %v7837_v39  ;;  %v7907_v38 = vld [vmem:[%s10617_s9 + $0x944] ss:$28 sps:$4 sm:$0xff]  }
 0x4de   :  { %7110 = vmatprep.subr.bf16.mxu1 %v7838_v40  ;;  %v7905_v39 = vld [vmem:[%s10617_s9 + $0x940] ss:$28 sps:$4 sm:$0xff]  }
 0x4df   :  { %v7910_v40 = vld [vmem:[%s10617_s9 + $0x97c] ss:$28 sps:$4 sm:$0xff]  }
 0x4e0   :  { %6153 = vmatmul.mubr.bf16.vlgmr.msra.gmra.mrb[32].mxu1 %v9784_v24  ;;  %5934 = vmatpush1.bf16.msra.mxu0 %v7835_v42  ;;  %v7908_v42 = vld [vmem:[%s10617_s9 + $0x978] ss:$28 sps:$4 sm:$0xff]  }
 0x4e1   :  { %7111 = vmatpush3.bf16.msra.mxu1 %v7839_v47  ;;  %6192 = vmatprep.mubr.bf16.mxu1 %v9794_v33  ;;  %v7913_v47 = vld [vmem:[%s10617_s9 + $0x9b4] ss:$28 sps:$4 sm:$0xff]  }
 0x4e2   :  { %5935 = vmatprep.subr.bf16.mxu0 %v7842_v48  ;;  %7112 = vmatprep.subr.bf16.mxu1 %v7843_v50  ;;  %v7911_v48 = vld [vmem:[%s10617_s9 + $0x9b0] ss:$28 sps:$4 sm:$0xff]  }
 0x4e3   :  { %v7916_v50 = vld [vmem:[%s10617_s9 + $0x9ec] ss:$28 sps:$4 sm:$0xff]  }
 0x4e4   :  { %5936 = vmatpush1.bf16.msra.mxu0 %v7840_v52  ;;  %v7914_v52 = vld [vmem:[%s10617_s9 + $0x9e8] ss:$28 sps:$4 sm:$0xff]  }
 0x4e5   :  { %7113 = vmatpush3.bf16.msra.mxu1 %v7844_v55  ;;  %5937 = vmatprep.subr.bf16.mxu0 %v7847_v56  ;;  %v7919_v55 = vld [vmem:[%s10617_s9 + $0xa24] ss:$28 sps:$4 sm:$0xff]  }
 0x4e6   :  { %7114 = vmatprep.subr.bf16.mxu1 %v7848_v57  ;;  %v7917_v56 = vld [vmem:[%s10617_s9 + $0xa20] ss:$28 sps:$4 sm:$0xff]  }
 0x4e7   :  { %v7922_v57 = vld [vmem:[%s10617_s9 + $0xa5c] ss:$28 sps:$4 sm:$0xff]  }
 0x4e8   :  { %5938 = vmatpush1.bf16.msra.mxu0 %v7845_v58  ;;  %v7920_v58 = vld [vmem:[%s10617_s9 + $0xa58] ss:$28 sps:$4 sm:$0xff]  }
 0x4e9   :  { %7115 = vmatpush3.bf16.msra.mxu1 %v7849_v59  ;;  %5939 = vmatprep.subr.bf16.mxu0 %v7852_v60  ;;  %v7925_v59 = vld [vmem:[%s10617_s9 + $0xa94] ss:$28 sps:$4 sm:$0xff]  }
 0x4ea   :  { %7116 = vmatprep.subr.bf16.mxu1 %v7853_v16  ;;  %v7923_v60 = vld [vmem:[%s10617_s9 + $0xa90] ss:$28 sps:$4 sm:$0xff]  }
 0x4eb   :  { %v7928_v16 = vld [vmem:[%s10617_s9 + $0xacc] ss:$28 sps:$4 sm:$0xff]  }
 0x4ec   :  { %5940 = vmatpush1.bf16.msra.mxu0 %v7850_v1  ;;  %v7926_v1 = vld [vmem:[%s10617_s9 + $0xac8] ss:$28 sps:$4 sm:$0xff]  }
 0x4ed   :  { %7117 = vmatpush3.bf16.msra.mxu1 %v7854_v25  ;;  %5941 = vmatprep.subr.bf16.mxu0 %v7857_v2  ;;  %v7931_v25 = vld [vmem:[%s10617_s9 + $0xb04] ss:$28 sps:$4 sm:$0xff]  }
 0x4ee   :  { %7118 = vmatprep.subr.bf16.mxu1 %v7858_v3  ;;  %v7929_v2 = vld [vmem:[%s10617_s9 + $0xb00] ss:$28 sps:$4 sm:$0xff]   ;;  %v7937_v3 = vld [vmem:[%s10617_s9 + $0xb74] ss:$28 sps:$4 sm:$0xff]  }
 0x4f0   :  { %5942 = vmatpush1.bf16.msra.mxu0 %v7855_v4  ;;  %v7935_v4 = vld [vmem:[%s10617_s9 + $0xb70] ss:$28 sps:$4 sm:$0xff]  }
 0x4f1   :  { %7119 = vmatpush3.bf16.msra.mxu1 %v7859_v5  ;;  %5943 = vmatprep.subr.bf16.mxu0 %v7862_v6  ;;  %v10511_v5 = vld [vmem:[%s10619_s10] sm:$0x7f]  ;;  %v7940_v6 = vld [vmem:[%s10617_s9 + $0xbac] ss:$28 sps:$4 sm:$0xff]  }
 0x4f2   :  { %7120 = vmatprep.subr.bf16.mxu1 %v7863_v7  ;;  %v3212_v7 = vrot.slane %v10511_v5, %v8288_v51 }
 0x4f4   :  { %5944 = vmatpush1.bf16.msra.mxu0 %v7860_v8  ;;  %v3220_v8 = vrot.slane %v10511_v5, %v8717_v61 }
 0x4f5   :  { %7121 = vmatpush3.bf16.msra.mxu1 %v7864_v10  ;;  %5945 = vmatprep.subr.bf16.mxu0 %v7867_v11  ;;  %v3216_v10 = vrot.slane %v10511_v5, %v8294_v54  ;;  %v3224_v11 = vrot.slane %v10511_v5, %v8723_v0  ;;  %v7941_v0 = vld [vmem:[%s10617_s9 + $0xbe0] ss:$28 sps:$4 sm:$0xff]  }
 0x4f6   :  { %7122 = vmatprep.subr.bf16.mxu1 %v7868_v12  ;;  %v7938_v12 = vld [vmem:[%s10617_s9 + $0xba8] ss:$28 sps:$4 sm:$0xff]  }
 0x4f8   :  { %5946 = vmatpush1.bf16.msra.mxu0 %v7865_v13  ;;  %v7943_v13 = vld [vmem:[%s10617_s9 + $0xbe4] ss:$28 sps:$4 sm:$0xff]  }
 0x4f9   :  { %7123 = vmatpush3.bf16.msra.mxu1 %v7869_v26  ;;  %5947 = vmatprep.subr.bf16.mxu0 %v7872_v17 }
 0x4fa   :  { %7124 = vmatprep.subr.bf16.mxu1 %v7873_v32 }
 0x4fc   :  { %5948 = vmatpush1.bf16.msra.mxu0 %v7870_v14 }
 0x4fd   :  { %7125 = vmatpush3.bf16.msra.mxu1 %v7874_v15  ;;  %5958 = vmatprep.subr.bf16.mxu0 %v7877_v18 }
 0x4ff   :  { %5950 = vmatmul.mubr.bf16.vlgmr.msra.gmra.mrb[16].mxu0 %v9574_v49  ;;  %v7886_v49 = vld [vmem:[%s10617_s9 + $0x7bc] ss:$28 sps:$4 sm:$0xff]  }
 0x500   :  { %6193 = vmatmul.mubr.bf16.vlgmr.msra.gmra.mrb[36].mxu1 %v9988_v53  ;;  %5959 = vmatpush1.bf16.msra.mxu0 %v7875_v19 }
 0x501   :  { %5990 = vmatprep.mubr.bf16.mxu0 %v9776_v21  ;;  %5960 = vmatprep.subr.bf16.mxu0 %v7880_v20  ;;  %v7884_v21 = vld [vmem:[%s10617_s9 + $0x7b8] ss:$28 sps:$4 sm:$0xff]  }
 0x504   :  { %5961 = vmatpush1.bf16.msra.mxu0 %v7878_v41 }
 0x505   :  { %5962 = vmatprep.subr.bf16.mxu0 %v7883_v22  ;;  %v7946_v22 = vld [vmem:[%s10617_s9 + $0xc1c] ss:$28 sps:$4 sm:$0xff]  }
 0x508   :  { %5963 = vmatpush1.bf16.msra.mxu0 %v7881_v23  ;;  %v7944_v23 = vld [vmem:[%s10617_s9 + $0xc18] ss:$28 sps:$4 sm:$0xff]  }
 0x509   :  { %5964 = vmatprep.subr.bf16.mxu0 %v7886_v49  ;;  %v7949_v49 = vld [vmem:[%s10617_s9 + $0xc54] ss:$28 sps:$4 sm:$0xff]  }
 0x50c   :  { %5965 = vmatpush1.bf16.msra.mxu0 %v7884_v21  ;;  %v7947_v21 = vld [vmem:[%s10617_s9 + $0xc50] ss:$28 sps:$4 sm:$0xff]  }
 0x50d   :  { %5966 = vmatprep.subr.bf16.mxu0 %v7889_v28  ;;  %v7952_v28 = vld [vmem:[%s10617_s9 + $0xc8c] ss:$28 sps:$4 sm:$0xff]  }
 0x510   :  { %5967 = vmatpush1.bf16.msra.mxu0 %v7887_v30 }
 0x511   :  { %5968 = vmatprep.subr.bf16.mxu0 %v7892_v34 }
 0x514   :  { %5969 = vmatpush1.bf16.msra.mxu0 %v7890_v35  ;;  %v7950_v35 = vld [vmem:[%s10617_s9 + $0xc88] ss:$28 sps:$4 sm:$0xff]  }
 0x515   :  { %5970 = vmatprep.subr.bf16.mxu0 %v7895_v27 }
 0x518   :  { %5971 = vmatpush1.bf16.msra.mxu0 %v7893_v9  ;;  %v7955_v9 = vld [vmem:[%s10617_s9 + $0xcc4] ss:$28 sps:$4 sm:$0xff]  }
 0x519   :  { %5972 = vmatprep.subr.bf16.mxu0 %v7898_v29 }
 0x51c   :  { %5973 = vmatpush1.bf16.msra.mxu0 %v7896_v31 }
 0x51d   :  { %5974 = vmatprep.subr.bf16.mxu0 %v7901_v43 }
 0x520   :  { %5975 = vmatpush1.bf16.msra.mxu0 %v7899_v36  ;;  %v7953_v36 = vld [vmem:[%s10617_s9 + $0xcc0] ss:$28 sps:$4 sm:$0xff]  }
 0x521   :  { %5976 = vmatprep.subr.bf16.mxu0 %v7904_v62  ;;  %v7958_v62 = vld [vmem:[%s10617_s9 + $0xcfc] ss:$28 sps:$4 sm:$0xff]  }
 0x524   :  { %5977 = vmatpush1.bf16.msra.mxu0 %v7902_v37  ;;  %v7956_v37 = vld [vmem:[%s10617_s9 + $0xcf8] ss:$28 sps:$4 sm:$0xff]  }
 0x525   :  { %5978 = vmatprep.subr.bf16.mxu0 %v7907_v38  ;;  %v7961_v38 = vld [vmem:[%s10617_s9 + $0xd34] ss:$28 sps:$4 sm:$0xff]  }
 0x528   :  { %5979 = vmatpush1.bf16.msra.mxu0 %v7905_v39  ;;  %v7959_v39 = vld [vmem:[%s10617_s9 + $0xd30] ss:$28 sps:$4 sm:$0xff]  }
 0x529   :  { %5980 = vmatprep.subr.bf16.mxu0 %v7910_v40  ;;  %v7964_v40 = vld [vmem:[%s10617_s9 + $0xd6c] ss:$28 sps:$4 sm:$0xff]  }
 0x52c   :  { %5981 = vmatpush1.bf16.msra.mxu0 %v7908_v42  ;;  %v7962_v42 = vld [vmem:[%s10617_s9 + $0xd68] ss:$28 sps:$4 sm:$0xff]  }
 0x52d   :  { %5982 = vmatprep.subr.bf16.mxu0 %v7913_v47  ;;  %v7967_v47 = vld [vmem:[%s10617_s9 + $0xda4] ss:$28 sps:$4 sm:$0xff]  }
 0x530   :  { %5983 = vmatpush1.bf16.msra.mxu0 %v7911_v48 }
 0x531   :  { %5984 = vmatprep.subr.bf16.mxu0 %v7916_v50 }
 0x534   :  { %5985 = vmatpush1.bf16.msra.mxu0 %v7914_v52  ;;  %v7965_v52 = vld [vmem:[%s10617_s9 + $0xda0] ss:$28 sps:$4 sm:$0xff]  }
 0x535   :  { %5986 = vmatprep.subr.bf16.mxu0 %v7919_v55 }
 0x538   :  { %5987 = vmatpush1.bf16.msra.mxu0 %v7917_v56 }
 0x539   :  { %5988 = vmatprep.subr.bf16.mxu0 %v7922_v57  ;;  %v7970_v57 = vld [vmem:[%s10617_s9 + $0xddc] ss:$28 sps:$4 sm:$0xff]  }
 0x53c   :  { %5989 = vmatpush1.bf16.msra.mxu0 %v7920_v58 }
 0x53d   :  { %5999 = vmatprep.subr.bf16.mxu0 %v7925_v59  ;;  %v7968_v59 = vld [vmem:[%s10617_s9 + $0xdd8] ss:$28 sps:$4 sm:$0xff]  }
 0x53f   :  { %5991 = vmatmul.mubr.bf16.vlgmr.msra.gmra.mrb[16].mxu0 %v9784_v24  ;;  %v7934_v24 = vld [vmem:[%s10617_s9 + $0xb3c] ss:$28 sps:$4 sm:$0xff]  }
 0x540   :  { %6000 = vmatpush1.bf16.msra.mxu0 %v7923_v60  ;;  %6031 = vmatprep.mubr.bf16.mxu0 %v9794_v33  ;;  %v7932_v33 = vld [vmem:[%s10617_s9 + $0xb38] ss:$28 sps:$4 sm:$0xff]   ;;  %v3236_v60 = vrot.slane %v10511_v5, %v1049_v63 }
 0x541   :  { %6001 = vmatprep.subr.bf16.mxu0 %v7928_v16 }
 0x544   :  { %6002 = vmatpush1.bf16.msra.mxu0 %v7926_v1 }
 0x545   :  { %6003 = vmatprep.subr.bf16.mxu0 %v7931_v25 }
 0x548   :  { %6004 = vmatpush1.bf16.msra.mxu0 %v7929_v2 }
 0x549   :  { %6005 = vmatprep.subr.bf16.mxu0 %v7934_v24 }
 0x54c   :  { %6006 = vmatpush1.bf16.msra.mxu0 %v7932_v33 }
 0x54d   :  { %6007 = vmatprep.subr.bf16.mxu0 %v7937_v3 }
 0x550   :  { %6008 = vmatpush1.bf16.msra.mxu0 %v7935_v4 }
 0x551   :  { %6009 = vmatprep.subr.bf16.mxu0 %v7940_v6 }
 0x552   :  { %v5705_v51 = vpop.f32.mrb[12].mxu0  ;;  %v5869_v26 = vpop.f32.mrb[20].mxu1 }
 0x553   :  { %v7148_v17 = vadd.f32 %v5705_v51, %v3212_v7  ;;  %v7150_v61 = vadd.f32 %v5869_v26, %v3220_v8  ;;  %v5707_v32 = vpop.f32.mrb[13].mxu0  ;;  %v5871_v14 = vpop.f32.mrb[21].mxu1 }
 0x554   :  { %v7149_v15 = vadd.f32 %v5707_v32, %v3216_v10  ;;  %v7151_v54 = vadd.f32 %v5871_v14, %v3224_v11  ;;  %v5709_v18 = vpop.f32.mrb[14].mxu0  ;;  %v5873_v19 = vpop.f32.mrb[22].mxu1  ;;  %6010 = vmatpush1.bf16.msra.mxu0 %v7938_v12  ;;  %v3228_v32 = vrot.slane %v10511_v5, %v1041_v44  ;;  %v3232_v14 = vrot.slane %v10511_v5, %v1045_v45 }
 0x555   :  { %7971 = vtanh.f32 %v7148_v17  ;;  %v5710_v20 = vpop.f32.mrb[15].mxu0  ;;  %v5874_v41 = vpop.f32.mrb[23].mxu1  ;;  %6011 = vmatprep.subr.bf16.mxu0 %v7943_v13 }
 0x556   :  { %7973 = vtanh.f32 %v7150_v61 }
 0x557   :  { %7975 = vtanh.f32 %v7149_v15 }
 0x558   :  { %7977 = vtanh.f32 %v7151_v54  ;;  %6012 = vmatpush1.bf16.msra.mxu0 %v7941_v0 }
 0x559   :  { %6013 = vmatprep.subr.bf16.mxu0 %v7946_v22 }
 0x55c   :  { %6014 = vmatpush1.bf16.msra.mxu0 %v7944_v23 }
 0x55d   :  { %6015 = vmatprep.subr.bf16.mxu0 %v7949_v49 }
 0x55f   :  { %v7972_v30 = vpop.eup %7971 }
 0x560   :  { %v7974_v34 = vpop.eup %7973  ;;  %6016 = vmatpush1.bf16.msra.mxu0 %v7947_v21 }
 0x561   :  { %v7976_v27 = vpop.eup %7975  ;;  %6017 = vmatprep.subr.bf16.mxu0 %v7952_v28 }
 0x562   :  { %v7978_v29 = vpop.eup %7977  ;;  %v7037_v31 = vpack.c.bf16 %v7976_v27, %v7972_v30 }
 0x563   :  { %v7038_v43 = vpack.c.bf16 %v7978_v29, %v7974_v34 }
 0x564   :  { %6236 = vst [vmem:[%s10620_s11] sm:$0xff] %v7037_v31  ;;  %6018 = vmatpush1.bf16.msra.mxu0 %v7950_v35 }
 0x565   :  { %6237 = vst [vmem:[%s10620_s11 + $0x8] sm:$0xff] %v7038_v43  ;;  %6019 = vmatprep.subr.bf16.mxu0 %v7955_v9 }
 0x568   :  { %6020 = vmatpush1.bf16.msra.mxu0 %v7953_v36 }
 0x569   :  { %6021 = vmatprep.subr.bf16.mxu0 %v7958_v62 }
 0x56c   :  { %6022 = vmatpush1.bf16.msra.mxu0 %v7956_v37 }
 0x56d   :  { %6023 = vmatprep.subr.bf16.mxu0 %v7961_v38 }
 0x570   :  { %6024 = vmatpush1.bf16.msra.mxu0 %v7959_v39 }
 0x571   :  { %6025 = vmatprep.subr.bf16.mxu0 %v7964_v40 }
 0x573   :  { %v7060_v48 = vpop.f32.mrb[24].mxu1 }
 0x574   :  { %v7061_v50 = vpop.f32.mrb[25].mxu1  ;;  %6026 = vmatpush1.bf16.msra.mxu0 %v7962_v42 }
 0x575   :  { %v7062_v55 = vadd.f32 %v7061_v50, %v7060_v48  ;;  %v7063_v56 = vpop.f32.mrb[26].mxu1  ;;  %6027 = vmatprep.subr.bf16.mxu0 %v7967_v47 }
 0x576   :  { %v7064_v58 = vpop.f32.mrb[27].mxu1 }
 0x577   :  { %v6075_v25 = vadd.f32 %v7062_v55, %v3236_v60 }
 0x578   :  { %6028 = vmatpush1.bf16.msra.mxu0 %v7965_v52 }
 0x579   :  { %6029 = vmatprep.subr.bf16.mxu0 %v7970_v57 }
 0x57c   :  { %6030 = vmatpush1.bf16.msra.mxu0 %v7968_v59 }
 0x57f   :  { %6032 = vmatmul.mubr.bf16.vlgmr.msra.gmra.mrb[16].mxu0 %v9988_v53 }
 0x593   :  { %v7082_v16 = vpop.f32.mrb[28].mxu1 }
 0x594   :  { %v7083_v1 = vpop.f32.mrb[29].mxu1 }
 0x595   :  { %v7084_v2 = vadd.f32 %v7083_v1, %v7082_v16  ;;  %v7085_v24 = vpop.f32.mrb[30].mxu1 }
 0x596   :  { %v7086_v33 = vpop.f32.mrb[31].mxu1 }
 0x597   :  { %v6115_v3 = vadd.f32 %v7084_v2, %v6075_v25 }
 0x5b3   :  { %v7104_v4 = vpop.f32.mrb[32].mxu1 }
 0x5b4   :  { %v7105_v6 = vpop.f32.mrb[33].mxu1 }
 0x5b5   :  { %v7106_v7 = vadd.f32 %v7105_v6, %v7104_v4  ;;  %v7107_v8 = vpop.f32.mrb[34].mxu1 }
 0x5b6   :  { %v7108_v10 = vpop.f32.mrb[35].mxu1 }
 0x5b7   :  { %v6155_v11 = vadd.f32 %v7106_v7, %v6115_v3 }
 0x5d3   :  { %v7126_v12 = vpop.f32.mrb[36].mxu1 }
 0x5d4   :  { %v7127_v13 = vpop.f32.mrb[37].mxu1 }
 0x5d5   :  { %v7128_v53 = vadd.f32 %v7127_v13, %v7126_v12  ;;  %v7129_v51 = vpop.f32.mrb[38].mxu1 }
 0x5d6   :  { %v7130_v26 = vpop.f32.mrb[39].mxu1 }
 0x5d7   :  { %v6195_v17 = vadd.f32 %v7128_v53, %v6155_v11 }
 0x5d9   :  { %7979 = vtanh.f32 %v6195_v17 }
 0x5e3   :  { %v7980_v63 = vpop.eup %7979 }
 0x5e4   :  { %v7040_v61 = vpack.c.bf16 %v7980_v63, %v7980_v63 }
 0x5e6   :  { %6240 = vst.msk [vmem:[%s10620_s11 + $0x18] sm:$0xf] %vm6239_vm2, %v7040_v61 }
 0x652   :  { %v6033_v15 = vpop.f32.mrb[16].mxu0 }
 0x653   :  { %v7152_v54 = vadd.f32 %v6033_v15, %v3228_v32  ;;  %v6035_v18 = vpop.f32.mrb[17].mxu0 }
 0x654   :  { %v7153_v19 = vadd.f32 %v6035_v18, %v3232_v14  ;;  %v6037_v0 = vpop.f32.mrb[18].mxu0 }
 0x655   :  { %7981 = vtanh.f32 %v7152_v54  ;;  %v6038_v20 = vpop.f32.mrb[19].mxu0 }
 0x656   :  { %7983 = vtanh.f32 %v7153_v19 }
 0x65f   :  { %v7982_v41 = vpop.eup %7981 }
 0x660   :  { %v7984_v22 = vpop.eup %7983 }
 0x661   :  { %v7039_v23 = vpack.c.bf16 %v7984_v22, %v7982_v41 }
 0x663   :  { %6238 = vst [vmem:[%s10620_s11 + $0x10] sm:$0xff] %v7039_v23 }

</bundles_post_ra>
